<compile_context>
chip_gen: v7x
topology: tpu7x:2x2x1
jax: 0.10.0
libtpu: 0.0.40
codegen_flags: <defaults>
</compile_context>

<pallas_src>
import math
from functools import partial

import jax
import jax.numpy as jnp
from jax.experimental import pallas as pl
from jax.experimental.pallas import tpu as pltpu

INV_SQRT2 = 1.0 / math.sqrt(2.0)
MXU_DTYPE = jnp.bfloat16          # matmul-operand dtype (accumulation stays f32)
_MAX_ROW_TILE = 8192              # packed rows per block (1 packed row = PACK pixels)


def _pick_vmem_limit():
    # Generation-aware scoped-VMEM budget: ~96 MiB on the 128-MiB parts (v5e/v6e),
    # ~48 MiB on the 64-MiB-per-TC v7x; conservative default if the query fails.
    try:
        cap = getattr(pltpu.get_tpu_info(), "vmem_capacity_bytes", None)
    except Exception:
        cap = None
    if not cap:
        return 48 * 1024 * 1024
    return int(min(96 * 1024 * 1024, (cap * 3) // 4))


_VMEM_LIMIT = _pick_vmem_limit()


def _mosaic_params(n_axes=1):
    return pltpu.CompilerParams(
        dimension_semantics=("parallel",) * n_axes,
        vmem_limit_bytes=_VMEM_LIMIT)


def _pack_factor(width):
    return 128 // width if (0 < width <= 128 and 128 % width == 0) else 1


def _row_tile(nrows, row_bytes):
    # Largest row block that fits the double-buffered streaming budget, capped so
    # the grid still has >= 2 steps (keeps v7x's second TensorCore busy).
    budget = _VMEM_LIMIT // 2
    cap = budget // max(1, 2 * row_bytes)
    cap = max(8, min(_MAX_ROW_TILE, (cap // 8) * 8))
    target = -(-nrows // 2)                       # ceil(nrows / 2)
    target = -(-target // 8) * 8                  # round up to 8 sublanes
    return int(max(8, min(cap, target, nrows)))


def _pack_rows(x2d, pack):
    # (N, C) -> (Npad/pack, pack*C): 4 pixels per row so every kernel block is
    # 128 lanes wide (unmasked stores).  Rows padded to a multiple of 8 sublanes.
    n, _ = x2d.shape
    n_pad = (-n) % (pack * 8)
    if n_pad:
        x2d = jnp.pad(x2d, ((0, n_pad), (0, 0)))
    return x2d.reshape((n + n_pad) // pack, pack * x2d.shape[1])


def _unpack_rows(xp, n, c):
    return xp.reshape(-1, c)[:n]


def _erf_f32(x):
    # Eigen/XLA f32 erf rational approximation (same polynomial XLA uses), written
    # out so it lowers cleanly in Mosaic.  Exact division (no approx reciprocal)
    # so GELU stays within normal f32 tolerance of torch's exact-erf GELU.
    x = jnp.clip(x, -4.0, 4.0)
    x2 = x * x
    p = jnp.float32(-2.72614225801306e-10)
    p = p * x2 + jnp.float32(2.77068142495902e-08)
    p = p * x2 + jnp.float32(-2.10102402082508e-06)
    p = p * x2 + jnp.float32(-5.69250639462346e-05)
    p = p * x2 + jnp.float32(-7.34990630326855e-04)
    p = p * x2 + jnp.float32(-2.95459980854025e-03)
    p = p * x2 + jnp.float32(-1.60960333262415e-02)
    p = p * x
    q = jnp.float32(-1.45660718464996e-05)
    q = q * x2 + jnp.float32(-2.13374055278905e-04)
    q = q * x2 + jnp.float32(-1.68282697438203e-03)
    q = q * x2 + jnp.float32(-7.37332916720468e-03)
    q = q * x2 + jnp.float32(-1.42647390514189e-02)
    return p / q


def _gelu(x):
    # exact (erf-based) GELU, matching torch.nn.functional.gelu default
    return 0.5 * x * (1.0 + _erf_f32(x * INV_SQRT2))


# ----------------------------- Pallas kernels ------------------------------ #

def _linear_kernel(x_ref, w_ref, b_ref, o_ref, *, act):
    y = jnp.dot(x_ref[...].astype(MXU_DTYPE), w_ref[...],
                preferred_element_type=jnp.float32)
    y = y + b_ref[...]
    if act:
        y = _gelu(y)
    o_ref[...] = y


def pallas_linear(x, w, b, act=False):
    n, cin = x.shape
    cout = w.shape[1]
    tm = _row_tile(n, 4 * (cin + cout))
    return pl.pallas_call(
        partial(_linear_kernel, act=act),
        out_shape=jax.ShapeDtypeStruct((n, cout), jnp.float32),
        grid=(pl.cdiv(n, tm),),
        in_specs=[
            pl.BlockSpec((tm, cin), lambda i: (i, 0)),
            pl.BlockSpec((cin, cout), lambda i: (0, 0)),
            pl.BlockSpec((1, cout), lambda i: (0, 0)),
        ],
        out_specs=pl.BlockSpec((tm, cout), lambda i: (i, 0)),
        compiler_params=_mosaic_params(),
    )(x, w, b)


def _mix_kernel(x_ref, skip_ref, w_ref, b_ref, o_ref, *, act):
    # o = act(spectral_skip + x @ W_blockdiag + b): fused 1x1 conv + residual + GELU
    y = jnp.dot(x_ref[...].astype(MXU_DTYPE), w_ref[...],
                preferred_element_type=jnp.float32)
    y = y + b_ref[...] + skip_ref[...]
    if act:
        y = _gelu(y)
    o_ref[...] = y


def pallas_mix(x, skip, w, b, act):
    n, c = x.shape
    tm = _row_tile(n, 4 * 3 * c)
    return pl.pallas_call(
        partial(_mix_kernel, act=act),
        out_shape=jax.ShapeDtypeStruct((n, c), jnp.float32),
        grid=(pl.cdiv(n, tm),),
        in_specs=[
            pl.BlockSpec((tm, c), lambda i: (i, 0)),
            pl.BlockSpec((tm, c), lambda i: (i, 0)),
            pl.BlockSpec((c, c), lambda i: (0, 0)),
            pl.BlockSpec((1, c), lambda i: (0, 0)),
        ],
        out_specs=pl.BlockSpec((tm, c), lambda i: (i, 0)),
        input_output_aliases={0: 0},   # reuse the activation buffer (no extra HBM alloc)
        compiler_params=_mosaic_params(),
    )(x, skip, w, b)


def _head_kernel(x_ref, w1_ref, b1_ref, w2_ref, b2_ref, o_ref):
    # fused fc1 -> GELU -> fc2 on pixel-packed rows (the (N,128) hidden never hits HBM)
    h = jnp.dot(x_ref[...].astype(MXU_DTYPE), w1_ref[...],
                preferred_element_type=jnp.float32)
    h = _gelu(h + b1_ref[...])
    y = jnp.dot(h.astype(MXU_DTYPE), w2_ref[...],
                preferred_element_type=jnp.float32)
    o_ref[...] = y + b2_ref[...]


def pallas_head(x, w1, b1, w2, b2):
    n, cin = x.shape
    hdim = w1.shape[1]
    cout = w2.shape[1]
    tm = _row_tile(n, 4 * (cin + hdim + cout))
    return pl.pallas_call(
        _head_kernel,
        out_shape=jax.ShapeDtypeStruct((n, cout), jnp.float32),
        grid=(pl.cdiv(n, tm),),
        in_specs=[
            pl.BlockSpec((tm, cin), lambda i: (i, 0)),
            pl.BlockSpec((cin, hdim), lambda i: (0, 0)),
            pl.BlockSpec((1, hdim), lambda i: (0, 0)),
            pl.BlockSpec((hdim, cout), lambda i: (0, 0)),
            pl.BlockSpec((1, cout), lambda i: (0, 0)),
        ],
        out_specs=pl.BlockSpec((tm, cout), lambda i: (i, 0)),
        compiler_params=_mosaic_params(),
    )(x, w1, b1, w2, b2)


def _spectral_kernel(x_ref, w_ref, o_ref, *, g):
    # g independent per-mode dots  [xr; xi] @ [wr | wi]  with compact bf16 weights
    # (no duplicated [[wr,wi],[-wi,wr]] blocks -> 4x less weight DMA than before).
    for m in range(g):
        o_ref[m] = jnp.dot(x_ref[m].astype(MXU_DTYPE), w_ref[m],
                           preferred_element_type=jnp.float32)


def pallas_spectral_modes(xs, wc):
    # xs: (M2, 2B, Cin) f32,  wc: (M2, Cin, 2*Cout) bf16  ->  (M2, 2B, 2*Cout) f32
    m2_total, twob, cin = xs.shape
    c2 = wc.shape[2]
    per_mode = 4 * twob * cin + 2 * cin * c2 + 4 * twob * c2
    g = max(1, min(m2_total, (2 << 20) // max(1, per_mode)))
    if m2_total >= 2:
        g = min(g, m2_total // 2)          # >= 2 grid steps (v7x second TensorCore)
    g = max(1, g)
    while m2_total % g:
        g -= 1
    return pl.pallas_call(
        partial(_spectral_kernel, g=g),
        out_shape=jax.ShapeDtypeStruct((m2_total, twob, c2), jnp.float32),
        grid=(m2_total // g,),
        in_specs=[
            pl.BlockSpec((g, twob, cin), lambda i: (i, 0, 0)),
            pl.BlockSpec((g, cin, c2), lambda i: (i, 0, 0)),
        ],
        out_specs=pl.BlockSpec((g, twob, c2), lambda i: (i, 0, 0)),
        compiler_params=_mosaic_params(),
    )(xs, wc)


# ---------------------------- model components ----------------------------- #

def spectral_conv2d(h, wc, m1, m2):
    # h: (B, Hp, Wp, Cin) f32;  wc: (2*m1*m2, Cin, 2*Cout) bf16 compact weights.
    # TODO(synk): rfft2 / irfft2 have no Pallas primitive; they run via jnp.fft
    # (XLA).  A mode-truncated inverse transform would cut that HBM traffic further.
    B, Hp, Wp, Cin = h.shape
    Cout = wc.shape[2] // 2
    M = m1 * m2
    assert Hp >= 2 * m1, "corner mode blocks overlap"

    x_ft = jnp.fft.rfft2(h, axes=(1, 2))                  # (B, Hp, Wf, Cin) complex64
    Wf = x_ft.shape[2]
    assert m2 <= Wf

    def corner(sl):                                       # (B,m1,m2,C) -> (M,B,C)
        return jnp.transpose(sl, (1, 2, 0, 3)).reshape(M, B, Cin)

    xc = jnp.concatenate([corner(x_ft[:, :m1, :m2, :]),
                          corner(x_ft[:, Hp - m1:, :m2, :])], axis=0)     # (2M,B,Cin)
    xs = jnp.concatenate([jnp.real(xc), jnp.imag(xc)], axis=1)            # (2M,2B,Cin)
    xs = xs.astype(jnp.float32)

    res = pallas_spectral_modes(xs, wc)                   # (2M, 2B, 2*Cout)
    rr = res[:, :B, :]                                    # xr @ [wr | wi]
    ri = res[:, B:, :]                                    # xi @ [wr | wi]
    o_re = rr[..., :Cout] - ri[..., Cout:]
    o_im = rr[..., Cout:] + ri[..., :Cout]
    o = (o_re + 1j * o_im).astype(jnp.complex64)          # (2M, B, Cout)

    def uncorner(blk):                                    # (M,B,Cout) -> (B,m1,m2,Cout)
        return jnp.transpose(blk.reshape(m1, m2, B, Cout), (2, 0, 1, 3))

    # Build out_ft with pad + concat (no full-size zeros + .at[].set scatter).
    top = jnp.pad(uncorner(o[:M]), ((0, 0), (0, 0), (0, Wf - m2), (0, 0)))
    bot = jnp.pad(uncorner(o[M:]), ((0, 0), (0, 0), (0, Wf - m2), (0, 0)))
    mid = jnp.zeros((B, Hp - 2 * m1, Wf, Cout), dtype=jnp.complex64)
    out_ft = jnp.concatenate([top, mid, bot], axis=1)     # (B, Hp, Wf, Cout)
    return jnp.fft.irfft2(out_ft, s=(Hp, Wp), axes=(1, 2)).astype(jnp.float32)


def init_params(key, modes1, modes2, width, n_layers):
    keys = iter(jax.random.split(key, 6 * n_layers + 6))

    def lin(fan_in, fan_out):                              # torch nn.Linear / 1x1 Conv
        bound = 1.0 / math.sqrt(fan_in)
        w = jax.random.uniform(next(keys), (fan_in, fan_out), jnp.float32, -bound, bound)
        b = jax.random.uniform(next(keys), (fan_out,), jnp.float32, -bound, bound)
        return w, b

    fc0 = lin(12, width)
    spec, w_ws, w_bs = [], [], []
    sscale = 1.0 / (width * width)
    for _ in range(n_layers):
        ms = (width, width, modes1, modes2)
        spec.append(tuple(sscale * jax.random.uniform(next(keys), ms, jnp.float32)
                          for _ in range(4)))              # (w1r, w1i, w2r, w2i)
        ww, wb = lin(width, width)
        w_ws.append(ww)
        w_bs.append(wb)
    fc1 = lin(width, 128)
    fc2 = lin(128, 1)
    return {"fc0": fc0, "spec": spec, "w": (w_ws, w_bs), "fc1": fc1, "fc2": fc2}


def prepare_params(params, modes1, modes2, width):
    # Hoisted (once-per-model) weight prep: pixel-packed block-diagonal weights,
    # tiled biases, compact bf16 spectral weights.  Nothing here runs per forward.
    pack = _pack_factor(width)
    eye = jnp.eye(pack, dtype=jnp.float32)

    def bd(w):                     # (cin, cout) -> block-diag (pack*cin, pack*cout)
        return jnp.kron(eye, jnp.asarray(w, jnp.float32)).astype(MXU_DTYPE)

    def tb(b):                     # (cout,) -> (1, pack*cout) tiled bias (f32)
        return jnp.tile(jnp.asarray(b, jnp.float32).reshape(-1), pack).reshape(1, -1)

    M = modes1 * modes2

    def pack_spec(w1r, w1i, w2r, w2i):
        cin, cout = w1r.shape[0], w1r.shape[1]

        def flat(w):               # (cin, cout, m1, m2) -> (M, cin, cout)
            return jnp.transpose(w, (2, 3, 0, 1)).reshape(M, cin, cout)

        wr = jnp.concatenate([flat(w1r), flat(w2r)], axis=0)
        wi = jnp.concatenate([flat(w1i), flat(w2i)], axis=0)
        return jnp.concatenate([wr, wi], axis=2).astype(MXU_DTYPE)   # (2M, cin, 2cout)

    w_ws, w_bs = params["w"]
    return {
        "fc0_w": bd(params["fc0"][0]), "fc0_b": tb(params["fc0"][1]),
        "w_w": [bd(w) for w in w_ws], "w_b": [tb(b) for b in w_bs],
        "spec_w": [pack_spec(*s) for s in params["spec"]],
        "fc1_w": bd(params["fc1"][0]), "fc1_b": tb(params["fc1"][1]),
        "fc2_w": bd(params["fc2"][0]), "fc2_b": tb(params["fc2"][1]),
    }


def fno2d_forward(prep, x, modes1, modes2, width, n_layers, padding=1):
    B, Sx, Sy, Cf = x.shape
    pack = _pack_factor(width)
    N0 = B * Sx * Sy

    # get_grid() coordinates appended as the last two channels (torch.cat order).
    gx = jnp.linspace(0.0, 1.0, Sx, dtype=jnp.float32)
    gy = jnp.linspace(0.0, 1.0, Sy, dtype=jnp.float32)
    grid2 = jnp.stack(
        [jnp.broadcast_to(gx[None, :, None], (B, Sx, Sy)),
         jnp.broadcast_to(gy[None, None, :], (B, Sx, Sy))], axis=-1)
    x12 = jnp.concatenate([x.astype(jnp.float32), grid2], axis=-1)   # (B,Sx,Sy,Cf+2)

    # fc0 on lane-packed rows (128-wide blocks, block-diagonal weight)
    h = pallas_linear(_pack_rows(x12.reshape(N0, Cf + 2), pack),
                      prep["fc0_w"], prep["fc0_b"], act=False)
    h = _unpack_rows(h, N0, width).reshape(B, Sx, Sy, width)

    # F.pad([0, 1, 0, 1]) in NCHW -> right/bottom spatial pad in NHWC
    h = jnp.pad(h, ((0, 0), (0, padding), (0, padding), (0, 0)))
    Hp, Wp = Sx + padding, Sy + padding
    Np = B * Hp * Wp

    hp = _pack_rows(h.reshape(Np, width), pack)        # canonical packed activations
    for i in range(n_layers):
        h_sp = _unpack_rows(hp, Np, width).reshape(B, Hp, Wp, width)
        x1 = spectral_conv2d(h_sp, prep["spec_w"][i], modes1, modes2)
        x1p = _pack_rows(x1.reshape(Np, width), pack)
        hp = pallas_mix(hp, x1p, prep["w_w"][i], prep["w_b"][i],
                        act=(i < n_layers - 1))

    h = _unpack_rows(hp, Np, width).reshape(B, Hp, Wp, width)[:, :Sx, :Sy, :]
    out = pallas_head(_pack_rows(h.reshape(N0, width), pack),
                      prep["fc1_w"], prep["fc1_b"], prep["fc2_w"], prep["fc2_b"])
    return _unpack_rows(out, N0, 1).reshape(B, Sx, Sy, 1)


if __name__ == "__main__":
    key = jax.random.PRNGKey(0)
    k_x, k_p = jax.random.split(key)

    B, Sx, Sy = 2, 16, 16
    modes1 = modes2 = 4
    width = 32
    n_layers = 4

    # FNO input has 10 feature channels; +2 grid channels = 12 for fc0.
    x = jax.random.normal(k_x, (B, Sx, Sy, 10), dtype=jnp.float32)
    params = init_params(k_p, modes1, modes2, width, n_layers)
    prep = prepare_params(params, modes1, modes2, width)   # hoisted out of forward

    fwd = jax.jit(partial(fno2d_forward, modes1=modes1, modes2=modes2,
                          width=width, n_layers=n_layers))
    out = jax.block_until_ready(fwd(prep, x))
    assert out.shape == (B, Sx, Sy, 1), out.shape
    assert bool(jnp.all(jnp.isfinite(out)))
    print("KERNEL_OK")
</pallas_src>

<mosaic_0001>
module attributes {stable_mosaic.version = 11 : i64} {
  func.func @_linear_kernel(%arg0: i32, %arg1: memref<64x48xf32, #tpu.memory_space<vmem>>, %arg2: memref<48x128xbf16, #tpu.memory_space<vmem>>, %arg3: memref<1x128xf32, #tpu.memory_space<vmem>>, %arg4: memref<64x128xf32, #tpu.memory_space<vmem>>) attributes {dimension_semantics = [#tpu.dimension_semantics<parallel>], iteration_bounds = array<i64: 2>, scalar_prefetch = 0 : i64, scratch_operands = 0 : i64, tpu.core_type = #tpu.core_type<tc>, window_params = [{transform_indices = @transform_0, window_bounds = array<i64: 64, 48>}, {pipeline_mode = #tpu.pipeline_mode<synchronous>, transform_indices = @transform_1, window_bounds = array<i64: 48, 128>}, {pipeline_mode = #tpu.pipeline_mode<synchronous>, transform_indices = @transform_2, window_bounds = array<i64: 1, 128>}, {transform_indices = @transform_3, window_bounds = array<i64: 64, 128>}]} {
    %c0 = arith.constant 0 : index
    %c0_0 = arith.constant 0 : index
    %0 = vector.load %arg1[%c0, %c0_0] : memref<64x48xf32, #tpu.memory_space<vmem>>, vector<64x48xf32>
    %1 = arith.truncf %0 : vector<64x48xf32> to vector<64x48xbf16>
    %c0_1 = arith.constant 0 : index
    %c0_2 = arith.constant 0 : index
    %2 = vector.load %arg2[%c0_1, %c0_2] : memref<48x128xbf16, #tpu.memory_space<vmem>>, vector<48x128xbf16>
    %cst = arith.constant dense<0.000000e+00> : vector<64x128xf32>
    %3 = tpu.matmul %1, %2, %cst {dimension_numbers = #tpu.dot_dimension_numbers<[1], [0], [0], [1], [0, 0, 1, 1], [], []>} : vector<64x48xbf16>, vector<48x128xbf16>, vector<64x128xf32> -> vector<64x128xf32>
    %c0_3 = arith.constant 0 : index
    %c0_4 = arith.constant 0 : index
    %4 = vector.load %arg3[%c0_3, %c0_4] : memref<1x128xf32, #tpu.memory_space<vmem>>, vector<1x128xf32>
    %5 = vector.broadcast %4 : vector<1x128xf32> to vector<64x128xf32>
    %6 = arith.addf %3, %5 : vector<64x128xf32>
    %c0_5 = arith.constant 0 : index
    %c0_6 = arith.constant 0 : index
    %7 = vector.load %arg4[%c0_5, %c0_6] : memref<64x128xf32, #tpu.memory_space<vmem>>, vector<64x128xf32>
    tpu.vector_store %arg4[%c0_5, %c0_6], %6 {strides = array<i32>} : memref<64x128xf32, #tpu.memory_space<vmem>>, vector<64x128xf32>,
    return
  }
  func.func @transform_0(%arg0: i32) -> (i32, i32) {
    %c0_i32 = arith.constant 0 : i32
    %c0_i32_0 = arith.constant 0 : i32
    return %arg0, %c0_i32 : i32, i32
  }
  func.func @transform_1(%arg0: i32) -> (i32, i32) {
    %c0_i32 = arith.constant 0 : i32
    %c0_i32_0 = arith.constant 0 : i32
    %c0_i32_1 = arith.constant 0 : i32
    return %c0_i32, %c0_i32_0 : i32, i32
  }
  func.func @transform_2(%arg0: i32) -> (i32, i32) {
    %c0_i32 = arith.constant 0 : i32
    %c0_i32_0 = arith.constant 0 : i32
    %c0_i32_1 = arith.constant 0 : i32
    return %c0_i32, %c0_i32_0 : i32, i32
  }
  func.func @transform_3(%arg0: i32) -> (i32, i32) {
    %c0_i32 = arith.constant 0 : i32
    %c0_i32_0 = arith.constant 0 : i32
    return %arg0, %c0_i32 : i32, i32
  }
}

module attributes {stable_mosaic.version = 11 : i64} {
  func.func @_spectral_kernel(%arg0: i32, %arg1: memref<16x4x32xf32, #tpu.memory_space<vmem>>, %arg2: memref<16x32x64xbf16, #tpu.memory_space<vmem>>, %arg3: memref<16x4x64xf32, #tpu.memory_space<vmem>>) attributes {dimension_semantics = [#tpu.dimension_semantics<parallel>], iteration_bounds = array<i64: 2>, scalar_prefetch = 0 : i64, scratch_operands = 0 : i64, tpu.core_type = #tpu.core_type<tc>, window_params = [{transform_indices = @transform_0, window_bounds = array<i64: 16, 4, 32>}, {transform_indices = @transform_1, window_bounds = array<i64: 16, 32, 64>}, {transform_indices = @transform_2, window_bounds = array<i64: 16, 4, 64>}]} {
    %c0 = arith.constant 0 : index
    %c0_0 = arith.constant 0 : index
    %c0_1 = arith.constant 0 : index
    %0 = vector.load %arg1[%c0, %c0_0, %c0_1] : memref<16x4x32xf32, #tpu.memory_space<vmem>>, vector<1x4x32xf32>
    %1 = vector.shape_cast %0 : vector<1x4x32xf32> to vector<4x32xf32>
    %2 = arith.truncf %1 : vector<4x32xf32> to vector<4x32xbf16>
    %c0_2 = arith.constant 0 : index
    %c0_3 = arith.constant 0 : index
    %c0_4 = arith.constant 0 : index
    %3 = vector.load %arg2[%c0_2, %c0_3, %c0_4] : memref<16x32x64xbf16, #tpu.memory_space<vmem>>, vector<1x32x64xbf16>
    %4 = vector.shape_cast %3 : vector<1x32x64xbf16> to vector<32x64xbf16>
    %cst = arith.constant dense<0.000000e+00> : vector<4x64xf32>
    %5 = tpu.matmul %2, %4, %cst {dimension_numbers = #tpu.dot_dimension_numbers<[1], [0], [0], [1], [0, 0, 1, 1], [], []>} : vector<4x32xbf16>, vector<32x64xbf16>, vector<4x64xf32> -> vector<4x64xf32>
    %c0_5 = arith.constant 0 : index
    %c0_6 = arith.constant 0 : index
    %c0_7 = arith.constant 0 : index
    %6 = vector.load %arg3[%c0_5, %c0_6, %c0_7] : memref<16x4x64xf32, #tpu.memory_space<vmem>>, vector<1x4x64xf32>
    %7 = vector.shape_cast %6 : vector<1x4x64xf32> to vector<4x64xf32>
    %8 = vector.shape_cast %5 : vector<4x64xf32> to vector<1x4x64xf32>
    tpu.vector_store %arg3[%c0_5, %c0_6, %c0_7], %8 {strides = array<i32>} : memref<16x4x64xf32, #tpu.memory_space<vmem>>, vector<1x4x64xf32>,
    %c1 = arith.constant 1 : index
    %c0_8 = arith.constant 0 : index
    %c0_9 = arith.constant 0 : index
    %9 = vector.load %arg1[%c1, %c0_8, %c0_9] : memref<16x4x32xf32, #tpu.memory_space<vmem>>, vector<1x4x32xf32>
    %10 = vector.shape_cast %9 : vector<1x4x32xf32> to vector<4x32xf32>
    %11 = arith.truncf %10 : vector<4x32xf32> to vector<4x32xbf16>
    %c1_10 = arith.constant 1 : index
    %c0_11 = arith.constant 0 : index
    %c0_12 = arith.constant 0 : index
    %12 = vector.load %arg2[%c1_10, %c0_11, %c0_12] : memref<16x32x64xbf16, #tpu.memory_space<vmem>>, vector<1x32x64xbf16>
    %13 = vector.shape_cast %12 : vector<1x32x64xbf16> to vector<32x64xbf16>
    %cst_13 = arith.constant dense<0.000000e+00> : vector<4x64xf32>
    %14 = tpu.matmul %11, %13, %cst_13 {dimension_numbers = #tpu.dot_dimension_numbers<[1], [0], [0], [1], [0, 0, 1, 1], [], []>} : vector<4x32xbf16>, vector<32x64xbf16>, vector<4x64xf32> -> vector<4x64xf32>
    %c1_14 = arith.constant 1 : index
    %c0_15 = arith.constant 0 : index
    %c0_16 = arith.constant 0 : index
    %15 = vector.load %arg3[%c1_14, %c0_15, %c0_16] : memref<16x4x64xf32, #tpu.memory_space<vmem>>, vector<1x4x64xf32>
    %16 = vector.shape_cast %15 : vector<1x4x64xf32> to vector<4x64xf32>
    %17 = vector.shape_cast %14 : vector<4x64xf32> to vector<1x4x64xf32>
    tpu.vector_store %arg3[%c1_14, %c0_15, %c0_16], %17 {strides = array<i32>} : memref<16x4x64xf32, #tpu.memory_space<vmem>>, vector<1x4x64xf32>,
    %c2 = arith.constant 2 : index
    %c0_17 = arith.constant 0 : index
    %c0_18 = arith.constant 0 : index
    %18 = vector.load %arg1[%c2, %c0_17, %c0_18] : memref<16x4x32xf32, #tpu.memory_space<vmem>>, vector<1x4x32xf32>
    %19 = vector.shape_cast %18 : vector<1x4x32xf32> to vector<4x32xf32>
    %20 = arith.truncf %19 : vector<4x32xf32> to vector<4x32xbf16>
    %c2_19 = arith.constant 2 : index
    %c0_20 = arith.constant 0 : index
    %c0_21 = arith.constant 0 : index
    %21 = vector.load %arg2[%c2_19, %c0_20, %c0_21] : memref<16x32x64xbf16, #tpu.memory_space<vmem>>, vector<1x32x64xbf16>
    %22 = vector.shape_cast %21 : vector<1x32x64xbf16> to vector<32x64xbf16>
    %cst_22 = arith.constant dense<0.000000e+00> : vector<4x64xf32>
    %23 = tpu.matmul %20, %22, %cst_22 {dimension_numbers = #tpu.dot_dimension_numbers<[1], [0], [0], [1], [0, 0, 1, 1], [], []>} : vector<4x32xbf16>, vector<32x64xbf16>, vector<4x64xf32> -> vector<4x64xf32>
    %c2_23 = arith.constant 2 : index
    %c0_24 = arith.constant 0 : index
    %c0_25 = arith.constant 0 : index
    %24 = vector.load %arg3[%c2_23, %c0_24, %c0_25] : memref<16x4x64xf32, #tpu.memory_space<vmem>>, vector<1x4x64xf32>
    %25 = vector.shape_cast %24 : vector<1x4x64xf32> to vector<4x64xf32>
    %26 = vector.shape_cast %23 : vector<4x64xf32> to vector<1x4x64xf32>
    tpu.vector_store %arg3[%c2_23, %c0_24, %c0_25], %26 {strides = array<i32>} : memref<16x4x64xf32, #tpu.memory_space<vmem>>, vector<1x4x64xf32>,
    %c3 = arith.constant 3 : index
    %c0_26 = arith.constant 0 : index
    %c0_27 = arith.constant 0 : index
    %27 = vector.load %arg1[%c3, %c0_26, %c0_27] : memref<16x4x32xf32, #tpu.memory_space<vmem>>, vector<1x4x32xf32>
    %28 = vector.shape_cast %27 : vector<1x4x32xf32> to vector<4x32xf32>
    %29 = arith.truncf %28 : vector<4x32xf32> to vector<4x32xbf16>
    %c3_28 = arith.constant 3 : index
    %c0_29 = arith.constant 0 : index
    %c0_30 = arith.constant 0 : index
    %30 = vector.load %arg2[%c3_28, %c0_29, %c0_30] : memref<16x32x64xbf16, #tpu.memory_space<vmem>>, vector<1x32x64xbf16>
    %31 = vector.shape_cast %30 : vector<1x32x64xbf16> to vector<32x64xbf16>
    %cst_31 = arith.constant dense<0.000000e+00> : vector<4x64xf32>
    %32 = tpu.matmul %29, %31, %cst_31 {dimension_numbers = #tpu.dot_dimension_numbers<[1], [0], [0], [1], [0, 0, 1, 1], [], []>} : vector<4x32xbf16>, vector<32x64xbf16>, vector<4x64xf32> -> vector<4x64xf32>
    %c3_32 = arith.constant 3 : index
    %c0_33 = arith.constant 0 : index
    %c0_34 = arith.constant 0 : index
    %33 = vector.load %arg3[%c3_32, %c0_33, %c0_34] : memref<16x4x64xf32, #tpu.memory_space<vmem>>, vector<1x4x64xf32>
    %34 = vector.shape_cast %33 : vector<1x4x64xf32> to vector<4x64xf32>
    %35 = vector.shape_cast %32 : vector<4x64xf32> to vector<1x4x64xf32>
    tpu.vector_store %arg3[%c3_32, %c0_33, %c0_34], %35 {strides = array<i32>} : memref<16x4x64xf32, #tpu.memory_space<vmem>>, vector<1x4x64xf32>,
    %c4 = arith.constant 4 : index
    %c0_35 = arith.constant 0 : index
    %c0_36 = arith.constant 0 : index
    %36 = vector.load %arg1[%c4, %c0_35, %c0_36] : memref<16x4x32xf32, #tpu.memory_space<vmem>>, vector<1x4x32xf32>
    %37 = vector.shape_cast %36 : vector<1x4x32xf32> to vector<4x32xf32>
    %38 = arith.truncf %37 : vector<4x32xf32> to vector<4x32xbf16>
    %c4_37 = arith.constant 4 : index
    %c0_38 = arith.constant 0 : index
    %c0_39 = arith.constant 0 : index
    %39 = vector.load %arg2[%c4_37, %c0_38, %c0_39] : memref<16x32x64xbf16, #tpu.memory_space<vmem>>, vector<1x32x64xbf16>
    %40 = vector.shape_cast %39 : vector<1x32x64xbf16> to vector<32x64xbf16>
    %cst_40 = arith.constant dense<0.000000e+00> : vector<4x64xf32>
    %41 = tpu.matmul %38, %40, %cst_40 {dimension_numbers = #tpu.dot_dimension_numbers<[1], [0], [0], [1], [0, 0, 1, 1], [], []>} : vector<4x32xbf16>, vector<32x64xbf16>, vector<4x64xf32> -> vector<4x64xf32>
    %c4_41 = arith.constant 4 : index
    %c0_42 = arith.constant 0 : index
    %c0_43 = arith.constant 0 : index
    %42 = vector.load %arg3[%c4_41, %c0_42, %c0_43] : memref<16x4x64xf32, #tpu.memory_space<vmem>>, vector<1x4x64xf32>
    %43 = vector.shape_cast %42 : vector<1x4x64xf32> to vector<4x64xf32>
    %44 = vector.shape_cast %41 : vector<4x64xf32> to vector<1x4x64xf32>
    tpu.vector_store %arg3[%c4_41, %c0_42, %c0_43], %44 {strides = array<i32>} : memref<16x4x64xf32, #tpu.memory_space<vmem>>, vector<1x4x64xf32>,
    %c5 = arith.constant 5 : index
    %c0_44 = arith.constant 0 : index
    %c0_45 = arith.constant 0 : index
    %45 = vector.load %arg1[%c5, %c0_44, %c0_45] : memref<16x4x32xf32, #tpu.memory_space<vmem>>, vector<1x4x32xf32>
    %46 = vector.shape_cast %45 : vector<1x4x32xf32> to vector<4x32xf32>
    %47 = arith.truncf %46 : vector<4x32xf32> to vector<4x32xbf16>
    %c5_46 = arith.constant 5 : index
    %c0_47 = arith.constant 0 : index
    %c0_48 = arith.constant 0 : index
    %48 = vector.load %arg2[%c5_46, %c0_47, %c0_48] : memref<16x32x64xbf16, #tpu.memory_space<vmem>>, vector<1x32x64xbf16>
    %49 = vector.shape_cast %48 : vector<1x32x64xbf16> to vector<32x64xbf16>
    %cst_49 = arith.constant dense<0.000000e+00> : vector<4x64xf32>
    %50 = tpu.matmul %47, %49, %cst_49 {dimension_numbers = #tpu.dot_dimension_numbers<[1], [0], [0], [1], [0, 0, 1, 1], [], []>} : vector<4x32xbf16>, vector<32x64xbf16>, vector<4x64xf32> -> vector<4x64xf32>
    %c5_50 = arith.constant 5 : index
    %c0_51 = arith.constant 0 : index
    %c0_52 = arith.constant 0 : index
    %51 = vector.load %arg3[%c5_50, %c0_51, %c0_52] : memref<16x4x64xf32, #tpu.memory_space<vmem>>, vector<1x4x64xf32>
    %52 = vector.shape_cast %51 : vector<1x4x64xf32> to vector<4x64xf32>
    %53 = vector.shape_cast %50 : vector<4x64xf32> to vector<1x4x64xf32>
    tpu.vector_store %arg3[%c5_50, %c0_51, %c0_52], %53 {strides = array<i32>} : memref<16x4x64xf32, #tpu.memory_space<vmem>>, vector<1x4x64xf32>,
    %c6 = arith.constant 6 : index
    %c0_53 = arith.constant 0 : index
    %c0_54 = arith.constant 0 : index
    %54 = vector.load %arg1[%c6, %c0_53, %c0_54] : memref<16x4x32xf32, #tpu.memory_space<vmem>>, vector<1x4x32xf32>
    %55 = vector.shape_cast %54 : vector<1x4x32xf32> to vector<4x32xf32>
    %56 = arith.truncf %55 : vector<4x32xf32> to vector<4x32xbf16>
    %c6_55 = arith.constant 6 : index
    %c0_56 = arith.constant 0 : index
    %c0_57 = arith.constant 0 : index
    %57 = vector.load %arg2[%c6_55, %c0_56, %c0_57] : memref<16x32x64xbf16, #tpu.memory_space<vmem>>, vector<1x32x64xbf16>
    %58 = vector.shape_cast %57 : vector<1x32x64xbf16> to vector<32x64xbf16>
    %cst_58 = arith.constant dense<0.000000e+00> : vector<4x64xf32>
    %59 = tpu.matmul %56, %58, %cst_58 {dimension_numbers = #tpu.dot_dimension_numbers<[1], [0], [0], [1], [0, 0, 1, 1], [], []>} : vector<4x32xbf16>, vector<32x64xbf16>, vector<4x64xf32> -> vector<4x64xf32>
    %c6_59 = arith.constant 6 : index
    %c0_60 = arith.constant 0 : index
    %c0_61 = arith.constant 0 : index
    %60 = vector.load %arg3[%c6_59, %c0_60, %c0_61] : memref<16x4x64xf32, #tpu.memory_space<vmem>>, vector<1x4x64xf32>
    %61 = vector.shape_cast %60 : vector<1x4x64xf32> to vector<4x64xf32>
    %62 = vector.shape_cast %59 : vector<4x64xf32> to vector<1x4x64xf32>
    tpu.vector_store %arg3[%c6_59, %c0_60, %c0_61], %62 {strides = array<i32>} : memref<16x4x64xf32, #tpu.memory_space<vmem>>, vector<1x4x64xf32>,
    %c7 = arith.constant 7 : index
    %c0_62 = arith.constant 0 : index
    %c0_63 = arith.constant 0 : index
    %63 = vector.load %arg1[%c7, %c0_62, %c0_63] : memref<16x4x32xf32, #tpu.memory_space<vmem>>, vector<1x4x32xf32>
    %64 = vector.shape_cast %63 : vector<1x4x32xf32> to vector<4x32xf32>
    %65 = arith.truncf %64 : vector<4x32xf32> to vector<4x32xbf16>
    %c7_64 = arith.constant 7 : index
    %c0_65 = arith.constant 0 : index
    %c0_66 = arith.constant 0 : index
    %66 = vector.load %arg2[%c7_64, %c0_65, %c0_66] : memref<16x32x64xbf16, #tpu.memory_space<vmem>>, vector<1x32x64xbf16>
    %67 = vector.shape_cast %66 : vector<1x32x64xbf16> to vector<32x64xbf16>
    %cst_67 = arith.constant dense<0.000000e+00> : vector<4x64xf32>
    %68 = tpu.matmul %65, %67, %cst_67 {dimension_numbers = #tpu.dot_dimension_numbers<[1], [0], [0], [1], [0, 0, 1, 1], [], []>} : vector<4x32xbf16>, vector<32x64xbf16>, vector<4x64xf32> -> vector<4x64xf32>
    %c7_68 = arith.constant 7 : index
    %c0_69 = arith.constant 0 : index
    %c0_70 = arith.constant 0 : index
    %69 = vector.load %arg3[%c7_68, %c0_69, %c0_70] : memref<16x4x64xf32, #tpu.memory_space<vmem>>, vector<1x4x64xf32>
    %70 = vector.shape_cast %69 : vector<1x4x64xf32> to vector<4x64xf32>
    %71 = vector.shape_cast %68 : vector<4x64xf32> to vector<1x4x64xf32>
    tpu.vector_store %arg3[%c7_68, %c0_69, %c0_70], %71 {strides = array<i32>} : memref<16x4x64xf32, #tpu.memory_space<vmem>>, vector<1x4x64xf32>,
    %c8 = arith.constant 8 : index
    %c0_71 = arith.constant 0 : index
    %c0_72 = arith.constant 0 : index
    %72 = vector.load %arg1[%c8, %c0_71, %c0_72] : memref<16x4x32xf32, #tpu.memory_space<vmem>>, vector<1x4x32xf32>
    %73 = vector.shape_cast %72 : vector<1x4x32xf32> to vector<4x32xf32>
    %74 = arith.truncf %73 : vector<4x32xf32> to vector<4x32xbf16>
    %c8_73 = arith.constant 8 : index
    %c0_74 = arith.constant 0 : index
    %c0_75 = arith.constant 0 : index
    %75 = vector.load %arg2[%c8_73, %c0_74, %c0_75] : memref<16x32x64xbf16, #tpu.memory_space<vmem>>, vector<1x32x64xbf16>
    %76 = vector.shape_cast %75 : vector<1x32x64xbf16> to vector<32x64xbf16>
    %cst_76 = arith.constant dense<0.000000e+00> : vector<4x64xf32>
    %77 = tpu.matmul %74, %76, %cst_76 {dimension_numbers = #tpu.dot_dimension_numbers<[1], [0], [0], [1], [0, 0, 1, 1], [], []>} : vector<4x32xbf16>, vector<32x64xbf16>, vector<4x64xf32> -> vector<4x64xf32>
    %c8_77 = arith.constant 8 : index
    %c0_78 = arith.constant 0 : index
    %c0_79 = arith.constant 0 : index
    %78 = vector.load %arg3[%c8_77, %c0_78, %c0_79] : memref<16x4x64xf32, #tpu.memory_space<vmem>>, vector<1x4x64xf32>
    %79 = vector.shape_cast %78 : vector<1x4x64xf32> to vector<4x64xf32>
    %80 = vector.shape_cast %77 : vector<4x64xf32> to vector<1x4x64xf32>
    tpu.vector_store %arg3[%c8_77, %c0_78, %c0_79], %80 {strides = array<i32>} : memref<16x4x64xf32, #tpu.memory_space<vmem>>, vector<1x4x64xf32>,
    %c9 = arith.constant 9 : index
    %c0_80 = arith.constant 0 : index
    %c0_81 = arith.constant 0 : index
    %81 = vector.load %arg1[%c9, %c0_80, %c0_81] : memref<16x4x32xf32, #tpu.memory_space<vmem>>, vector<1x4x32xf32>
    %82 = vector.shape_cast %81 : vector<1x4x32xf32> to vector<4x32xf32>
    %83 = arith.truncf %82 : vector<4x32xf32> to vector<4x32xbf16>
    %c9_82 = arith.constant 9 : index
    %c0_83 = arith.constant 0 : index
    %c0_84 = arith.constant 0 : index
    %84 = vector.load %arg2[%c9_82, %c0_83, %c0_84] : memref<16x32x64xbf16, #tpu.memory_space<vmem>>, vector<1x32x64xbf16>
    %85 = vector.shape_cast %84 : vector<1x32x64xbf16> to vector<32x64xbf16>
    %cst_85 = arith.constant dense<0.000000e+00> : vector<4x64xf32>
    %86 = tpu.matmul %83, %85, %cst_85 {dimension_numbers = #tpu.dot_dimension_numbers<[1], [0], [0], [1], [0, 0, 1, 1], [], []>} : vector<4x32xbf16>, vector<32x64xbf16>, vector<4x64xf32> -> vector<4x64xf32>
    %c9_86 = arith.constant 9 : index
    %c0_87 = arith.constant 0 : index
    %c0_88 = arith.constant 0 : index
    %87 = vector.load %arg3[%c9_86, %c0_87, %c0_88] : memref<16x4x64xf32, #tpu.memory_space<vmem>>, vector<1x4x64xf32>
    %88 = vector.shape_cast %87 : vector<1x4x64xf32> to vector<4x64xf32>
    %89 = vector.shape_cast %86 : vector<4x64xf32> to vector<1x4x64xf32>
    tpu.vector_store %arg3[%c9_86, %c0_87, %c0_88], %89 {strides = array<i32>} : memref<16x4x64xf32, #tpu.memory_space<vmem>>, vector<1x4x64xf32>,
    %c10 = arith.constant 10 : index
    %c0_89 = arith.constant 0 : index
    %c0_90 = arith.constant 0 : index
    %90 = vector.load %arg1[%c10, %c0_89, %c0_90] : memref<16x4x32xf32, #tpu.memory_space<vmem>>, vector<1x4x32xf32>
    %91 = vector.shape_cast %90 : vector<1x4x32xf32> to vector<4x32xf32>
    %92 = arith.truncf %91 : vector<4x32xf32> to vector<4x32xbf16>
    %c10_91 = arith.constant 10 : index
    %c0_92 = arith.constant 0 : index
    %c0_93 = arith.constant 0 : index
    %93 = vector.load %arg2[%c10_91, %c0_92, %c0_93] : memref<16x32x64xbf16, #tpu.memory_space<vmem>>, vector<1x32x64xbf16>
    %94 = vector.shape_cast %93 : vector<1x32x64xbf16> to vector<32x64xbf16>
    %cst_94 = arith.constant dense<0.000000e+00> : vector<4x64xf32>
    %95 = tpu.matmul %92, %94, %cst_94 {dimension_numbers = #tpu.dot_dimension_numbers<[1], [0], [0], [1], [0, 0, 1, 1], [], []>} : vector<4x32xbf16>, vector<32x64xbf16>, vector<4x64xf32> -> vector<4x64xf32>
    %c10_95 = arith.constant 10 : index
    %c0_96 = arith.constant 0 : index
    %c0_97 = arith.constant 0 : index
    %96 = vector.load %arg3[%c10_95, %c0_96, %c0_97] : memref<16x4x64xf32, #tpu.memory_space<vmem>>, vector<1x4x64xf32>
    %97 = vector.shape_cast %96 : vector<1x4x64xf32> to vector<4x64xf32>
    %98 = vector.shape_cast %95 : vector<4x64xf32> to vector<1x4x64xf32>
    tpu.vector_store %arg3[%c10_95, %c0_96, %c0_97], %98 {strides = array<i32>} : memref<16x4x64xf32, #tpu.memory_space<vmem>>, vector<1x4x64xf32>,
    %c11 = arith.constant 11 : index
    %c0_98 = arith.constant 0 : index
    %c0_99 = arith.constant 0 : index
    %99 = vector.load %arg1[%c11, %c0_98, %c0_99] : memref<16x4x32xf32, #tpu.memory_space<vmem>>, vector<1x4x32xf32>
    %100 = vector.shape_cast %99 : vector<1x4x32xf32> to vector<4x32xf32>
    %101 = arith.truncf %100 : vector<4x32xf32> to vector<4x32xbf16>
    %c11_100 = arith.constant 11 : index
    %c0_101 = arith.constant 0 : index
    %c0_102 = arith.constant 0 : index
    %102 = vector.load %arg2[%c11_100, %c0_101, %c0_102] : memref<16x32x64xbf16, #tpu.memory_space<vmem>>, vector<1x32x64xbf16>
    %103 = vector.shape_cast %102 : vector<1x32x64xbf16> to vector<32x64xbf16>
    %cst_103 = arith.constant dense<0.000000e+00> : vector<4x64xf32>
    %104 = tpu.matmul %101, %103, %cst_103 {dimension_numbers = #tpu.dot_dimension_numbers<[1], [0], [0], [1], [0, 0, 1, 1], [], []>} : vector<4x32xbf16>, vector<32x64xbf16>, vector<4x64xf32> -> vector<4x64xf32>
    %c11_104 = arith.constant 11 : index
    %c0_105 = arith.constant 0 : index
    %c0_106 = arith.constant 0 : index
    %105 = vector.load %arg3[%c11_104, %c0_105, %c0_106] : memref<16x4x64xf32, #tpu.memory_space<vmem>>, vector<1x4x64xf32>
    %106 = vector.shape_cast %105 : vector<1x4x64xf32> to vector<4x64xf32>
    %107 = vector.shape_cast %104 : vector<4x64xf32> to vector<1x4x64xf32>
    tpu.vector_store %arg3[%c11_104, %c0_105, %c0_106], %107 {strides = array<i32>} : memref<16x4x64xf32, #tpu.memory_space<vmem>>, vector<1x4x64xf32>,
    %c12 = arith.constant 12 : index
    %c0_107 = arith.constant 0 : index
    %c0_108 = arith.constant 0 : index
    %108 = vector.load %arg1[%c12, %c0_107, %c0_108] : memref<16x4x32xf32, #tpu.memory_space<vmem>>, vector<1x4x32xf32>
    %109 = vector.shape_cast %108 : vector<1x4x32xf32> to vector<4x32xf32>
    %110 = arith.truncf %109 : vector<4x32xf32> to vector<4x32xbf16>
    %c12_109 = arith.constant 12 : index
    %c0_110 = arith.constant 0 : index
    %c0_111 = arith.constant 0 : index
    %111 = vector.load %arg2[%c12_109, %c0_110, %c0_111] : memref<16x32x64xbf16, #tpu.memory_space<vmem>>, vector<1x32x64xbf16>
    %112 = vector.shape_cast %111 : vector<1x32x64xbf16> to vector<32x64xbf16>
    %cst_112 = arith.constant dense<0.000000e+00> : vector<4x64xf32>
    %113 = tpu.matmul %110, %112, %cst_112 {dimension_numbers = #tpu.dot_dimension_numbers<[1], [0], [0], [1], [0, 0, 1, 1], [], []>} : vector<4x32xbf16>, vector<32x64xbf16>, vector<4x64xf32> -> vector<4x64xf32>
    %c12_113 = arith.constant 12 : index
    %c0_114 = arith.constant 0 : index
    %c0_115 = arith.constant 0 : index
    %114 = vector.load %arg3[%c12_113, %c0_114, %c0_115] : memref<16x4x64xf32, #tpu.memory_space<vmem>>, vector<1x4x64xf32>
    %115 = vector.shape_cast %114 : vector<1x4x64xf32> to vector<4x64xf32>
    %116 = vector.shape_cast %113 : vector<4x64xf32> to vector<1x4x64xf32>
    tpu.vector_store %arg3[%c12_113, %c0_114, %c0_115], %116 {strides = array<i32>} : memref<16x4x64xf32, #tpu.memory_space<vmem>>, vector<1x4x64xf32>,
    %c13 = arith.constant 13 : index
    %c0_116 = arith.constant 0 : index
    %c0_117 = arith.constant 0 : index
    %117 = vector.load %arg1[%c13, %c0_116, %c0_117] : memref<16x4x32xf32, #tpu.memory_space<vmem>>, vector<1x4x32xf32>
    %118 = vector.shape_cast %117 : vector<1x4x32xf32> to vector<4x32xf32>
    %119 = arith.truncf %118 : vector<4x32xf32> to vector<4x32xbf16>
    %c13_118 = arith.constant 13 : index
    %c0_119 = arith.constant 0 : index
    %c0_120 = arith.constant 0 : index
    %120 = vector.load %arg2[%c13_118, %c0_119, %c0_120] : memref<16x32x64xbf16, #tpu.memory_space<vmem>>, vector<1x32x64xbf16>
    %121 = vector.shape_cast %120 : vector<1x32x64xbf16> to vector<32x64xbf16>
    %cst_121 = arith.constant dense<0.000000e+00> : vector<4x64xf32>
    %122 = tpu.matmul %119, %121, %cst_121 {dimension_numbers = #tpu.dot_dimension_numbers<[1], [0], [0], [1], [0, 0, 1, 1], [], []>} : vector<4x32xbf16>, vector<32x64xbf16>, vector<4x64xf32> -> vector<4x64xf32>
    %c13_122 = arith.constant 13 : index
    %c0_123 = arith.constant 0 : index
    %c0_124 = arith.constant 0 : index
    %123 = vector.load %arg3[%c13_122, %c0_123, %c0_124] : memref<16x4x64xf32, #tpu.memory_space<vmem>>, vector<1x4x64xf32>
    %124 = vector.shape_cast %123 : vector<1x4x64xf32> to vector<4x64xf32>
    %125 = vector.shape_cast %122 : vector<4x64xf32> to vector<1x4x64xf32>
    tpu.vector_store %arg3[%c13_122, %c0_123, %c0_124], %125 {strides = array<i32>} : memref<16x4x64xf32, #tpu.memory_space<vmem>>, vector<1x4x64xf32>,
    %c14 = arith.constant 14 : index
    %c0_125 = arith.constant 0 : index
    %c0_126 = arith.constant 0 : index
    %126 = vector.load %arg1[%c14, %c0_125, %c0_126] : memref<16x4x32xf32, #tpu.memory_space<vmem>>, vector<1x4x32xf32>
    %127 = vector.shape_cast %126 : vector<1x4x32xf32> to vector<4x32xf32>
    %128 = arith.truncf %127 : vector<4x32xf32> to vector<4x32xbf16>
    %c14_127 = arith.constant 14 : index
    %c0_128 = arith.constant 0 : index
    %c0_129 = arith.constant 0 : index
    %129 = vector.load %arg2[%c14_127, %c0_128, %c0_129] : memref<16x32x64xbf16, #tpu.memory_space<vmem>>, vector<1x32x64xbf16>
    %130 = vector.shape_cast %129 : vector<1x32x64xbf16> to vector<32x64xbf16>
    %cst_130 = arith.constant dense<0.000000e+00> : vector<4x64xf32>
    %131 = tpu.matmul %128, %130, %cst_130 {dimension_numbers = #tpu.dot_dimension_numbers<[1], [0], [0], [1], [0, 0, 1, 1], [], []>} : vector<4x32xbf16>, vector<32x64xbf16>, vector<4x64xf32> -> vector<4x64xf32>
    %c14_131 = arith.constant 14 : index
    %c0_132 = arith.constant 0 : index
    %c0_133 = arith.constant 0 : index
    %132 = vector.load %arg3[%c14_131, %c0_132, %c0_133] : memref<16x4x64xf32, #tpu.memory_space<vmem>>, vector<1x4x64xf32>
    %133 = vector.shape_cast %132 : vector<1x4x64xf32> to vector<4x64xf32>
    %134 = vector.shape_cast %131 : vector<4x64xf32> to vector<1x4x64xf32>
    tpu.vector_store %arg3[%c14_131, %c0_132, %c0_133], %134 {strides = array<i32>} : memref<16x4x64xf32, #tpu.memory_space<vmem>>, vector<1x4x64xf32>,
    %c15 = arith.constant 15 : index
    %c0_134 = arith.constant 0 : index
    %c0_135 = arith.constant 0 : index
    %135 = vector.load %arg1[%c15, %c0_134, %c0_135] : memref<16x4x32xf32, #tpu.memory_space<vmem>>, vector<1x4x32xf32>
    %136 = vector.shape_cast %135 : vector<1x4x32xf32> to vector<4x32xf32>
    %137 = arith.truncf %136 : vector<4x32xf32> to vector<4x32xbf16>
    %c15_136 = arith.constant 15 : index
    %c0_137 = arith.constant 0 : index
    %c0_138 = arith.constant 0 : index
    %138 = vector.load %arg2[%c15_136, %c0_137, %c0_138] : memref<16x32x64xbf16, #tpu.memory_space<vmem>>, vector<1x32x64xbf16>
    %139 = vector.shape_cast %138 : vector<1x32x64xbf16> to vector<32x64xbf16>
    %cst_139 = arith.constant dense<0.000000e+00> : vector<4x64xf32>
    %140 = tpu.matmul %137, %139, %cst_139 {dimension_numbers = #tpu.dot_dimension_numbers<[1], [0], [0], [1], [0, 0, 1, 1], [], []>} : vector<4x32xbf16>, vector<32x64xbf16>, vector<4x64xf32> -> vector<4x64xf32>
    %c15_140 = arith.constant 15 : index
    %c0_141 = arith.constant 0 : index
    %c0_142 = arith.constant 0 : index
    %141 = vector.load %arg3[%c15_140, %c0_141, %c0_142] : memref<16x4x64xf32, #tpu.memory_space<vmem>>, vector<1x4x64xf32>
    %142 = vector.shape_cast %141 : vector<1x4x64xf32> to vector<4x64xf32>
    %143 = vector.shape_cast %140 : vector<4x64xf32> to vector<1x4x64xf32>
    tpu.vector_store %arg3[%c15_140, %c0_141, %c0_142], %143 {strides = array<i32>} : memref<16x4x64xf32, #tpu.memory_space<vmem>>, vector<1x4x64xf32>,
    return
  }
  func.func @transform_0(%arg0: i32) -> (i32, i32, i32) {
    %c0_i32 = arith.constant 0 : i32
    %c0_i32_0 = arith.constant 0 : i32
    %c0_i32_1 = arith.constant 0 : i32
    return %arg0, %c0_i32, %c0_i32_0 : i32, i32, i32
  }
  func.func @transform_1(%arg0: i32) -> (i32, i32, i32) {
    %c0_i32 = arith.constant 0 : i32
    %c0_i32_0 = arith.constant 0 : i32
    %c0_i32_1 = arith.constant 0 : i32
    return %arg0, %c0_i32, %c0_i32_0 : i32, i32, i32
  }
  func.func @transform_2(%arg0: i32) -> (i32, i32, i32) {
    %c0_i32 = arith.constant 0 : i32
    %c0_i32_0 = arith.constant 0 : i32
    %c0_i32_1 = arith.constant 0 : i32
    return %arg0, %c0_i32, %c0_i32_0 : i32, i32, i32
  }
}

module attributes {stable_mosaic.version = 11 : i64} {
  func.func @_mix_kernel(%arg0: i32, %arg1: memref<80x128xf32, #tpu.memory_space<vmem>>, %arg2: memref<80x128xf32, #tpu.memory_space<vmem>>, %arg3: memref<128x128xbf16, #tpu.memory_space<vmem>>, %arg4: memref<1x128xf32, #tpu.memory_space<vmem>>, %arg5: memref<80x128xf32, #tpu.memory_space<vmem>>) attributes {dimension_semantics = [#tpu.dimension_semantics<parallel>], iteration_bounds = array<i64: 2>, scalar_prefetch = 0 : i64, scratch_operands = 0 : i64, tpu.core_type = #tpu.core_type<tc>, window_params = [{transform_indices = @transform_0, window_bounds = array<i64: 80, 128>}, {transform_indices = @transform_1, window_bounds = array<i64: 80, 128>}, {pipeline_mode = #tpu.pipeline_mode<synchronous>, transform_indices = @transform_2, window_bounds = array<i64: 128, 128>}, {pipeline_mode = #tpu.pipeline_mode<synchronous>, transform_indices = @transform_3, window_bounds = array<i64: 1, 128>}, {transform_indices = @transform_4, window_bounds = array<i64: 80, 128>}]} {
    %c0 = arith.constant 0 : index
    %c0_0 = arith.constant 0 : index
    %0 = vector.load %arg1[%c0, %c0_0] : memref<80x128xf32, #tpu.memory_space<vmem>>, vector<80x128xf32>
    %1 = arith.truncf %0 : vector<80x128xf32> to vector<80x128xbf16>
    %c0_1 = arith.constant 0 : index
    %c0_2 = arith.constant 0 : index
    %2 = vector.load %arg3[%c0_1, %c0_2] : memref<128x128xbf16, #tpu.memory_space<vmem>>, vector<128x128xbf16>
    %cst = arith.constant dense<0.000000e+00> : vector<80x128xf32>
    %3 = tpu.matmul %1, %2, %cst {dimension_numbers = #tpu.dot_dimension_numbers<[1], [0], [0], [1], [0, 0, 1, 1], [], []>} : vector<80x128xbf16>, vector<128x128xbf16>, vector<80x128xf32> -> vector<80x128xf32>
    %c0_3 = arith.constant 0 : index
    %c0_4 = arith.constant 0 : index
    %4 = vector.load %arg4[%c0_3, %c0_4] : memref<1x128xf32, #tpu.memory_space<vmem>>, vector<1x128xf32>
    %5 = vector.broadcast %4 : vector<1x128xf32> to vector<80x128xf32>
    %6 = arith.addf %3, %5 : vector<80x128xf32>
    %c0_5 = arith.constant 0 : index
    %c0_6 = arith.constant 0 : index
    %7 = vector.load %arg2[%c0_5, %c0_6] : memref<80x128xf32, #tpu.memory_space<vmem>>, vector<80x128xf32>
    %8 = arith.addf %6, %7 : vector<80x128xf32>
    %cst_7 = arith.constant 5.000000e-01 : f32
    %9 = vector.broadcast %cst_7 : f32 to vector<80x128xf32>
    %10 = arith.mulf %9, %8 : vector<80x128xf32>
    %cst_8 = arith.constant 0.707106769 : f32
    %11 = vector.broadcast %cst_8 : f32 to vector<80x128xf32>
    %12 = arith.mulf %8, %11 : vector<80x128xf32>
    %cst_9 = arith.constant -4.000000e+00 : f32
    %cst_10 = arith.constant 4.000000e+00 : f32
    %13 = vector.broadcast %cst_9 : f32 to vector<80x128xf32>
    %14 = arith.maximumf %13, %12 : vector<80x128xf32>
    %15 = vector.broadcast %cst_10 : f32 to vector<80x128xf32>
    %16 = arith.minimumf %15, %14 : vector<80x128xf32>
    %17 = arith.mulf %16, %16 : vector<80x128xf32>
    %cst_11 = arith.constant -2.72614237E-10 : f32
    %18 = vector.broadcast %cst_11 : f32 to vector<80x128xf32>
    %19 = arith.mulf %18, %17 : vector<80x128xf32>
    %cst_12 = arith.constant 2.77068146E-8 : f32
    %20 = vector.broadcast %cst_12 : f32 to vector<80x128xf32>
    %21 = arith.addf %19, %20 : vector<80x128xf32>
    %22 = arith.mulf %21, %17 : vector<80x128xf32>
    %cst_13 = arith.constant -2.10102394E-6 : f32
    %23 = vector.broadcast %cst_13 : f32 to vector<80x128xf32>
    %24 = arith.addf %22, %23 : vector<80x128xf32>
    %25 = arith.mulf %24, %17 : vector<80x128xf32>
    %cst_14 = arith.constant -5.69250624E-5 : f32
    %26 = vector.broadcast %cst_14 : f32 to vector<80x128xf32>
    %27 = arith.addf %25, %26 : vector<80x128xf32>
    %28 = arith.mulf %27, %17 : vector<80x128xf32>
    %cst_15 = arith.constant -7.34990637E-4 : f32
    %29 = vector.broadcast %cst_15 : f32 to vector<80x128xf32>
    %30 = arith.addf %28, %29 : vector<80x128xf32>
    %31 = arith.mulf %30, %17 : vector<80x128xf32>
    %cst_16 = arith.constant -2.954600e-03 : f32
    %32 = vector.broadcast %cst_16 : f32 to vector<80x128xf32>
    %33 = arith.addf %31, %32 : vector<80x128xf32>
    %34 = arith.mulf %33, %17 : vector<80x128xf32>
    %cst_17 = arith.constant -0.0160960332 : f32
    %35 = vector.broadcast %cst_17 : f32 to vector<80x128xf32>
    %36 = arith.addf %34, %35 : vector<80x128xf32>
    %37 = arith.mulf %36, %16 : vector<80x128xf32>
    %cst_18 = arith.constant -1.45660715E-5 : f32
    %38 = vector.broadcast %cst_18 : f32 to vector<80x128xf32>
    %39 = arith.mulf %38, %17 : vector<80x128xf32>
    %cst_19 = arith.constant -2.13374049E-4 : f32
    %40 = vector.broadcast %cst_19 : f32 to vector<80x128xf32>
    %41 = arith.addf %39, %40 : vector<80x128xf32>
    %42 = arith.mulf %41, %17 : vector<80x128xf32>
    %cst_20 = arith.constant -0.00168282702 : f32
    %43 = vector.broadcast %cst_20 : f32 to vector<80x128xf32>
    %44 = arith.addf %42, %43 : vector<80x128xf32>
    %45 = arith.mulf %44, %17 : vector<80x128xf32>
    %cst_21 = arith.constant -0.00737332925 : f32
    %46 = vector.broadcast %cst_21 : f32 to vector<80x128xf32>
    %47 = arith.addf %45, %46 : vector<80x128xf32>
    %48 = arith.mulf %47, %17 : vector<80x128xf32>
    %cst_22 = arith.constant -0.0142647391 : f32
    %49 = vector.broadcast %cst_22 : f32 to vector<80x128xf32>
    %50 = arith.addf %48, %49 : vector<80x128xf32>
    %51 = arith.divf %37, %50 : vector<80x128xf32>
    %cst_23 = arith.constant 1.000000e+00 : f32
    %52 = vector.broadcast %cst_23 : f32 to vector<80x128xf32>
    %53 = arith.addf %52, %51 : vector<80x128xf32>
    %54 = arith.mulf %10, %53 : vector<80x128xf32>
    %c0_24 = arith.constant 0 : index
    %c0_25 = arith.constant 0 : index
    %55 = vector.load %arg5[%c0_24, %c0_25] : memref<80x128xf32, #tpu.memory_space<vmem>>, vector<80x128xf32>
    tpu.vector_store %arg5[%c0_24, %c0_25], %54 {strides = array<i32>} : memref<80x128xf32, #tpu.memory_space<vmem>>, vector<80x128xf32>,
    return
  }
  func.func @transform_0(%arg0: i32) -> (i32, i32) {
    %c0_i32 = arith.constant 0 : i32
    %c0_i32_0 = arith.constant 0 : i32
    return %arg0, %c0_i32 : i32, i32
  }
  func.func @transform_1(%arg0: i32) -> (i32, i32) {
    %c0_i32 = arith.constant 0 : i32
    %c0_i32_0 = arith.constant 0 : i32
    return %arg0, %c0_i32 : i32, i32
  }
  func.func @transform_2(%arg0: i32) -> (i32, i32) {
    %c0_i32 = arith.constant 0 : i32
    %c0_i32_0 = arith.constant 0 : i32
    %c0_i32_1 = arith.constant 0 : i32
    return %c0_i32, %c0_i32_0 : i32, i32
  }
  func.func @transform_3(%arg0: i32) -> (i32, i32) {
    %c0_i32 = arith.constant 0 : i32
    %c0_i32_0 = arith.constant 0 : i32
    %c0_i32_1 = arith.constant 0 : i32
    return %c0_i32, %c0_i32_0 : i32, i32
  }
  func.func @transform_4(%arg0: i32) -> (i32, i32) {
    %c0_i32 = arith.constant 0 : i32
    %c0_i32_0 = arith.constant 0 : i32
    return %arg0, %c0_i32 : i32, i32
  }
}

module attributes {stable_mosaic.version = 11 : i64} {
  func.func @_mix_kernel(%arg0: i32, %arg1: memref<80x128xf32, #tpu.memory_space<vmem>>, %arg2: memref<80x128xf32, #tpu.memory_space<vmem>>, %arg3: memref<128x128xbf16, #tpu.memory_space<vmem>>, %arg4: memref<1x128xf32, #tpu.memory_space<vmem>>, %arg5: memref<80x128xf32, #tpu.memory_space<vmem>>) attributes {dimension_semantics = [#tpu.dimension_semantics<parallel>], iteration_bounds = array<i64: 2>, scalar_prefetch = 0 : i64, scratch_operands = 0 : i64, tpu.core_type = #tpu.core_type<tc>, window_params = [{transform_indices = @transform_0, window_bounds = array<i64: 80, 128>}, {transform_indices = @transform_1, window_bounds = array<i64: 80, 128>}, {pipeline_mode = #tpu.pipeline_mode<synchronous>, transform_indices = @transform_2, window_bounds = array<i64: 128, 128>}, {pipeline_mode = #tpu.pipeline_mode<synchronous>, transform_indices = @transform_3, window_bounds = array<i64: 1, 128>}, {transform_indices = @transform_4, window_bounds = array<i64: 80, 128>}]} {
    %c0 = arith.constant 0 : index
    %c0_0 = arith.constant 0 : index
    %0 = vector.load %arg1[%c0, %c0_0] : memref<80x128xf32, #tpu.memory_space<vmem>>, vector<80x128xf32>
    %1 = arith.truncf %0 : vector<80x128xf32> to vector<80x128xbf16>
    %c0_1 = arith.constant 0 : index
    %c0_2 = arith.constant 0 : index
    %2 = vector.load %arg3[%c0_1, %c0_2] : memref<128x128xbf16, #tpu.memory_space<vmem>>, vector<128x128xbf16>
    %cst = arith.constant dense<0.000000e+00> : vector<80x128xf32>
    %3 = tpu.matmul %1, %2, %cst {dimension_numbers = #tpu.dot_dimension_numbers<[1], [0], [0], [1], [0, 0, 1, 1], [], []>} : vector<80x128xbf16>, vector<128x128xbf16>, vector<80x128xf32> -> vector<80x128xf32>
    %c0_3 = arith.constant 0 : index
    %c0_4 = arith.constant 0 : index
    %4 = vector.load %arg4[%c0_3, %c0_4] : memref<1x128xf32, #tpu.memory_space<vmem>>, vector<1x128xf32>
    %5 = vector.broadcast %4 : vector<1x128xf32> to vector<80x128xf32>
    %6 = arith.addf %3, %5 : vector<80x128xf32>
    %c0_5 = arith.constant 0 : index
    %c0_6 = arith.constant 0 : index
    %7 = vector.load %arg2[%c0_5, %c0_6] : memref<80x128xf32, #tpu.memory_space<vmem>>, vector<80x128xf32>
    %8 = arith.addf %6, %7 : vector<80x128xf32>
    %c0_7 = arith.constant 0 : index
    %c0_8 = arith.constant 0 : index
    %9 = vector.load %arg5[%c0_7, %c0_8] : memref<80x128xf32, #tpu.memory_space<vmem>>, vector<80x128xf32>
    tpu.vector_store %arg5[%c0_7, %c0_8], %8 {strides = array<i32>} : memref<80x128xf32, #tpu.memory_space<vmem>>, vector<80x128xf32>,
    return
  }
  func.func @transform_0(%arg0: i32) -> (i32, i32) {
    %c0_i32 = arith.constant 0 : i32
    %c0_i32_0 = arith.constant 0 : i32
    return %arg0, %c0_i32 : i32, i32
  }
  func.func @transform_1(%arg0: i32) -> (i32, i32) {
    %c0_i32 = arith.constant 0 : i32
    %c0_i32_0 = arith.constant 0 : i32
    return %arg0, %c0_i32 : i32, i32
  }
  func.func @transform_2(%arg0: i32) -> (i32, i32) {
    %c0_i32 = arith.constant 0 : i32
    %c0_i32_0 = arith.constant 0 : i32
    %c0_i32_1 = arith.constant 0 : i32
    return %c0_i32, %c0_i32_0 : i32, i32
  }
  func.func @transform_3(%arg0: i32) -> (i32, i32) {
    %c0_i32 = arith.constant 0 : i32
    %c0_i32_0 = arith.constant 0 : i32
    %c0_i32_1 = arith.constant 0 : i32
    return %c0_i32, %c0_i32_0 : i32, i32
  }
  func.func @transform_4(%arg0: i32) -> (i32, i32) {
    %c0_i32 = arith.constant 0 : i32
    %c0_i32_0 = arith.constant 0 : i32
    return %arg0, %c0_i32 : i32, i32
  }
}

module attributes {stable_mosaic.version = 11 : i64} {
  func.func @_head_kernel(%arg0: i32, %arg1: memref<64x128xf32, #tpu.memory_space<vmem>>, %arg2: memref<128x512xbf16, #tpu.memory_space<vmem>>, %arg3: memref<1x512xf32, #tpu.memory_space<vmem>>, %arg4: memref<512x4xbf16, #tpu.memory_space<vmem>>, %arg5: memref<1x4xf32, #tpu.memory_space<vmem>>, %arg6: memref<64x4xf32, #tpu.memory_space<vmem>>) attributes {dimension_semantics = [#tpu.dimension_semantics<parallel>], iteration_bounds = array<i64: 2>, scalar_prefetch = 0 : i64, scratch_operands = 0 : i64, tpu.core_type = #tpu.core_type<tc>, window_params = [{transform_indices = @transform_0, window_bounds = array<i64: 64, 128>}, {pipeline_mode = #tpu.pipeline_mode<synchronous>, transform_indices = @transform_1, window_bounds = array<i64: 128, 512>}, {pipeline_mode = #tpu.pipeline_mode<synchronous>, transform_indices = @transform_2, window_bounds = array<i64: 1, 512>}, {pipeline_mode = #tpu.pipeline_mode<synchronous>, transform_indices = @transform_3, window_bounds = array<i64: 512, 4>}, {pipeline_mode = #tpu.pipeline_mode<synchronous>, transform_indices = @transform_4, window_bounds = array<i64: 1, 4>}, {transform_indices = @transform_5, window_bounds = array<i64: 64, 4>}]} {
    %c0 = arith.constant 0 : index
    %c0_0 = arith.constant 0 : index
    %0 = vector.load %arg1[%c0, %c0_0] : memref<64x128xf32, #tpu.memory_space<vmem>>, vector<64x128xf32>
    %1 = arith.truncf %0 : vector<64x128xf32> to vector<64x128xbf16>
    %c0_1 = arith.constant 0 : index
    %c0_2 = arith.constant 0 : index
    %2 = vector.load %arg2[%c0_1, %c0_2] : memref<128x512xbf16, #tpu.memory_space<vmem>>, vector<128x512xbf16>
    %cst = arith.constant dense<0.000000e+00> : vector<64x512xf32>
    %3 = tpu.matmul %1, %2, %cst {dimension_numbers = #tpu.dot_dimension_numbers<[1], [0], [0], [1], [0, 0, 1, 1], [], []>} : vector<64x128xbf16>, vector<128x512xbf16>, vector<64x512xf32> -> vector<64x512xf32>
    %c0_3 = arith.constant 0 : index
    %c0_4 = arith.constant 0 : index
    %4 = vector.load %arg3[%c0_3, %c0_4] : memref<1x512xf32, #tpu.memory_space<vmem>>, vector<1x512xf32>
    %5 = vector.broadcast %4 : vector<1x512xf32> to vector<64x512xf32>
    %6 = arith.addf %3, %5 : vector<64x512xf32>
    %cst_5 = arith.constant 5.000000e-01 : f32
    %7 = vector.broadcast %cst_5 : f32 to vector<64x512xf32>
    %8 = arith.mulf %7, %6 : vector<64x512xf32>
    %cst_6 = arith.constant 0.707106769 : f32
    %9 = vector.broadcast %cst_6 : f32 to vector<64x512xf32>
    %10 = arith.mulf %6, %9 : vector<64x512xf32>
    %cst_7 = arith.constant -4.000000e+00 : f32
    %cst_8 = arith.constant 4.000000e+00 : f32
    %11 = vector.broadcast %cst_7 : f32 to vector<64x512xf32>
    %12 = arith.maximumf %11, %10 : vector<64x512xf32>
    %13 = vector.broadcast %cst_8 : f32 to vector<64x512xf32>
    %14 = arith.minimumf %13, %12 : vector<64x512xf32>
    %15 = arith.mulf %14, %14 : vector<64x512xf32>
    %cst_9 = arith.constant -2.72614237E-10 : f32
    %16 = vector.broadcast %cst_9 : f32 to vector<64x512xf32>
    %17 = arith.mulf %16, %15 : vector<64x512xf32>
    %cst_10 = arith.constant 2.77068146E-8 : f32
    %18 = vector.broadcast %cst_10 : f32 to vector<64x512xf32>
    %19 = arith.addf %17, %18 : vector<64x512xf32>
    %20 = arith.mulf %19, %15 : vector<64x512xf32>
    %cst_11 = arith.constant -2.10102394E-6 : f32
    %21 = vector.broadcast %cst_11 : f32 to vector<64x512xf32>
    %22 = arith.addf %20, %21 : vector<64x512xf32>
    %23 = arith.mulf %22, %15 : vector<64x512xf32>
    %cst_12 = arith.constant -5.69250624E-5 : f32
    %24 = vector.broadcast %cst_12 : f32 to vector<64x512xf32>
    %25 = arith.addf %23, %24 : vector<64x512xf32>
    %26 = arith.mulf %25, %15 : vector<64x512xf32>
    %cst_13 = arith.constant -7.34990637E-4 : f32
    %27 = vector.broadcast %cst_13 : f32 to vector<64x512xf32>
    %28 = arith.addf %26, %27 : vector<64x512xf32>
    %29 = arith.mulf %28, %15 : vector<64x512xf32>
    %cst_14 = arith.constant -2.954600e-03 : f32
    %30 = vector.broadcast %cst_14 : f32 to vector<64x512xf32>
    %31 = arith.addf %29, %30 : vector<64x512xf32>
    %32 = arith.mulf %31, %15 : vector<64x512xf32>
    %cst_15 = arith.constant -0.0160960332 : f32
    %33 = vector.broadcast %cst_15 : f32 to vector<64x512xf32>
    %34 = arith.addf %32, %33 : vector<64x512xf32>
    %35 = arith.mulf %34, %14 : vector<64x512xf32>
    %cst_16 = arith.constant -1.45660715E-5 : f32
    %36 = vector.broadcast %cst_16 : f32 to vector<64x512xf32>
    %37 = arith.mulf %36, %15 : vector<64x512xf32>
    %cst_17 = arith.constant -2.13374049E-4 : f32
    %38 = vector.broadcast %cst_17 : f32 to vector<64x512xf32>
    %39 = arith.addf %37, %38 : vector<64x512xf32>
    %40 = arith.mulf %39, %15 : vector<64x512xf32>
    %cst_18 = arith.constant -0.00168282702 : f32
    %41 = vector.broadcast %cst_18 : f32 to vector<64x512xf32>
    %42 = arith.addf %40, %41 : vector<64x512xf32>
    %43 = arith.mulf %42, %15 : vector<64x512xf32>
    %cst_19 = arith.constant -0.00737332925 : f32
    %44 = vector.broadcast %cst_19 : f32 to vector<64x512xf32>
    %45 = arith.addf %43, %44 : vector<64x512xf32>
    %46 = arith.mulf %45, %15 : vector<64x512xf32>
    %cst_20 = arith.constant -0.0142647391 : f32
    %47 = vector.broadcast %cst_20 : f32 to vector<64x512xf32>
    %48 = arith.addf %46, %47 : vector<64x512xf32>
    %49 = arith.divf %35, %48 : vector<64x512xf32>
    %cst_21 = arith.constant 1.000000e+00 : f32
    %50 = vector.broadcast %cst_21 : f32 to vector<64x512xf32>
    %51 = arith.addf %50, %49 : vector<64x512xf32>
    %52 = arith.mulf %8, %51 : vector<64x512xf32>
    %53 = arith.truncf %52 : vector<64x512xf32> to vector<64x512xbf16>
    %c0_22 = arith.constant 0 : index
    %c0_23 = arith.constant 0 : index
    %54 = vector.load %arg4[%c0_22, %c0_23] : memref<512x4xbf16, #tpu.memory_space<vmem>>, vector<512x4xbf16>
    %cst_24 = arith.constant dense<0.000000e+00> : vector<64x4xf32>
    %55 = tpu.matmul %53, %54, %cst_24 {dimension_numbers = #tpu.dot_dimension_numbers<[1], [0], [0], [1], [0, 0, 1, 1], [], []>} : vector<64x512xbf16>, vector<512x4xbf16>, vector<64x4xf32> -> vector<64x4xf32>
    %c0_25 = arith.constant 0 : index
    %c0_26 = arith.constant 0 : index
    %56 = vector.load %arg5[%c0_25, %c0_26] : memref<1x4xf32, #tpu.memory_space<vmem>>, vector<1x4xf32>
    %57 = vector.broadcast %56 : vector<1x4xf32> to vector<64x4xf32>
    %58 = arith.addf %55, %57 : vector<64x4xf32>
    %c0_27 = arith.constant 0 : index
    %c0_28 = arith.constant 0 : index
    %59 = vector.load %arg6[%c0_27, %c0_28] : memref<64x4xf32, #tpu.memory_space<vmem>>, vector<64x4xf32>
    tpu.vector_store %arg6[%c0_27, %c0_28], %58 {strides = array<i32>} : memref<64x4xf32, #tpu.memory_space<vmem>>, vector<64x4xf32>,
    return
  }
  func.func @transform_0(%arg0: i32) -> (i32, i32) {
    %c0_i32 = arith.constant 0 : i32
    %c0_i32_0 = arith.constant 0 : i32
    return %arg0, %c0_i32 : i32, i32
  }
  func.func @transform_1(%arg0: i32) -> (i32, i32) {
    %c0_i32 = arith.constant 0 : i32
    %c0_i32_0 = arith.constant 0 : i32
    %c0_i32_1 = arith.constant 0 : i32
    return %c0_i32, %c0_i32_0 : i32, i32
  }
  func.func @transform_2(%arg0: i32) -> (i32, i32) {
    %c0_i32 = arith.constant 0 : i32
    %c0_i32_0 = arith.constant 0 : i32
    %c0_i32_1 = arith.constant 0 : i32
    return %c0_i32, %c0_i32_0 : i32, i32
  }
  func.func @transform_3(%arg0: i32) -> (i32, i32) {
    %c0_i32 = arith.constant 0 : i32
    %c0_i32_0 = arith.constant 0 : i32
    %c0_i32_1 = arith.constant 0 : i32
    return %c0_i32, %c0_i32_0 : i32, i32
  }
  func.func @transform_4(%arg0: i32) -> (i32, i32) {
    %c0_i32 = arith.constant 0 : i32
    %c0_i32_0 = arith.constant 0 : i32
    %c0_i32_1 = arith.constant 0 : i32
    return %c0_i32, %c0_i32_0 : i32, i32
  }
  func.func @transform_5(%arg0: i32) -> (i32, i32) {
    %c0_i32 = arith.constant 0 : i32
    %c0_i32_0 = arith.constant 0 : i32
    return %arg0, %c0_i32 : i32, i32
  }
}

</mosaic_0001>

<bundles_post_ra>
// kernel: fno2d_forward.10
= control target key start
LH: loop header
LB: loop body
LE: loop exit
PB: predicated region body
PF: predicated region fallthrough
CT: control target
= control target key end

     0   :  { %s445_s12 = smov 0   ;;  %s481_s0 = inlined_call_operand.vmem [shape: f32[128,48], index: 0, kind: input, shape index: {}]   ;;  %s482_s1 = inlined_call_operand.vmem [shape: bf16[48,128], index: 1, kind: input, shape index: {}]   ;;  %s483_s2 = inlined_call_operand.vmem [shape: f32[1,128], index: 2, kind: input, shape index: {}]   ;;  %s484_s3 = inlined_call_operand.vmem [shape: f32[128,128], index: 3, kind: output, shape index: {}]  }
   0x1 LB: > { %s360_s13 = sadd.s32 4294967295, %s423_s12   ;;  %p364_p0 = scmp.ge.s32.totalorder %s423_s12, 1  ;;  %s423_s12 = sphi %s445_s12, %s13_s12  }
   0x2   : > { %p138_p1 = scmp.lt.s32.totalorder %s423_s12, 3 }
   0x4   : > { %p139_p2 = pnand %p364_p0, %p138_p1 }
   0x5   : > { %v414_v0 = vld [vmem:[%s482_s1] sm:$0xff] (!%p139_p2)   ;;  %s365_s16 = sshll.u32 (!%p139_p2), %s360_s13, 3  ;;  %v415_v1 = vld [vmem:[%s482_s1 + $0x8] sm:$0xff] (!%p139_p2)   ;;  %v416_v2 = vld [vmem:[%s482_s1 + $0x10] sm:$0xff] (!%p139_p2)   ;;  %vm218_vm0 = vcmask (!%p139_p2), 392192  }
   0x6   : > { %142 = sbr.rel (%p139_p2) target bundleno = 239 (0xef), region = 32  ;;  %p163_p3 = scmp.lt.s32.totalorder (!%p139_p2), %s365_s16, 15  ;;  %386 = vmatprep.subr.bf16.mxu0 (!%p139_p2), %v414_v0  ;;  %400 = vmatprep.subr.bf16.mxu1 (!%p139_p2), %v414_v0  ;;  %v369_v15 = vld [vmem:[%s483_s2] ss:$0 sm:$0xff] (!%p139_p2) }
   0x7   : > { %387 = vmatpush3.bf16.msra.mxu0 (!%p139_p2), %v414_v0  ;;  %403 = vmatpush3.bf16.msra.mxu1 (!%p139_p2), %v414_v0 }
   0x8   : > { %388 = vmatprep.subr.bf16.mxu0 (!%p139_p2), %v415_v1  ;;  %401 = vmatprep.subr.bf16.mxu1 (!%p139_p2), %v415_v1 }
   0xb   : > { %389 = vmatpush3.bf16.msra.mxu0 (!%p139_p2), %v415_v1  ;;  %404 = vmatpush3.bf16.msra.mxu1 (!%p139_p2), %v415_v1 }
   0xc   : > { %390 = vmatprep.subr.bf16.mxu0 (!%p139_p2), %v416_v2  ;;  %402 = vmatprep.subr.bf16.mxu1 (!%p139_p2), %v416_v2 }
   0xd   : > { %s486_s16 = smov (!%p163_p3, %s365_s16), 15 }
   0xe   : > { %s366_s21 = sshll.u32 %s486_s16, 3 }
   0xf   : > { %s166_s24 = scalar_lea.vmem %s481_s0, %s366_s21  ;;  %391 = vmatpush3.bf16.msra.mxu0 %v416_v2  ;;  %405 = vmatpush3.bf16.msra.mxu1 %v416_v2  ;;  %s172_s29 = scalar_lea.vmem %s484_s3, %s366_s21 }
  0x10   : > { %v175_v3 = vld [vmem:[%s166_s24] sm:$0xff]  ;;  %v176_v4 = vld [vmem:[%s166_s24 + $0x8] sm:$0xff]  ;;  %v177_v8 = vld [vmem:[%s166_s24 + $0x10] sm:$0xff] }
  0x11   : > { %v179_v5 = vld [vmem:[%s166_s24 + $0x20] sm:$0xff]  ;;  %v183_v6 = vpack.c.bf16 %v176_v4, %v175_v3  ;;  %v180_v7 = vld [vmem:[%s166_s24 + $0x28] sm:$0xff]  ;;  %v178_v9 = vld [vmem:[%s166_s24 + $0x18] sm:$0xff] }
  0x12   : > { %v185_v10 = vpack.c.bf16 %v180_v7, %v179_v5  ;;  %v181_v11 = vld [vmem:[%s166_s24 + $0x30] sm:$0xff]  ;;  %v182_v12 = vld [vmem:[%s166_s24 + $0x38] sm:$0xff]  ;;  %v184_v13 = vpack.c.bf16 %v178_v9, %v177_v8 }
  0x13   : > { %392 = vmatprep.mubr.msk.bf16.mxu0 %vm218_vm0, %v183_v6  ;;  %v186_v14 = vpack.c.bf16 %v182_v12, %v181_v11 }
  0x14   : > { %396 = vmatprep.mubr.msk.bf16.mxu1 %vm218_vm0, %v185_v10  ;;  %393 = vmatmul.mubr.msk.bf16.vlgmr.msra.gmra.mrb[0].mxu0 %vm218_vm0, %v184_v13 }
  0x15   : > { %397 = vmatmul.mubr.msk.bf16.vlgmr.msra.gmra.mrb[0].mxu1 %vm218_vm0, %v186_v14 }
  0xe7   : > { %v394_v16 = vpop.f32.mrb[0].mxu0 }
  0xe8   : > { %v398_v17 = vpop.f32.mrb[0].mxu1  ;;  %v274_v18 = vadd.f32 %v394_v16, %v369_v15  ;;  %v265_v20 = vpop.f32.mrb[1].mxu0 }
  0xe9   : > { %v290_v19 = vadd.f32 %v398_v17, %v369_v15  ;;  %v281_v21 = vpop.f32.mrb[1].mxu1  ;;  %v266_v22 = vadd.f32 %v369_v15, %v265_v20  ;;  %v395_v24 = vpop.f32.mrb[2].mxu0 }
  0xea   : > { %v282_v23 = vadd.f32 %v369_v15, %v281_v21  ;;  %v399_v25 = vpop.f32.mrb[2].mxu1  ;;  %298 = vst [vmem:[%s172_s29 + $0x10] sm:$0xff] %v274_v18  ;;  %v277_v26 = vadd.f32 %v395_v24, %v369_v15  ;;  %v268_v28 = vpop.f32.mrb[3].mxu0 }
  0xeb   : > { %302 = vst [vmem:[%s172_s29 + $0x30] sm:$0xff] %v290_v19  ;;  %v293_v27 = vadd.f32 %v399_v25, %v369_v15  ;;  %v284_v29 = vpop.f32.mrb[3].mxu1  ;;  %296 = vst [vmem:[%s172_s29] sm:$0xff] %v266_v22  ;;  %v269_v30 = vadd.f32 %v369_v15, %v268_v28 }
  0xec   : > { %300 = vst [vmem:[%s172_s29 + $0x20] sm:$0xff] %v282_v23  ;;  %v285_v31 = vadd.f32 %v369_v15, %v284_v29  ;;  %299 = vst [vmem:[%s172_s29 + $0x18] sm:$0xff] %v277_v26 }
  0xed   : > { %303 = vst [vmem:[%s172_s29 + $0x38] sm:$0xff] %v293_v27  ;;  %297 = vst [vmem:[%s172_s29 + $0x8] sm:$0xff] %v269_v30 }
  0xee   : > { %301 = vst [vmem:[%s172_s29 + $0x28] sm:$0xff] %v285_v31 }
  0xef PF: > { %s13_s12 = sadd.s32 1, %s423_s12  }
  0xf0   : > { %p10_p4 = scmp.ge.s32.totalorder %s13_s12, 4  }
  0xf2   :  { %12 = sbr.rel (!%p10_p4) target bundleno = 1 (0x1), region = 62 }

// kernel: fno2d_forward.11
= control target key start
LH: loop header
LB: loop body
LE: loop exit
PB: predicated region body
PF: predicated region fallthrough
CT: control target
= control target key end

     0   :  { %s1676_s9 = smov 0   ;;  %s1870_s0 = inlined_call_operand.vmem [shape: f32[32,4,32], index: 0, kind: input, shape index: {}]   ;;  %s1871_s1 = inlined_call_operand.vmem [shape: bf16[32,32,64], index: 1, kind: input, shape index: {}]   ;;  %s1872_s2 = inlined_call_operand.vmem [shape: f32[32,4,64], index: 2, kind: output, shape index: {}]  }
   0x1 LB: > { %s1280_s10 = sadd.s32 4294967295, %s1657_s9   ;;  %p1284_p0 = scmp.ge.s32.totalorder %s1657_s9, 1  ;;  %s1657_s9 = sphi %s1676_s9, %s12_s9  }
   0x2   : > { %p125_p1 = scmp.lt.s32.totalorder %s1657_s9, 3 }
   0x4   : > { %p126_p2 = pnand %p1284_p0, %p125_p1 }
   0x5   : > { %s1285_s11 = sshll.u32 (!%p126_p2), %s1280_s10, 4  ;;  %v1659_v0 = vmov (!%p126_p2), 0.0   ;;  %vm1660_vm0 = vmmov (!%p126_p2), 0   ;;  %vm191_vm1 = vcmask (!%p126_p2), 261120   ;;  %vm235_vm2 = vcmask (!%p126_p2), 519168  }
   0x6   : > { %129 = sbr.rel (%p126_p2) target bundleno = 295 (0x127), region = 28  ;;  %1481 = vmatprep.subr.bf16.mxu0 (!%p126_p2), %v1659_v0  ;;  %1489 = vmatprep.subr.bf16.mxu1 (!%p126_p2), %v1659_v0  ;;  %p154_p3 = scmp.lt.s32.totalorder (!%p126_p2), %s1285_s11, 31 }
   0x7   : > { %1485 = vmatprep.mubr.msk.bf16.mxu0 (!%p126_p2), %vm1660_vm0, %v1659_v0  ;;  %1493 = vmatprep.mubr.msk.bf16.mxu1 (!%p126_p2), %vm1660_vm0, %v1659_v0 }
   0xd   : > { %s1874_s11 = smov (!%p154_p3, %s1285_s11), 31 }
   0xe   : > { %s1432_s12 = sshll.u32 %s1874_s11, 4  ;;  %s1286_s13 = sshll.u32 %s1874_s11, 2 }
   0xf   : > { %s1697_s16 = scalar_lea.vmem %s1871_s1, %s1432_s12  ;;  %s1706_s19 = scalar_lea.vmem %s1870_s0, %s1286_s13 }
  0x10   : > { %v1619_v1 = vld [vmem:[%s1697_s16] sm:$0xff]   ;;  %v1620_v2 = vld [vmem:[%s1697_s16 + $0x10] sm:$0xff]   ;;  %v1621_v3 = vld [vmem:[%s1697_s16 + $0x8] sm:$0xff]   ;;  %s1833_s22 = scalar_lea.vmem %s1872_s2, %s1286_s13 }
  0x11   : > { %1482 = vmatpush3.bf16.msra.mxu0 %v1619_v1  ;;  %1490 = vmatpush3.bf16.msra.mxu1 %v1620_v2  ;;  %v1622_v4 = vld [vmem:[%s1697_s16 + $0x18] sm:$0xff]   ;;  %v173_v5 = vld [vmem:[%s1706_s19] sm:$0xf]  ;;  %v1295_v6 = vld [vmem:[%s1706_s19 + $0x4] sm:$0xf] }
  0x12   : > { %1483 = vmatprep.subr.bf16.mxu0 %v1659_v0  ;;  %1491 = vmatprep.subr.bf16.mxu1 %v1659_v0  ;;  %v174_v7 = vpack.c.bf16 %v173_v5, %v173_v5  ;;  %v239_v8 = vpack.c.bf16 %v1295_v6, %v1295_v6  ;;  %v1623_v9 = vld [vmem:[%s1697_s16 + $0x20] sm:$0xff]   ;;  %v1624_v10 = vld [vmem:[%s1697_s16 + $0x30] sm:$0xff]   ;;  %v1625_v11 = vld [vmem:[%s1697_s16 + $0x28] sm:$0xff]  }
  0x13   : > { %v1626_v12 = vld [vmem:[%s1697_s16 + $0x38] sm:$0xff]   ;;  %v1304_v13 = vld [vmem:[%s1706_s19 + $0x8] sm:$0xf]  ;;  %v1313_v14 = vld [vmem:[%s1706_s19 + $0xc] sm:$0xf] }
  0x14   : > { %v304_v15 = vpack.c.bf16 %v1304_v13, %v1304_v13  ;;  %v369_v16 = vpack.c.bf16 %v1313_v14, %v1313_v14  ;;  %v1627_v17 = vld [vmem:[%s1697_s16 + $0x40] sm:$0xff]   ;;  %v1628_v18 = vld [vmem:[%s1697_s16 + $0x50] sm:$0xff]   ;;  %v1629_v19 = vld [vmem:[%s1697_s16 + $0x48] sm:$0xff]  }
  0x15   : > { %1484 = vmatpush3.bf16.msra.mxu0 %v1621_v3  ;;  %1492 = vmatpush3.bf16.msra.mxu1 %v1622_v4  ;;  %v1630_v20 = vld [vmem:[%s1697_s16 + $0x58] sm:$0xff]   ;;  %v1322_v21 = vld [vmem:[%s1706_s19 + $0x10] sm:$0xf]  ;;  %v1331_v22 = vld [vmem:[%s1706_s19 + $0x14] sm:$0xf] }
  0x16   : > { %1497 = vmatprep.subr.bf16.mxu0 %v1659_v0  ;;  %1505 = vmatprep.subr.bf16.mxu1 %v1659_v0  ;;  %v434_v23 = vpack.c.bf16 %v1322_v21, %v1322_v21  ;;  %v499_v24 = vpack.c.bf16 %v1331_v22, %v1331_v22  ;;  %v1631_v25 = vld [vmem:[%s1697_s16 + $0x60] sm:$0xff]   ;;  %v1632_v26 = vld [vmem:[%s1697_s16 + $0x70] sm:$0xff]   ;;  %v1633_v27 = vld [vmem:[%s1697_s16 + $0x68] sm:$0xff]  }
  0x17   : > { %v1340_v28 = vld [vmem:[%s1706_s19 + $0x18] sm:$0xf]  ;;  %v1349_v30 = vld [vmem:[%s1706_s19 + $0x1c] sm:$0xf]  ;;  %v1635_v33 = vld [vmem:[%s1697_s16 + $0x80] sm:$0xff]  }
  0x18   : > { %1486 = vmatmul.mubr.msk.bf16.vlgmr.msra.gmra.mrb[0].mxu0 %vm191_vm1, %v174_v7  ;;  %1494 = vmatmul.mubr.msk.bf16.vlgmr.msra.gmra.mrb[0].mxu1 %vm191_vm1, %v239_v8  ;;  %v1634_v29 = vld [vmem:[%s1697_s16 + $0x78] sm:$0xff]   ;;  %v564_v31 = vpack.c.bf16 %v1340_v28, %v1340_v28  ;;  %v629_v32 = vpack.c.bf16 %v1349_v30, %v1349_v30  ;;  %v1636_v34 = vld [vmem:[%s1697_s16 + $0x90] sm:$0xff]   ;;  %v1637_v35 = vld [vmem:[%s1697_s16 + $0x88] sm:$0xff]  }
  0x19   : > { %1498 = vmatpush3.bf16.msra.mxu0 %v1623_v9  ;;  %1506 = vmatpush3.bf16.msra.mxu1 %v1624_v10  ;;  %v1638_v36 = vld [vmem:[%s1697_s16 + $0x98] sm:$0xff]   ;;  %v1358_v37 = vld [vmem:[%s1706_s19 + $0x20] sm:$0xf]  ;;  %v1367_v38 = vld [vmem:[%s1706_s19 + $0x24] sm:$0xf] }
  0x1a   : > { %1499 = vmatprep.subr.bf16.mxu0 %v1659_v0  ;;  %1507 = vmatprep.subr.bf16.mxu1 %v1659_v0  ;;  %v694_v39 = vpack.c.bf16 %v1358_v37, %v1358_v37  ;;  %v759_v40 = vpack.c.bf16 %v1367_v38, %v1367_v38  ;;  %v1639_v41 = vld [vmem:[%s1697_s16 + $0xa0] sm:$0xff]   ;;  %v1640_v42 = vld [vmem:[%s1697_s16 + $0xb0] sm:$0xff]   ;;  %v1641_v43 = vld [vmem:[%s1697_s16 + $0xa8] sm:$0xff]  }
  0x1b   : > { %1501 = vmatprep.mubr.msk.bf16.mxu0 %vm1660_vm0, %v1659_v0  ;;  %1509 = vmatprep.mubr.msk.bf16.mxu1 %vm1660_vm0, %v1659_v0  ;;  %v1376_v44 = vld [vmem:[%s1706_s19 + $0x28] sm:$0xf]  ;;  %v1642_v45 = vld [vmem:[%s1697_s16 + $0xb8] sm:$0xff]   ;;  %v1385_v46 = vld [vmem:[%s1706_s19 + $0x2c] sm:$0xf] }
  0x1c   : > { %v824_v47 = vpack.c.bf16 %v1376_v44, %v1376_v44  ;;  %v889_v48 = vpack.c.bf16 %v1385_v46, %v1385_v46  ;;  %v1643_v49 = vld [vmem:[%s1697_s16 + $0xc0] sm:$0xff]   ;;  %v1644_v50 = vld [vmem:[%s1697_s16 + $0xd0] sm:$0xff]   ;;  %v1645_v51 = vld [vmem:[%s1697_s16 + $0xc8] sm:$0xff]  }
  0x1d   : > { %1500 = vmatpush3.bf16.msra.mxu0 %v1625_v11  ;;  %1508 = vmatpush3.bf16.msra.mxu1 %v1626_v12  ;;  %v1394_v52 = vld [vmem:[%s1706_s19 + $0x30] sm:$0xf]  ;;  %v1646_v53 = vld [vmem:[%s1697_s16 + $0xd8] sm:$0xff]   ;;  %v1403_v54 = vld [vmem:[%s1706_s19 + $0x34] sm:$0xf] }
  0x1e   : > { %1513 = vmatprep.subr.bf16.mxu0 %v1659_v0  ;;  %1521 = vmatprep.subr.bf16.mxu1 %v1659_v0  ;;  %v954_v55 = vpack.c.bf16 %v1394_v52, %v1394_v52  ;;  %v1019_v56 = vpack.c.bf16 %v1403_v54, %v1403_v54  ;;  %v1647_v57 = vld [vmem:[%s1697_s16 + $0xe0] sm:$0xff]   ;;  %v1648_v58 = vld [vmem:[%s1697_s16 + $0xf0] sm:$0xff]   ;;  %v1649_v59 = vld [vmem:[%s1697_s16 + $0xe8] sm:$0xff]  }
  0x1f   : > { %v1412_v60 = vld [vmem:[%s1706_s19 + $0x38] sm:$0xf]  ;;  %v1421_v62 = vld [vmem:[%s1706_s19 + $0x3c] sm:$0xf] }
  0x20   : > { %1502 = vmatmul.mubr.msk.bf16.vlgmr.msra.gmra.mrb[4].mxu0 %vm191_vm1, %v304_v15  ;;  %1510 = vmatmul.mubr.msk.bf16.vlgmr.msra.gmra.mrb[4].mxu1 %vm191_vm1, %v369_v16  ;;  %v1650_v61 = vld [vmem:[%s1697_s16 + $0xf8] sm:$0xff]   ;;  %v1084_v63 = vpack.c.bf16 %v1412_v60, %v1412_v60  ;;  %v1149_v1 = vpack.c.bf16 %v1421_v62, %v1421_v62 }
  0x21   : > { %1514 = vmatpush3.bf16.msra.mxu0 %v1627_v17  ;;  %1522 = vmatpush3.bf16.msra.mxu1 %v1628_v18 }
  0x22   : > { %1515 = vmatprep.subr.bf16.mxu0 %v1659_v0  ;;  %1523 = vmatprep.subr.bf16.mxu1 %v1659_v0 }
  0x23   : > { %1517 = vmatprep.mubr.msk.bf16.mxu0 %vm1660_vm0, %v1659_v0  ;;  %1525 = vmatprep.mubr.msk.bf16.mxu1 %vm1660_vm0, %v1659_v0 }
  0x25   : > { %1516 = vmatpush3.bf16.msra.mxu0 %v1629_v19  ;;  %1524 = vmatpush3.bf16.msra.mxu1 %v1630_v20 }
  0x26   : > { %1529 = vmatprep.subr.bf16.mxu0 %v1659_v0  ;;  %1537 = vmatprep.subr.bf16.mxu1 %v1659_v0 }
  0x28   : > { %1518 = vmatmul.mubr.msk.bf16.vlgmr.msra.gmra.mrb[8].mxu0 %vm191_vm1, %v434_v23  ;;  %1526 = vmatmul.mubr.msk.bf16.vlgmr.msra.gmra.mrb[8].mxu1 %vm191_vm1, %v499_v24 }
  0x29   : > { %1530 = vmatpush3.bf16.msra.mxu0 %v1631_v25  ;;  %1538 = vmatpush3.bf16.msra.mxu1 %v1632_v26 }
  0x2a   : > { %1531 = vmatprep.subr.bf16.mxu0 %v1659_v0  ;;  %1539 = vmatprep.subr.bf16.mxu1 %v1659_v0 }
  0x2b   : > { %1533 = vmatprep.mubr.msk.bf16.mxu0 %vm1660_vm0, %v1659_v0  ;;  %1541 = vmatprep.mubr.msk.bf16.mxu1 %vm1660_vm0, %v1659_v0 }
  0x2d   : > { %1532 = vmatpush3.bf16.msra.mxu0 %v1633_v27  ;;  %1540 = vmatpush3.bf16.msra.mxu1 %v1634_v29 }
  0x2e   : > { %1545 = vmatprep.subr.bf16.mxu0 %v1659_v0  ;;  %1553 = vmatprep.subr.bf16.mxu1 %v1659_v0 }
  0x30   : > { %1534 = vmatmul.mubr.msk.bf16.vlgmr.msra.gmra.mrb[12].mxu0 %vm191_vm1, %v564_v31  ;;  %1542 = vmatmul.mubr.msk.bf16.vlgmr.msra.gmra.mrb[12].mxu1 %vm191_vm1, %v629_v32 }
  0x31   : > { %1546 = vmatpush3.bf16.msra.mxu0 %v1635_v33  ;;  %1554 = vmatpush3.bf16.msra.mxu1 %v1636_v34 }
  0x32   : > { %1547 = vmatprep.subr.bf16.mxu0 %v1659_v0  ;;  %1555 = vmatprep.subr.bf16.mxu1 %v1659_v0 }
  0x33   : > { %1549 = vmatprep.mubr.msk.bf16.mxu0 %vm1660_vm0, %v1659_v0  ;;  %1557 = vmatprep.mubr.msk.bf16.mxu1 %vm1660_vm0, %v1659_v0 }
  0x35   : > { %1548 = vmatpush3.bf16.msra.mxu0 %v1637_v35  ;;  %1556 = vmatpush3.bf16.msra.mxu1 %v1638_v36 }
  0x36   : > { %1561 = vmatprep.subr.bf16.mxu0 %v1659_v0  ;;  %1569 = vmatprep.subr.bf16.mxu1 %v1659_v0 }
  0x38   : > { %1550 = vmatmul.mubr.msk.bf16.vlgmr.msra.gmra.mrb[16].mxu0 %vm191_vm1, %v694_v39  ;;  %1558 = vmatmul.mubr.msk.bf16.vlgmr.msra.gmra.mrb[16].mxu1 %vm191_vm1, %v759_v40 }
  0x39   : > { %1562 = vmatpush3.bf16.msra.mxu0 %v1639_v41  ;;  %1570 = vmatpush3.bf16.msra.mxu1 %v1640_v42 }
  0x3a   : > { %1563 = vmatprep.subr.bf16.mxu0 %v1659_v0  ;;  %1571 = vmatprep.subr.bf16.mxu1 %v1659_v0 }
  0x3b   : > { %1565 = vmatprep.mubr.msk.bf16.mxu0 %vm1660_vm0, %v1659_v0  ;;  %1573 = vmatprep.mubr.msk.bf16.mxu1 %vm1660_vm0, %v1659_v0 }
  0x3d   : > { %1564 = vmatpush3.bf16.msra.mxu0 %v1641_v43  ;;  %1572 = vmatpush3.bf16.msra.mxu1 %v1642_v45 }
  0x3e   : > { %1577 = vmatprep.subr.bf16.mxu0 %v1659_v0  ;;  %1585 = vmatprep.subr.bf16.mxu1 %v1659_v0 }
  0x40   : > { %1566 = vmatmul.mubr.msk.bf16.vlgmr.msra.gmra.mrb[20].mxu0 %vm191_vm1, %v824_v47  ;;  %1574 = vmatmul.mubr.msk.bf16.vlgmr.msra.gmra.mrb[20].mxu1 %vm191_vm1, %v889_v48 }
  0x41   : > { %1578 = vmatpush3.bf16.msra.mxu0 %v1643_v49  ;;  %1586 = vmatpush3.bf16.msra.mxu1 %v1644_v50 }
  0x42   : > { %1579 = vmatprep.subr.bf16.mxu0 %v1659_v0  ;;  %1587 = vmatprep.subr.bf16.mxu1 %v1659_v0 }
  0x43   : > { %1581 = vmatprep.mubr.msk.bf16.mxu0 %vm1660_vm0, %v1659_v0  ;;  %1589 = vmatprep.mubr.msk.bf16.mxu1 %vm1660_vm0, %v1659_v0 }
  0x45   : > { %1580 = vmatpush3.bf16.msra.mxu0 %v1645_v51  ;;  %1588 = vmatpush3.bf16.msra.mxu1 %v1646_v53 }
  0x46   : > { %1593 = vmatprep.subr.bf16.mxu0 %v1659_v0  ;;  %1601 = vmatprep.subr.bf16.mxu1 %v1659_v0 }
  0x48   : > { %1582 = vmatmul.mubr.msk.bf16.vlgmr.msra.gmra.mrb[24].mxu0 %vm191_vm1, %v954_v55  ;;  %1590 = vmatmul.mubr.msk.bf16.vlgmr.msra.gmra.mrb[24].mxu1 %vm191_vm1, %v1019_v56 }
  0x49   : > { %1594 = vmatpush3.bf16.msra.mxu0 %v1647_v57  ;;  %1602 = vmatpush3.bf16.msra.mxu1 %v1648_v58 }
  0x4a   : > { %1595 = vmatprep.subr.bf16.mxu0 %v1659_v0  ;;  %1603 = vmatprep.subr.bf16.mxu1 %v1659_v0 }
  0x4b   : > { %1597 = vmatprep.mubr.msk.bf16.mxu0 %vm1660_vm0, %v1659_v0  ;;  %1605 = vmatprep.mubr.msk.bf16.mxu1 %vm1660_vm0, %v1659_v0 }
  0x4d   : > { %1596 = vmatpush3.bf16.msra.mxu0 %v1649_v59  ;;  %1604 = vmatpush3.bf16.msra.mxu1 %v1650_v61 }
  0x50   : > { %1598 = vmatmul.mubr.msk.bf16.vlgmr.msra.gmra.mrb[28].mxu0 %vm191_vm1, %v1084_v63  ;;  %1606 = vmatmul.mubr.msk.bf16.vlgmr.msra.gmra.mrb[28].mxu1 %vm191_vm1, %v1149_v1 }
  0xeb   : > { %v229_v0 = vpop.f32.mrb[0].mxu0  ;;  %v294_v2 = vpop.f32.mrb[0].mxu1 }
  0xec   : > { %236 = vst.msk [vmem:[%s1833_s22] sm:$0xf] %vm235_vm2, %v229_v0  ;;  %v1487_v3 = vpop.f32.mrb[1].mxu0  ;;  %1303 = vst.msk [vmem:[%s1833_s22 + $0x4] sm:$0xf] %vm235_vm2, %v294_v2  ;;  %v1495_v4 = vpop.f32.mrb[1].mxu1 }
  0xed   : > { %v232_v5 = vpop.f32.mrb[2].mxu0  ;;  %v297_v6 = vpop.f32.mrb[2].mxu1 }
  0xee   : > { %v1488_v7 = vpop.f32.mrb[3].mxu0  ;;  %v1496_v8 = vpop.f32.mrb[3].mxu1 }
  0xf3   : > { %v359_v9 = vpop.f32.mrb[4].mxu0  ;;  %v424_v10 = vpop.f32.mrb[4].mxu1 }
  0xf4   : > { %1312 = vst.msk [vmem:[%s1833_s22 + $0x8] sm:$0xf] %vm235_vm2, %v359_v9  ;;  %v1503_v11 = vpop.f32.mrb[5].mxu0  ;;  %1321 = vst.msk [vmem:[%s1833_s22 + $0xc] sm:$0xf] %vm235_vm2, %v424_v10  ;;  %v1511_v12 = vpop.f32.mrb[5].mxu1 }
  0xf5   : > { %v362_v13 = vpop.f32.mrb[6].mxu0  ;;  %v427_v14 = vpop.f32.mrb[6].mxu1 }
  0xf6   : > { %v1504_v15 = vpop.f32.mrb[7].mxu0  ;;  %v1512_v16 = vpop.f32.mrb[7].mxu1 }
  0xfb   : > { %v489_v17 = vpop.f32.mrb[8].mxu0  ;;  %v554_v18 = vpop.f32.mrb[8].mxu1 }
  0xfc   : > { %1330 = vst.msk [vmem:[%s1833_s22 + $0x10] sm:$0xf] %vm235_vm2, %v489_v17  ;;  %v1519_v19 = vpop.f32.mrb[9].mxu0  ;;  %1339 = vst.msk [vmem:[%s1833_s22 + $0x14] sm:$0xf] %vm235_vm2, %v554_v18  ;;  %v1527_v20 = vpop.f32.mrb[9].mxu1 }
  0xfd   : > { %v492_v21 = vpop.f32.mrb[10].mxu0  ;;  %v557_v22 = vpop.f32.mrb[10].mxu1 }
  0xfe   : > { %v1520_v23 = vpop.f32.mrb[11].mxu0  ;;  %v1528_v24 = vpop.f32.mrb[11].mxu1 }
 0x103   : > { %v619_v25 = vpop.f32.mrb[12].mxu0  ;;  %v684_v26 = vpop.f32.mrb[12].mxu1 }
 0x104   : > { %1348 = vst.msk [vmem:[%s1833_s22 + $0x18] sm:$0xf] %vm235_vm2, %v619_v25  ;;  %v1535_v27 = vpop.f32.mrb[13].mxu0  ;;  %1357 = vst.msk [vmem:[%s1833_s22 + $0x1c] sm:$0xf] %vm235_vm2, %v684_v26  ;;  %v1543_v28 = vpop.f32.mrb[13].mxu1 }
 0x105   : > { %v622_v29 = vpop.f32.mrb[14].mxu0  ;;  %v687_v30 = vpop.f32.mrb[14].mxu1 }
 0x106   : > { %v1536_v31 = vpop.f32.mrb[15].mxu0  ;;  %v1544_v32 = vpop.f32.mrb[15].mxu1 }
 0x10b   : > { %v749_v33 = vpop.f32.mrb[16].mxu0  ;;  %v814_v34 = vpop.f32.mrb[16].mxu1 }
 0x10c   : > { %1366 = vst.msk [vmem:[%s1833_s22 + $0x20] sm:$0xf] %vm235_vm2, %v749_v33  ;;  %v1551_v35 = vpop.f32.mrb[17].mxu0  ;;  %1375 = vst.msk [vmem:[%s1833_s22 + $0x24] sm:$0xf] %vm235_vm2, %v814_v34  ;;  %v1559_v36 = vpop.f32.mrb[17].mxu1 }
 0x10d   : > { %v752_v37 = vpop.f32.mrb[18].mxu0  ;;  %v817_v38 = vpop.f32.mrb[18].mxu1 }
 0x10e   : > { %v1552_v39 = vpop.f32.mrb[19].mxu0  ;;  %v1560_v40 = vpop.f32.mrb[19].mxu1 }
 0x113   : > { %v879_v41 = vpop.f32.mrb[20].mxu0  ;;  %v944_v42 = vpop.f32.mrb[20].mxu1 }
 0x114   : > { %1384 = vst.msk [vmem:[%s1833_s22 + $0x28] sm:$0xf] %vm235_vm2, %v879_v41  ;;  %v1567_v43 = vpop.f32.mrb[21].mxu0  ;;  %1393 = vst.msk [vmem:[%s1833_s22 + $0x2c] sm:$0xf] %vm235_vm2, %v944_v42  ;;  %v1575_v44 = vpop.f32.mrb[21].mxu1 }
 0x115   : > { %v882_v45 = vpop.f32.mrb[22].mxu0  ;;  %v947_v46 = vpop.f32.mrb[22].mxu1 }
 0x116   : > { %v1568_v47 = vpop.f32.mrb[23].mxu0  ;;  %v1576_v48 = vpop.f32.mrb[23].mxu1 }
 0x11b   : > { %v1009_v49 = vpop.f32.mrb[24].mxu0  ;;  %v1074_v50 = vpop.f32.mrb[24].mxu1 }
 0x11c   : > { %1402 = vst.msk [vmem:[%s1833_s22 + $0x30] sm:$0xf] %vm235_vm2, %v1009_v49  ;;  %v1583_v51 = vpop.f32.mrb[25].mxu0  ;;  %1411 = vst.msk [vmem:[%s1833_s22 + $0x34] sm:$0xf] %vm235_vm2, %v1074_v50  ;;  %v1591_v52 = vpop.f32.mrb[25].mxu1 }
 0x11d   : > { %v1012_v53 = vpop.f32.mrb[26].mxu0  ;;  %v1077_v54 = vpop.f32.mrb[26].mxu1 }
 0x11e   : > { %v1584_v55 = vpop.f32.mrb[27].mxu0  ;;  %v1592_v56 = vpop.f32.mrb[27].mxu1 }
 0x123   : > { %v1139_v57 = vpop.f32.mrb[28].mxu0  ;;  %v1204_v58 = vpop.f32.mrb[28].mxu1 }
 0x124   : > { %1420 = vst.msk [vmem:[%s1833_s22 + $0x38] sm:$0xf] %vm235_vm2, %v1139_v57  ;;  %v1599_v59 = vpop.f32.mrb[29].mxu0  ;;  %1429 = vst.msk [vmem:[%s1833_s22 + $0x3c] sm:$0xf] %vm235_vm2, %v1204_v58  ;;  %v1607_v60 = vpop.f32.mrb[29].mxu1 }
 0x125   : > { %v1142_v61 = vpop.f32.mrb[30].mxu0  ;;  %v1207_v62 = vpop.f32.mrb[30].mxu1 }
 0x126   : > { %v1600_v63 = vpop.f32.mrb[31].mxu0  ;;  %v1608_v1 = vpop.f32.mrb[31].mxu1 }
 0x127 PF: > { %s12_s9 = sadd.s32 1, %s1657_s9  }
 0x128   : > { %p9_p4 = scmp.ge.s32.totalorder %s12_s9, 4  }
 0x12a   :  { %11 = sbr.rel (!%p9_p4) target bundleno = 1 (0x1), region = 106 }

// kernel: reverse.8
= control target key start
LH: loop header
LB: loop body
LE: loop exit
PB: predicated region body
PF: predicated region fallthrough
CT: control target
= control target key end

     0   :  { %s584_s0 = inlined_call_operand.vmem [shape: f32[2,32,17,8], index: 0, kind: input, shape index: {}]   ;;  %s585_s1 = inlined_call_operand.vmem [shape: f32[2,32,17,8], index: 1, kind: output, shape index: {}]  }
   0x1   :  { %v192_v0 = vld [vmem:[%s584_s0 + $0xa8] sm:$0xff]  ;;  %v195_v2 = vld [vmem:[%s584_s0 + $0x90] sm:$0xff]  ;;  %v199_v4 = vld [vmem:[%s584_s0 + $0x78] sm:$0xff] }
   0x2   :  { %v193_v1 = vld [vmem:[%s584_s0 + $0x168] sm:$0xff]  ;;  %4 = vst [vmem:[%s585_s1] sm:$0xff] %v192_v0  ;;  %196 = vst [vmem:[%s585_s1 + $0x18] sm:$0xff] %v195_v2  ;;  %v197_v3 = vld [vmem:[%s584_s0 + $0x150] sm:$0xff] }
   0x3   :  { %194 = vst [vmem:[%s585_s1 + $0xc0] sm:$0xff] %v193_v1  ;;  %v201_v5 = vld [vmem:[%s584_s0 + $0x138] sm:$0xff]  ;;  %198 = vst [vmem:[%s585_s1 + $0xd8] sm:$0xff] %v197_v3  ;;  %v203_v6 = vld [vmem:[%s584_s0 + $0x60] sm:$0xff] }
   0x4   :  { %200 = vst [vmem:[%s585_s1 + $0x30] sm:$0xff] %v199_v4  ;;  %202 = vst [vmem:[%s585_s1 + $0xf0] sm:$0xff] %v201_v5  ;;  %v205_v7 = vld [vmem:[%s584_s0 + $0x120] sm:$0xff]  ;;  %v207_v8 = vld [vmem:[%s584_s0 + $0x48] sm:$0xff] }
   0x5   :  { %204 = vst [vmem:[%s585_s1 + $0x48] sm:$0xff] %v203_v6  ;;  %206 = vst [vmem:[%s585_s1 + $0x108] sm:$0xff] %v205_v7  ;;  %v209_v9 = vld [vmem:[%s584_s0 + $0x108] sm:$0xff]  ;;  %v211_v10 = vld [vmem:[%s584_s0 + $0x30] sm:$0xff] }
   0x6   :  { %208 = vst [vmem:[%s585_s1 + $0x60] sm:$0xff] %v207_v8  ;;  %v213_v11 = vld [vmem:[%s584_s0 + $0xf0] sm:$0xff]  ;;  %210 = vst [vmem:[%s585_s1 + $0x120] sm:$0xff] %v209_v9  ;;  %v215_v12 = vld [vmem:[%s584_s0 + $0x18] sm:$0xff] }
   0x7   :  { %212 = vst [vmem:[%s585_s1 + $0x78] sm:$0xff] %v211_v10  ;;  %214 = vst [vmem:[%s585_s1 + $0x138] sm:$0xff] %v213_v11  ;;  %v217_v13 = vld [vmem:[%s584_s0 + $0xd8] sm:$0xff]  ;;  %v57_v14 = vld [vmem:[%s584_s0] sm:$0xff] }
   0x8   :  { %216 = vst [vmem:[%s585_s1 + $0x90] sm:$0xff] %v215_v12  ;;  %218 = vst [vmem:[%s585_s1 + $0x150] sm:$0xff] %v217_v13  ;;  %v220_v15 = vld [vmem:[%s584_s0 + $0xc0] sm:$0xff]  ;;  %v222_v16 = vld [vmem:[%s584_s0 + $0xb0] sm:$0xff] }
   0x9   :  { %219 = vst [vmem:[%s585_s1 + $0xa8] sm:$0xff] %v57_v14  ;;  %v224_v17 = vld [vmem:[%s584_s0 + $0x170] sm:$0xff]  ;;  %221 = vst [vmem:[%s585_s1 + $0x168] sm:$0xff] %v220_v15  ;;  %v226_v18 = vld [vmem:[%s584_s0 + $0x98] sm:$0xff] }
   0xa   :  { %223 = vst [vmem:[%s585_s1 + $0x8] sm:$0xff] %v222_v16  ;;  %225 = vst [vmem:[%s585_s1 + $0xc8] sm:$0xff] %v224_v17  ;;  %v228_v19 = vld [vmem:[%s584_s0 + $0x158] sm:$0xff]  ;;  %v230_v20 = vld [vmem:[%s584_s0 + $0x80] sm:$0xff] }
   0xb   :  { %227 = vst [vmem:[%s585_s1 + $0x20] sm:$0xff] %v226_v18  ;;  %229 = vst [vmem:[%s585_s1 + $0xe0] sm:$0xff] %v228_v19  ;;  %v232_v21 = vld [vmem:[%s584_s0 + $0x140] sm:$0xff]  ;;  %v234_v22 = vld [vmem:[%s584_s0 + $0x68] sm:$0xff] }
   0xc   :  { %231 = vst [vmem:[%s585_s1 + $0x38] sm:$0xff] %v230_v20  ;;  %v236_v23 = vld [vmem:[%s584_s0 + $0x128] sm:$0xff]  ;;  %233 = vst [vmem:[%s585_s1 + $0xf8] sm:$0xff] %v232_v21  ;;  %v238_v24 = vld [vmem:[%s584_s0 + $0x50] sm:$0xff] }
   0xd   :  { %235 = vst [vmem:[%s585_s1 + $0x50] sm:$0xff] %v234_v22  ;;  %237 = vst [vmem:[%s585_s1 + $0x110] sm:$0xff] %v236_v23  ;;  %v240_v25 = vld [vmem:[%s584_s0 + $0x110] sm:$0xff]  ;;  %v242_v26 = vld [vmem:[%s584_s0 + $0x38] sm:$0xff] }
   0xe   :  { %239 = vst [vmem:[%s585_s1 + $0x68] sm:$0xff] %v238_v24  ;;  %241 = vst [vmem:[%s585_s1 + $0x128] sm:$0xff] %v240_v25  ;;  %v244_v27 = vld [vmem:[%s584_s0 + $0xf8] sm:$0xff]  ;;  %v246_v28 = vld [vmem:[%s584_s0 + $0x20] sm:$0xff] }
   0xf   :  { %243 = vst [vmem:[%s585_s1 + $0x80] sm:$0xff] %v242_v26  ;;  %v248_v29 = vld [vmem:[%s584_s0 + $0xe0] sm:$0xff]  ;;  %245 = vst [vmem:[%s585_s1 + $0x140] sm:$0xff] %v244_v27  ;;  %v250_v30 = vld [vmem:[%s584_s0 + $0x8] sm:$0xff] }
  0x10   :  { %247 = vst [vmem:[%s585_s1 + $0x98] sm:$0xff] %v246_v28  ;;  %249 = vst [vmem:[%s585_s1 + $0x158] sm:$0xff] %v248_v29  ;;  %v252_v31 = vld [vmem:[%s584_s0 + $0xc8] sm:$0xff]  ;;  %v254_v32 = vld [vmem:[%s584_s0 + $0xb8] sm:$0xff] }
  0x11   :  { %251 = vst [vmem:[%s585_s1 + $0xb0] sm:$0xff] %v250_v30  ;;  %253 = vst [vmem:[%s585_s1 + $0x170] sm:$0xff] %v252_v31  ;;  %v256_v33 = vld [vmem:[%s584_s0 + $0x178] sm:$0xff]  ;;  %v258_v34 = vld [vmem:[%s584_s0 + $0xa0] sm:$0xff] }
  0x12   :  { %255 = vst [vmem:[%s585_s1 + $0x10] sm:$0xff] %v254_v32  ;;  %v260_v35 = vld [vmem:[%s584_s0 + $0x160] sm:$0xff]  ;;  %257 = vst [vmem:[%s585_s1 + $0xd0] sm:$0xff] %v256_v33  ;;  %v262_v36 = vld [vmem:[%s584_s0 + $0x88] sm:$0xff] }
  0x13   :  { %259 = vst [vmem:[%s585_s1 + $0x28] sm:$0xff] %v258_v34  ;;  %261 = vst [vmem:[%s585_s1 + $0xe8] sm:$0xff] %v260_v35  ;;  %v264_v37 = vld [vmem:[%s584_s0 + $0x148] sm:$0xff]  ;;  %v266_v38 = vld [vmem:[%s584_s0 + $0x70] sm:$0xff] }
  0x14   :  { %263 = vst [vmem:[%s585_s1 + $0x40] sm:$0xff] %v262_v36  ;;  %265 = vst [vmem:[%s585_s1 + $0x100] sm:$0xff] %v264_v37  ;;  %v268_v39 = vld [vmem:[%s584_s0 + $0x130] sm:$0xff]  ;;  %v270_v40 = vld [vmem:[%s584_s0 + $0x58] sm:$0xff] }
  0x15   :  { %267 = vst [vmem:[%s585_s1 + $0x58] sm:$0xff] %v266_v38  ;;  %v272_v41 = vld [vmem:[%s584_s0 + $0x118] sm:$0xff]  ;;  %269 = vst [vmem:[%s585_s1 + $0x118] sm:$0xff] %v268_v39  ;;  %v274_v42 = vld [vmem:[%s584_s0 + $0x40] sm:$0xff] }
  0x16   :  { %271 = vst [vmem:[%s585_s1 + $0x70] sm:$0xff] %v270_v40  ;;  %273 = vst [vmem:[%s585_s1 + $0x130] sm:$0xff] %v272_v41  ;;  %v276_v43 = vld [vmem:[%s584_s0 + $0x100] sm:$0xff]  ;;  %v278_v44 = vld [vmem:[%s584_s0 + $0x28] sm:$0xff] }
  0x17   :  { %275 = vst [vmem:[%s585_s1 + $0x88] sm:$0xff] %v274_v42  ;;  %277 = vst [vmem:[%s585_s1 + $0x148] sm:$0xff] %v276_v43  ;;  %v280_v45 = vld [vmem:[%s584_s0 + $0xe8] sm:$0xff]  ;;  %v282_v46 = vld [vmem:[%s584_s0 + $0x10] sm:$0xff] }
  0x18   :  { %279 = vst [vmem:[%s585_s1 + $0xa0] sm:$0xff] %v278_v44  ;;  %v284_v47 = vld [vmem:[%s584_s0 + $0xd0] sm:$0xff]  ;;  %281 = vst [vmem:[%s585_s1 + $0x160] sm:$0xff] %v280_v45 }
  0x19   :  { %283 = vst [vmem:[%s585_s1 + $0xb8] sm:$0xff] %v282_v46  ;;  %285 = vst [vmem:[%s585_s1 + $0x178] sm:$0xff] %v284_v47 }

// kernel: fno2d_forward.12
= control target key start
LH: loop header
LB: loop body
LE: loop exit
PB: predicated region body
PF: predicated region fallthrough
CT: control target
= control target key end

     0   :  { %s1358_s15 = smov 0   ;;  %s1360_s16 = smov 0   ;;  %s1764_s0 = inlined_call_operand.vmem [shape: f32[152,128], index: 0, kind: input, shape index: {}, may-alias: {0,4}]   ;;  %s1765_s1 = inlined_call_operand.vmem [shape: f32[152,128], index: 1, kind: input, shape index: {}]   ;;  %s1766_s2 = inlined_call_operand.vmem [shape: bf16[128,128], index: 2, kind: input, shape index: {}]   ;;  %s1767_s3 = inlined_call_operand.vmem [shape: f32[1,128], index: 3, kind: input, shape index: {}]   ;;  %s1768_s4 = inlined_call_operand.vmem [shape: f32[152,128], index: 4, kind: output, shape index: {}, may-alias: {0,4}]  }
   0x1   :  { %s1362_s17 = smov 0  }
   0x2 LB: > { %s1371_s18 = sadd.s32 4294967295, %s1297_s17   ;;  %s1373_s19 = sadd.s32 1, %s1297_s17   ;;  %s1297_s17 = sphi %s1362_s17, %s1775_s17   ;;  %s1293_s16 = sphi %s1360_s16, %s1774_s16   ;;  %s1289_s15 = sphi %s1358_s15, %s1773_s15  }
   0x3   : > { %s112_s20 = ssub.s32 %s1297_s17, %s1373_s19  ;;  %s115_s21 = sadd.s32 1, %s1293_s16 }
   0x4   : > { %p113_p0 = scmp.eq.s32.totalorder %s112_s20, 0  ;;  %p125_p1 = scmp.ne.s32.totalorder %s1293_s16, %s1289_s15 }
   0x5   : > { %p126_p2 = scmp.eq.s32.totalorder %s1371_s18, 1  ;;  %p1019_p3 = scmp.ge.s32.totalorder %s1297_s17, 1 }
   0x6   : > { %s1381_s22 = scalar_select %p113_p0, %s1293_s16, %s115_s21  }
   0x7   : > { %p1383_p4 = por %p126_p2, %p125_p1  ;;  %p190_p5 = scmp.lt.s32.totalorder %s1297_s17, 3 }
   0x9   : > { %p191_p6 = pnand %p1019_p3, %p190_p5 }
   0xa   : > { %v1211_v0 = vld [vmem:[%s1766_s2] sm:$0xff] (!%p191_p6)   ;;  %v1331_v1 = vmov (!%p191_p6), 0.0   ;;  %v1212_v2 = vld [vmem:[%s1766_s2 + $0x8] sm:$0xff] (!%p191_p6)   ;;  %vm1332_vm0 = vmmov (!%p191_p6), 0   ;;  %v1213_v3 = vld [vmem:[%s1766_s2 + $0x10] sm:$0xff] (!%p191_p6)   ;;  %s1407_s30 = smul.u32 (!%p191_p6), 10, %s1371_s18 }
   0xb   : > { %194 = sbr.rel (%p191_p6) target bundleno = 422 (0x1a6), region = 36  ;;  %1067 = vmatprep.subr.bf16.mxu0 (!%p191_p6), %v1331_v1  ;;  %1103 = vmatprep.subr.bf16.mxu1 (!%p191_p6), %v1331_v1  ;;  %v1214_v4 = vld [vmem:[%s1766_s2 + $0x18] sm:$0xff] (!%p191_p6)   ;;  %v1215_v5 = vld [vmem:[%s1766_s2 + $0x20] sm:$0xff] (!%p191_p6)   ;;  %v1216_v6 = vld [vmem:[%s1766_s2 + $0x28] sm:$0xff] (!%p191_p6)   ;;  %s225_s6 = sand.u32 (!%p191_p6), 1, %s1289_s15  }
   0xc   : > { %1068 = vmatpush3.bf16.msra.mxu0 (!%p191_p6), %v1211_v0  ;;  %1111 = vmatpush3.bf16.msra.mxu1 (!%p191_p6), %v1211_v0  ;;  %p233_p7 = scmp.lt.s32.totalorder (!%p191_p6), %s1407_s30, 18  ;;  %v1217_v7 = vld [vmem:[%s1766_s2 + $0x30] sm:$0xff] (!%p191_p6)   ;;  %v1218_v8 = vld [vmem:[%s1766_s2 + $0x38] sm:$0xff] (!%p191_p6)   ;;  %v1460_v24 = vld [vmem:[%s1767_s3] ss:$0 sm:$0xff] (!%p191_p6)  ;;  %s1589_s15 = smul.u32 (!%p191_p6), 80, %s225_s6 }
   0xd   : > { %1069 = vmatprep.subr.bf16.mxu0 (!%p191_p6), %v1331_v1  ;;  %1104 = vmatprep.subr.bf16.mxu1 (!%p191_p6), %v1331_v1 }
   0xe   : > { %1083 = vmatprep.mubr.msk.bf16.mxu0 (!%p191_p6), %vm1332_vm0, %v1331_v1  ;;  %1095 = vmatprep.mubr.msk.bf16.mxu1 (!%p191_p6), %vm1332_vm0, %v1331_v1  ;;  %s1615_s7 = scalar_lea.vmem (!%p191_p6), [#allocation2], %s1589_s15  }
  0x10   : > { %1070 = vmatpush3.bf16.msra.mxu0 (!%p191_p6), %v1212_v2  ;;  %1112 = vmatpush3.bf16.msra.mxu1 (!%p191_p6), %v1212_v2 }
  0x11   : > { %1071 = vmatprep.subr.bf16.mxu0 (!%p191_p6), %v1331_v1  ;;  %1105 = vmatprep.subr.bf16.mxu1 (!%p191_p6), %v1331_v1 }
  0x12   : > { %s1421_s9 = scalar_select %p233_p7, %s1407_s30, 18 }
  0x13   : > { %s759_s8 = ssub.s32 (%p1383_p4), 19, %s1407_s30 }
  0x14   : > { %1072 = vmatpush3.bf16.msra.mxu0 %v1213_v3  ;;  %1113 = vmatpush3.bf16.msra.mxu1 %v1213_v3  ;;  %s1020_s12 = sshll.u32 %s1421_s9, 3  ;;  %s1053_s9 = smul.u32 (%p1383_p4), 80, %s1371_s18 }
  0x15   : > { %1073 = vmatprep.subr.bf16.mxu0 %v1331_v1  ;;  %1106 = vmatprep.subr.bf16.mxu1 %v1331_v1  ;;  %s236_s21 = scalar_lea.vmem %s1764_s0, %s1020_s12  ;;  %s1455_s28 = scalar_lea.vmem %s1765_s1, %s1020_s12 }
  0x16   : > { %v262_v9 = vld [vmem:[%s236_s21] sm:$0xff]  ;;  %v263_v10 = vld [vmem:[%s236_s21 + $0x8] sm:$0xff]  ;;  %v268_v11 = vld [vmem:[%s236_s21 + $0x30] sm:$0xff]  ;;  %p760_p8 = scmp.lt.s32.totalorder (%p1383_p4), %s759_s8, 10  ;;  %s1712_s12 = scalar_lea.vmem (%p1383_p4), %s1768_s4, %s1053_s9  }
  0x17   : > { %v269_v12 = vld [vmem:[%s236_s21 + $0x38] sm:$0xff]  ;;  %v272_v13 = vpack.c.bf16 %v263_v10, %v262_v9  ;;  %v264_v15 = vld [vmem:[%s236_s21 + $0x10] sm:$0xff]  ;;  %v270_v17 = vld [vmem:[%s236_s21 + $0x40] sm:$0xff] }
  0x18   : > { %1074 = vmatpush3.bf16.msra.mxu0 %v1214_v4  ;;  %1114 = vmatpush3.bf16.msra.mxu1 %v1214_v4  ;;  %v275_v14 = vpack.c.bf16 %v269_v12, %v268_v11  ;;  %v265_v16 = vld [vmem:[%s236_s21 + $0x18] sm:$0xff]  ;;  %v271_v18 = vld [vmem:[%s236_s21 + $0x48] sm:$0xff]  ;;  %v266_v21 = vld [vmem:[%s236_s21 + $0x20] sm:$0xff] }
  0x19   : > { %1075 = vmatprep.subr.bf16.mxu0 %v1331_v1  ;;  %1107 = vmatprep.subr.bf16.mxu1 %v1331_v1  ;;  %v273_v19 = vpack.c.bf16 %v265_v16, %v264_v15  ;;  %v276_v20 = vpack.c.bf16 %v271_v18, %v270_v17  ;;  %v267_v22 = vld [vmem:[%s236_s21 + $0x28] sm:$0xff]  ;;  %v421_v26 = vld [vmem:[%s1455_s28] sm:$0xff]  ;;  %v427_v28 = vld [vmem:[%s1455_s28 + $0x30] sm:$0xff] }
  0x1a   : > { %v274_v23 = vpack.c.bf16 %v267_v22, %v266_v21  ;;  %v422_v38 = vld [vmem:[%s1455_s28 + $0x8] sm:$0xff]  ;;  %v428_v40 = vld [vmem:[%s1455_s28 + $0x38] sm:$0xff]  ;;  %v423_v55 = vld [vmem:[%s1455_s28 + $0x10] sm:$0xff] }
  0x1b   : > { %v429_v61 = vld [vmem:[%s1455_s28 + $0x40] sm:$0xff] }
  0x1c   : > { %1076 = vmatpush3.bf16.msra.mxu0 %v1215_v5  ;;  %1115 = vmatpush3.bf16.msra.mxu1 %v1215_v5 }
  0x1d   : > { %1077 = vmatprep.subr.bf16.mxu0 %v1331_v1  ;;  %1108 = vmatprep.subr.bf16.mxu1 %v1331_v1 }
  0x20   : > { %1078 = vmatpush3.bf16.msra.mxu0 %v1216_v6  ;;  %1116 = vmatpush3.bf16.msra.mxu1 %v1216_v6 }
  0x21   : > { %1079 = vmatprep.subr.bf16.mxu0 %v1331_v1  ;;  %1109 = vmatprep.subr.bf16.mxu1 %v1331_v1 }
  0x24   : > { %1080 = vmatpush3.bf16.msra.mxu0 %v1217_v7  ;;  %1117 = vmatpush3.bf16.msra.mxu1 %v1217_v7 }
  0x25   : > { %1081 = vmatprep.subr.bf16.mxu0 %v1331_v1  ;;  %1110 = vmatprep.subr.bf16.mxu1 %v1331_v1 }
  0x28   : > { %1082 = vmatpush3.bf16.msra.mxu0 %v1218_v8  ;;  %1118 = vmatpush3.bf16.msra.mxu1 %v1218_v8  ;;  %v424_v8 = vld [vmem:[%s1455_s28 + $0x18] sm:$0xff] }
  0x2b   : > { %1084 = vmatmul.mubr.bf16.vlgmr.msra.gmra.mrb[0].mxu0 %v272_v13  ;;  %1096 = vmatmul.mubr.bf16.vlgmr.msra.gmra.mrb[0].mxu1 %v275_v14 }
  0x2c   : > { %1087 = vmatprep.mubr.msk.bf16.mxu0 %vm1332_vm0, %v1331_v1  ;;  %1099 = vmatprep.mubr.msk.bf16.mxu1 %vm1332_vm0, %v1331_v1 }
  0x33   : > { %1088 = vmatmul.mubr.bf16.gmra.mrb[4].mxu0 %v273_v19  ;;  %1100 = vmatmul.mubr.bf16.gmra.mrb[4].mxu1 %v276_v20 }
  0x34   : > { %1091 = vmatprep.mubr.msk.bf16.mxu0 %vm1332_vm0, %v1331_v1 }
  0x3b   : > { %1092 = vmatmul.mubr.bf16.gmra.mrb[8].mxu0 %v274_v23 }
  0xfe   : > { %v382_v25 = vpop.f32.mrb[0].mxu0  ;;  %v406_v27 = vpop.f32.mrb[0].mxu1 }
  0xff   : > { %v383_v29 = vadd.f32 %v1460_v24, %v382_v25  ;;  %v407_v30 = vadd.f32 %v1460_v24, %v406_v27  ;;  %v1085_v31 = vpop.f32.mrb[1].mxu0  ;;  %v1097_v32 = vpop.f32.mrb[1].mxu1 }
 0x100   : > { %v385_v33 = vpop.f32.mrb[2].mxu0  ;;  %v409_v34 = vpop.f32.mrb[2].mxu1 }
 0x101   : > { %v431_v35 = vadd.f32 %v421_v26, %v383_v29  ;;  %v1466_v36 = vadd.f32 %v427_v28, %v407_v30  ;;  %v386_v37 = vadd.f32 %v1460_v24, %v385_v33  ;;  %v410_v39 = vadd.f32 %v1460_v24, %v409_v34  ;;  %v1086_v41 = vpop.f32.mrb[3].mxu0  ;;  %v1098_v42 = vpop.f32.mrb[3].mxu1 }
 0x103   : > { %v451_v43 = vmul.f32 0.70710677, %v431_v35  ;;  %v457_v44 = vmul.f32 0.70710677, %v1466_v36  ;;  %v1473_v45 = vadd.f32 %v422_v38, %v386_v37  ;;  %v1475_v46 = vadd.f32 %v428_v40, %v410_v39 }
 0x104   : > { %v1483_v51 = vmul.f32 0.5, %v431_v35 }
 0x105   : > { %v1477_v47 = vclamps-f32 %v451_v43, 4.0  ;;  %v1479_v48 = vclamps-f32 %v457_v44, 4.0  ;;  %v452_v49 = vmul.f32 0.70710677, %v1473_v45  ;;  %v458_v50 = vmul.f32 0.70710677, %v1475_v46 }
 0x106   : > { %v390_v54 = vpop.f32.mrb[4].mxu0  ;;  %v414_v56 = vpop.f32.mrb[4].mxu1 }
 0x107   : > { %v1487_v52 = vmul.f32 %v1477_v47, %v1477_v47  ;;  %v1491_v53 = vmul.f32 %v1479_v48, %v1479_v48  ;;  %v1494_v57 = vclamps-f32 %v452_v49, 4.0  ;;  %v1496_v58 = vclamps-f32 %v458_v50, 4.0  ;;  %v1089_v62 = vpop.f32.mrb[5].mxu0  ;;  %v1101_v63 = vpop.f32.mrb[5].mxu1 }
 0x108   : > { %v391_v59 = vadd.f32 %v1460_v24, %v390_v54  ;;  %v415_v60 = vadd.f32 %v1460_v24, %v414_v56  ;;  %v393_v7 = vpop.f32.mrb[6].mxu0  ;;  %v1516_v9 = vpop.f32.mrb[6].mxu1 }
 0x109   : > { %v491_v0 = vmul.f32 -2.7261424e-10, %v1487_v52  ;;  %v621_v1 = vmul.f32 -1.45660715e-05, %v1487_v52  ;;  %v497_v2 = vmul.f32 -2.7261424e-10, %v1491_v53  ;;  %v1507_v4 = vmul.f32 %v1494_v57, %v1494_v57 }
 0x10a   : > { %v627_v3 = vmul.f32 -1.45660715e-05, %v1491_v53  ;;  %v1511_v5 = vmul.f32 %v1496_v58, %v1496_v58  ;;  %v1513_v6 = vadd.f32 %v423_v55, %v391_v59  ;;  %v1518_v13 = vadd.f32 %v429_v61, %v415_v60  ;;  %v1090_v22 = vpop.f32.mrb[7].mxu0  ;;  %v1102_v23 = vpop.f32.mrb[7].mxu1 }
 0x10b   : > { %v501_v10 = vadd.f32 2.7706815e-08, %v491_v0  ;;  %v631_v11 = vadd.f32 -0.00021337405, %v621_v1  ;;  %v507_v12 = vadd.f32 2.7706815e-08, %v497_v2  ;;  %v394_v17 = vadd.f32 %v1460_v24, %v393_v7 }
 0x10c   : > { %v637_v14 = vadd.f32 -0.00021337405, %v627_v3  ;;  %v492_v15 = vmul.f32 -2.7261424e-10, %v1507_v4  ;;  %v622_v16 = vmul.f32 -1.45660715e-05, %v1507_v4 }
 0x10d   : > { %v511_v18 = vmul.f32 %v501_v10, %v1487_v52  ;;  %v641_v19 = vmul.f32 %v631_v11, %v1487_v52  ;;  %v517_v20 = vmul.f32 %v507_v12, %v1491_v53  ;;  %v498_v21 = vmul.f32 -2.7261424e-10, %v1511_v5 }
 0x10e   : > { %v647_v25 = vmul.f32 %v637_v14, %v1491_v53  ;;  %v502_v26 = vadd.f32 2.7706815e-08, %v492_v15  ;;  %v632_v27 = vadd.f32 -0.00021337405, %v622_v16  ;;  %v628_v28 = vmul.f32 -1.45660715e-05, %v1511_v5 }
 0x10f   : > { %v521_v29 = vadd.f32 -2.101024e-06, %v511_v18  ;;  %v651_v30 = vadd.f32 -0.001682827, %v641_v19  ;;  %v527_v31 = vadd.f32 -2.101024e-06, %v517_v20  ;;  %v1529_v32 = vadd.f32 %v424_v8, %v394_v17 }
 0x110   : > { %v657_v33 = vadd.f32 -0.001682827, %v647_v25  ;;  %v512_v34 = vmul.f32 %v502_v26, %v1507_v4  ;;  %v642_v35 = vmul.f32 %v632_v27, %v1507_v4  ;;  %v508_v37 = vadd.f32 2.7706815e-08, %v498_v21  ;;  %v1533_v38 = vpop.f32.mrb[8].mxu0 }
 0x111   : > { %v531_v39 = vmul.f32 %v521_v29, %v1487_v52  ;;  %v661_v40 = vmul.f32 %v651_v30, %v1487_v52  ;;  %v537_v41 = vmul.f32 %v527_v31, %v1491_v53  ;;  %v638_v42 = vadd.f32 -0.00021337405, %v628_v28  ;;  %v1093_v43 = vpop.f32.mrb[9].mxu0 }
 0x112   : > { %v667_v44 = vmul.f32 %v657_v33, %v1491_v53  ;;  %v522_v49 = vadd.f32 -2.101024e-06, %v512_v34  ;;  %v652_v50 = vadd.f32 -0.001682827, %v642_v35  ;;  %v518_v54 = vmul.f32 %v508_v37, %v1511_v5  ;;  %v1540_v55 = vpop.f32.mrb[10].mxu0 }
 0x113   : > { %v541_v56 = vadd.f32 -5.6925062e-05, %v531_v39  ;;  %v671_v59 = vadd.f32 -0.0073733293, %v661_v40  ;;  %v547_v60 = vadd.f32 -5.6925062e-05, %v537_v41  ;;  %v648_v61 = vmul.f32 %v638_v42, %v1511_v5 }
 0x114   : > { %v677_v62 = vadd.f32 -0.0073733293, %v667_v44  ;;  %v532_v63 = vmul.f32 %v522_v49, %v1507_v4  ;;  %v662_v0 = vmul.f32 %v652_v50, %v1507_v4  ;;  %v528_v1 = vadd.f32 -2.101024e-06, %v518_v54  ;;  %v1094_v2 = vpop.f32.mrb[11].mxu0 }
 0x115   : > { %v551_v3 = vmul.f32 %v541_v56, %v1487_v52  ;;  %v681_v7 = vmul.f32 %v671_v59, %v1487_v52  ;;  %v557_v8 = vmul.f32 %v547_v60, %v1491_v53  ;;  %v658_v10 = vadd.f32 -0.001682827, %v648_v61 }
 0x116   : > { %v687_v11 = vmul.f32 %v677_v62, %v1491_v53  ;;  %v542_v12 = vadd.f32 -5.6925062e-05, %v532_v63  ;;  %v672_v14 = vadd.f32 -0.0073733293, %v662_v0  ;;  %v538_v15 = vmul.f32 %v528_v1, %v1511_v5  ;;  %v430_v62 = vld [vmem:[%s1455_s28 + $0x48] sm:$0xff] }
 0x117   : > { %v561_v16 = vadd.f32 -0.00073499064, %v551_v3  ;;  %v691_v17 = vadd.f32 -0.014264739, %v681_v7  ;;  %v567_v18 = vadd.f32 -0.00073499064, %v557_v8  ;;  %v668_v19 = vmul.f32 %v658_v10, %v1511_v5 }
 0x118   : > { %v697_v20 = vadd.f32 -0.014264739, %v687_v11  ;;  %v552_v21 = vmul.f32 %v542_v12, %v1507_v4  ;;  %v682_v22 = vmul.f32 %v672_v14, %v1507_v4  ;;  %v548_v23 = vadd.f32 -5.6925062e-05, %v538_v15 }
 0x119   : > { %v571_v25 = vmul.f32 %v561_v16, %v1487_v52  ;;  %1219 = vrcp.f32 %v691_v17  ;;  %v577_v26 = vmul.f32 %v567_v18, %v1491_v53  ;;  %v678_v27 = vadd.f32 -0.0073733293, %v668_v19 }
 0x11a   : > { %1221 = vrcp.f32 %v697_v20  ;;  %v562_v28 = vadd.f32 -0.00073499064, %v552_v21  ;;  %v692_v29 = vadd.f32 -0.014264739, %v682_v22  ;;  %v558_v30 = vmul.f32 %v548_v23, %v1511_v5 }
 0x11b   : > { %v581_v31 = vadd.f32 -0.0029546, %v571_v25  ;;  %v447_v33 = vmul.f32 0.5, %v1466_v36  ;;  %v587_v34 = vadd.f32 -0.0029546, %v577_v26  ;;  %v688_v35 = vmul.f32 %v678_v27, %v1511_v5 }
 0x11c   : > { %v572_v37 = vmul.f32 %v562_v28, %v1507_v4  ;;  %1223 = vrcp.f32 %v692_v29  ;;  %v568_v39 = vadd.f32 -0.00073499064, %v558_v30  ;;  %v453_v40 = vmul.f32 0.70710677, %v1513_v6 }
 0x11d   : > { %v591_v41 = vmul.f32 %v581_v31, %v1487_v52  ;;  %v597_v42 = vmul.f32 %v587_v34, %v1491_v53  ;;  %v1563_v43 = vmul.f32 0.5, %v1473_v45  ;;  %v698_v44 = vadd.f32 -0.014264739, %v688_v35 }
 0x11e   : > { %v582_v36 = vadd.f32 -0.0029546, %v572_v37  ;;  %v578_v49 = vmul.f32 %v568_v39, %v1511_v5  ;;  %v1566_v50 = vclamps-f32 %v453_v40, 4.0  ;;  %v459_v54 = vmul.f32 0.70710677, %v1518_v13 }
 0x11f   : > { %v601_v56 = vadd.f32 -0.016096033, %v591_v41  ;;  %v607_v59 = vadd.f32 -0.016096033, %v597_v42  ;;  %v1570_v60 = vmul.f32 0.5, %v1475_v46  ;;  %1225 = vrcp.f32 %v698_v44 }
 0x120   : > { %v592_v52 = vmul.f32 %v582_v36, %v1507_v4  ;;  %v588_v53 = vadd.f32 -0.0029546, %v578_v49  ;;  %v1576_v45 = vmul.f32 %v1566_v50, %v1566_v50  ;;  %v1578_v61 = vclamps-f32 %v459_v54, 4.0 }
 0x121   : > { %v611_v63 = vmul.f32 %v1477_v47, %v601_v56  ;;  %v617_v0 = vmul.f32 %v1479_v48, %v607_v59  ;;  %v454_v1 = vmul.f32 0.70710677, %v1529_v32  ;;  %v418_v46 = vadd.f32 %v1460_v24, %v1516_v9 }
 0x122   : > { %v602_v2 = vadd.f32 -0.016096033, %v592_v52  ;;  %v598_v4 = vmul.f32 %v588_v53, %v1511_v5  ;;  %v493_v3 = vmul.f32 -2.7261424e-10, %v1576_v45  ;;  %v623_v7 = vmul.f32 -1.45660715e-05, %v1576_v45 }
 0x123   : > { %v1220_v8 = vpop.eup %1219  ;;  %v1593_v47 = vmul.f32 %v1578_v61, %v1578_v61  ;;  %v1595_v48 = vclamps-f32 %v454_v1, 4.0  ;;  %v1597_v10 = vadd.f32 %v430_v62, %v418_v46  ;;  %v399_v9 = vadd.f32 %v1460_v24, %v1533_v38 }
 0x124   : > { %v1222_v11 = vpop.eup %1221  ;;  %v702_v5 = vmul.f32 %v1220_v8, %v611_v63  ;;  %v612_v12 = vmul.f32 %v1494_v57, %v602_v2  ;;  %v608_v14 = vadd.f32 -0.016096033, %v598_v4  ;;  %v503_v15 = vadd.f32 2.7706815e-08, %v493_v3 }
 0x125   : > { %v714_v16 = vmul.f32 %v1222_v11, %v617_v0  ;;  %v633_v17 = vadd.f32 -0.00021337405, %v623_v7  ;;  %v499_v18 = vmul.f32 -2.7261424e-10, %v1593_v47  ;;  %v629_v19 = vmul.f32 -1.45660715e-05, %v1593_v47 }
 0x126   : > { %v1224_v20 = vpop.eup %1223  ;;  %v721_v21 = vadd.f32 1.0, %v702_v5  ;;  %v618_v22 = vmul.f32 %v1496_v58, %v608_v14  ;;  %v513_v23 = vmul.f32 %v503_v15, %v1576_v45  ;;  %v1608_v38 = vmul.f32 %v1595_v48, %v1595_v48  ;;  %v425_v0 = vld [vmem:[%s1455_s28 + $0x20] sm:$0xff] }
 0x127   : > { %v727_v57 = vadd.f32 1.0, %v714_v16  ;;  %v704_v25 = vmul.f32 %v1224_v20, %v612_v12  ;;  %v643_v26 = vmul.f32 %v633_v17, %v1576_v45  ;;  %v509_v27 = vadd.f32 2.7706815e-08, %v499_v18 }
 0x128   : > { %v731_v28 = vmul.f32 %v721_v21, %v1483_v51  ;;  %v523_v29 = vadd.f32 -2.101024e-06, %v513_v23  ;;  %v639_v30 = vadd.f32 -0.00021337405, %v629_v19  ;;  %v494_v31 = vmul.f32 -2.7261424e-10, %v1608_v38 }
 0x129   : > { %v1226_v34 = vpop.eup %1225  ;;  %v737_v58 = vmul.f32 %v727_v57, %v447_v33  ;;  %v722_v35 = vadd.f32 1.0, %v704_v25  ;;  %v653_v37 = vadd.f32 -0.001682827, %v643_v26  ;;  %v519_v39 = vmul.f32 %v509_v27, %v1593_v47 }
 0x12a   : > { %741 = vst [vmem:[%s1615_s7] sm:$0xff] %v731_v28  ;;  %v716_v40 = vmul.f32 %v1226_v34, %v618_v22  ;;  %v533_v41 = vmul.f32 %v523_v29, %v1576_v45  ;;  %v649_v51 = vmul.f32 %v639_v30, %v1593_v47  ;;  %v504_v42 = vadd.f32 2.7706815e-08, %v494_v31 }
 0x12b   : > { %747 = vst [vmem:[%s1615_s7 + $0x30] sm:$0xff] %v737_v58  ;;  %v732_v33 = vmul.f32 %v722_v35, %v1563_v43  ;;  %v663_v44 = vmul.f32 %v653_v37, %v1576_v45  ;;  %v529_v36 = vadd.f32 -2.101024e-06, %v519_v39  ;;  %v624_v49 = vmul.f32 -1.45660715e-05, %v1608_v38 }
 0x12c   : > { %v728_v54 = vadd.f32 1.0, %v716_v40  ;;  %v543_v56 = vadd.f32 -5.6925062e-05, %v533_v41  ;;  %v659_v59 = vadd.f32 -0.001682827, %v649_v51  ;;  %v514_v52 = vmul.f32 %v504_v42, %v1608_v38 }
 0x12d   : > { %742 = vst [vmem:[%s1615_s7 + $0x8] sm:$0xff] %v732_v33  ;;  %v673_v53 = vadd.f32 -0.0073733293, %v663_v44  ;;  %v539_v62 = vmul.f32 %v529_v36, %v1593_v47  ;;  %v634_v63 = vadd.f32 -0.00021337405, %v624_v49  ;;  %v1636_v14 = vadd.f32 %v425_v0, %v399_v9 }
 0x12e   : > { %v738_v1 = vmul.f32 %v728_v54, %v1570_v60  ;;  %v553_v43 = vmul.f32 %v543_v56, %v1576_v45  ;;  %v669_v46 = vmul.f32 %v659_v59, %v1593_v47  ;;  %v524_v2 = vadd.f32 -2.101024e-06, %v514_v52  ;;  %v426_v54 = vld [vmem:[%s1455_s28 + $0x28] sm:$0xff] }
 0x12f   : > { %v683_v4 = vmul.f32 %v673_v53, %v1576_v45  ;;  %v549_v3 = vadd.f32 -5.6925062e-05, %v539_v62  ;;  %v644_v7 = vmul.f32 %v634_v63, %v1608_v38  ;;  %v460_v8 = vmul.f32 0.70710677, %v1597_v10 }
 0x130   : > { %748 = vst [vmem:[%s1615_s7 + $0x38] sm:$0xff] %v738_v1  ;;  %v563_v11 = vadd.f32 -0.00073499064, %v553_v43  ;;  %v679_v5 = vadd.f32 -0.0073733293, %v669_v46  ;;  %v534_v12 = vmul.f32 %v524_v2, %v1608_v38 }
 0x131   : > { %v693_v60 = vadd.f32 -0.014264739, %v683_v4  ;;  %v559_v15 = vmul.f32 %v549_v3, %v1593_v47  ;;  %v654_v16 = vadd.f32 -0.001682827, %v644_v7  ;;  %v1639_v17 = vclamps-f32 %v460_v8, 4.0 }
 0x132   : > { %v573_v18 = vmul.f32 %v563_v11, %v1576_v45  ;;  %v689_v19 = vmul.f32 %v679_v5, %v1593_v47  ;;  %v544_v20 = vadd.f32 -5.6925062e-05, %v534_v12  ;;  %v455_v26 = vmul.f32 0.70710677, %v1636_v14 }
 0x133   : > { %1227 = vrcp.f32 %v693_v60  ;;  %v569_v21 = vadd.f32 -0.00073499064, %v559_v15  ;;  %v664_v22 = vmul.f32 %v654_v16, %v1608_v38  ;;  %v1646_v23 = vmul.f32 %v1639_v17, %v1639_v17 }
 0x134   : > { %v583_v9 = vadd.f32 -0.0029546, %v573_v18  ;;  %v699_v57 = vadd.f32 -0.014264739, %v689_v19  ;;  %v554_v25 = vmul.f32 %v544_v20, %v1608_v38  ;;  %v1654_v58 = vclamps-f32 %v455_v26, 4.0 }
 0x135   : > { %v579_v27 = vmul.f32 %v569_v21, %v1593_v47  ;;  %v674_v28 = vadd.f32 -0.0073733293, %v664_v22  ;;  %v500_v29 = vmul.f32 -2.7261424e-10, %v1646_v23  ;;  %v630_v30 = vmul.f32 -1.45660715e-05, %v1646_v23 }
 0x136   : > { %v593_v31 = vmul.f32 %v583_v9, %v1576_v45  ;;  %1229 = vrcp.f32 %v699_v57  ;;  %v564_v34 = vadd.f32 -0.00073499064, %v554_v25  ;;  %v1660_v42 = vmul.f32 %v1654_v58, %v1654_v58 }
 0x137   : > { %v589_v35 = vadd.f32 -0.0029546, %v579_v27  ;;  %v684_v37 = vmul.f32 %v674_v28, %v1608_v38  ;;  %v510_v39 = vadd.f32 2.7706815e-08, %v500_v29  ;;  %v640_v40 = vadd.f32 -0.00021337405, %v630_v30 }
 0x138   : > { %v603_v41 = vadd.f32 -0.016096033, %v593_v31  ;;  %v574_v51 = vmul.f32 %v564_v34, %v1608_v38  ;;  %v402_v45 = vadd.f32 %v1460_v24, %v1540_v55  ;;  %v495_v52 = vmul.f32 -2.7261424e-10, %v1660_v42 }
 0x139   : > { %v599_v33 = vmul.f32 %v589_v35, %v1593_v47  ;;  %v694_v44 = vadd.f32 -0.014264739, %v684_v37  ;;  %v520_v36 = vmul.f32 %v510_v39, %v1646_v23  ;;  %v650_v49 = vmul.f32 %v640_v40, %v1646_v23 }
 0x13a   : > { %v613_v56 = vmul.f32 %v1566_v50, %v603_v41  ;;  %v584_v59 = vadd.f32 -0.0029546, %v574_v51  ;;  %v625_v53 = vmul.f32 -1.45660715e-05, %v1660_v42  ;;  %v505_v55 = vadd.f32 2.7706815e-08, %v495_v52 }
 0x13b   : > { %v609_v62 = vadd.f32 -0.016096033, %v599_v33  ;;  %1231 = vrcp.f32 %v694_v44  ;;  %v530_v63 = vadd.f32 -2.101024e-06, %v520_v36  ;;  %v660_v0 = vadd.f32 -0.001682827, %v650_v49 }
 0x13c   : > { %v594_v24 = vmul.f32 %v584_v59, %v1608_v38  ;;  %v635_v47 = vadd.f32 -0.00021337405, %v625_v53  ;;  %v1672_v1 = vadd.f32 %v426_v54, %v402_v45  ;;  %v515_v7 = vmul.f32 %v505_v55, %v1660_v42 }
 0x13d   : > { %v1228_v43 = vpop.eup %1227  ;;  %v619_v46 = vmul.f32 %v1578_v61, %v609_v62  ;;  %v540_v50 = vmul.f32 %v530_v63, %v1646_v23  ;;  %v670_v2 = vmul.f32 %v660_v0, %v1646_v23  ;;  %v443_v11 = vmul.f32 0.5, %v1513_v6 }
 0x13e   : > { %v706_v4 = vmul.f32 %v1228_v43, %v613_v56  ;;  %v604_v3 = vadd.f32 -0.016096033, %v594_v24  ;;  %v645_v8 = vmul.f32 %v635_v47, %v1660_v42  ;;  %v449_v15 = vmul.f32 0.5, %v1518_v13 }
 0x13f   : > { %v550_v38 = vadd.f32 -5.6925062e-05, %v540_v50  ;;  %v680_v5 = vadd.f32 -0.0073733293, %v670_v2  ;;  %v525_v61 = vadd.f32 -2.101024e-06, %v515_v7 }
 0x140   : > { %v1230_v12 = vpop.eup %1229  ;;  %v723_v60 = vadd.f32 1.0, %v706_v4  ;;  %v655_v16 = vadd.f32 -0.001682827, %v645_v8  ;;  %v456_v21 = vmul.f32 0.70710677, %v1672_v1  ;;  %v614_v9 = vmul.f32 %v1595_v48, %v604_v3 }
 0x141   : > { %v718_v18 = vmul.f32 %v1230_v12, %v619_v46  ;;  %v560_v19 = vmul.f32 %v550_v38, %v1646_v23  ;;  %v690_v20 = vmul.f32 %v680_v5, %v1646_v23  ;;  %v535_v6 = vmul.f32 %v525_v61, %v1660_v42 }
 0x142   : > { %v733_v22 = vmul.f32 %v723_v60, %v443_v11  ;;  %v665_v57 = vmul.f32 %v655_v16, %v1660_v42  ;;  %v1036_v27 = vclamps-f32 %v456_v21, 4.0  ;;  %v444_v45 = vmul.f32 0.5, %v1529_v32 }
 0x143   : > { %v729_v25 = vadd.f32 1.0, %v718_v18  ;;  %v570_v26 = vadd.f32 -0.00073499064, %v560_v19  ;;  %v700_v13 = vadd.f32 -0.014264739, %v690_v20  ;;  %v450_v7 = vmul.f32 0.5, %v1597_v10 }
 0x144   : > { %743 = vst [vmem:[%s1615_s7 + $0x10] sm:$0xff] %v733_v22  ;;  %v545_v28 = vadd.f32 -5.6925062e-05, %v535_v6  ;;  %v675_v29 = vadd.f32 -0.0073733293, %v665_v57  ;;  %v486_v35 = vmul.f32 %v1036_v27, %v1036_v27  ;;  %v445_v61 = vmul.f32 0.5, %v1636_v14 }
 0x145   : > { %v1232_v30 = vpop.eup %1231  ;;  %v739_v31 = vmul.f32 %v729_v25, %v449_v15  ;;  %v580_v34 = vmul.f32 %v570_v26, %v1646_v23  ;;  %1233 = vrcp.f32 %v700_v13  ;;  %v446_v6 = vmul.f32 0.5, %v1672_v1 }
 0x146   : > { %v708_v37 = vmul.f32 %v1232_v30, %v614_v9  ;;  %v555_v48 = vmul.f32 %v545_v28, %v1660_v42  ;;  %v685_v39 = vmul.f32 %v675_v29, %v1660_v42  ;;  %v496_v41 = vmul.f32 -2.7261424e-10, %v486_v35 }
 0x147   : > { %749 = vst [vmem:[%s1615_s7 + $0x40] sm:$0xff] %v739_v31  ;;  %v590_v40 = vadd.f32 -0.0029546, %v580_v34  ;;  %v626_v51 = vmul.f32 -1.45660715e-05, %v486_v35 }
 0x148   : > { %v724_v33 = vadd.f32 1.0, %v708_v37  ;;  %v565_v44 = vadd.f32 -0.00073499064, %v555_v48  ;;  %v695_v36 = vadd.f32 -0.014264739, %v685_v39 }
 0x149   : > { %v600_v49 = vmul.f32 %v590_v40, %v1646_v23  ;;  %v506_v54 = vadd.f32 2.7706815e-08, %v496_v41  ;;  %v636_v56 = vadd.f32 -0.00021337405, %v626_v51 }
 0x14a   : > { %v734_v59 = vmul.f32 %v724_v33, %v444_v45  ;;  %v575_v52 = vmul.f32 %v565_v44, %v1660_v42  ;;  %1235 = vrcp.f32 %v695_v36 }
 0x14b   : > { %v610_v53 = vadd.f32 -0.016096033, %v600_v49  ;;  %v516_v62 = vmul.f32 %v506_v54, %v486_v35  ;;  %v646_v63 = vmul.f32 %v636_v56, %v486_v35 }
 0x14c   : > { %744 = vst [vmem:[%s1615_s7 + $0x18] sm:$0xff] %v734_v59  ;;  %v585_v0 = vadd.f32 -0.0029546, %v575_v52 }
 0x14d   : > { %v620_v24 = vmul.f32 %v1639_v17, %v610_v53  ;;  %v526_v55 = vadd.f32 -2.101024e-06, %v516_v62  ;;  %v656_v32 = vadd.f32 -0.001682827, %v646_v63 }
 0x14e   : > { %v595_v47 = vmul.f32 %v585_v0, %v1660_v42 }
 0x14f   : > { %v1234_v43 = vpop.eup %1233  ;;  %v536_v46 = vmul.f32 %v526_v55, %v486_v35  ;;  %v666_v23 = vmul.f32 %v656_v32, %v486_v35 }
 0x150   : > { %v720_v50 = vmul.f32 %v1234_v43, %v620_v24  ;;  %v605_v2 = vadd.f32 -0.016096033, %v595_v47 }
 0x151   : > { %v546_v4 = vadd.f32 -5.6925062e-05, %v536_v46  ;;  %v676_v3 = vadd.f32 -0.0073733293, %v666_v23 }
 0x152   : > { %v730_v8 = vadd.f32 1.0, %v720_v50  ;;  %v615_v11 = vmul.f32 %v1654_v58, %v605_v2 }
 0x153   : > { %v556_v38 = vmul.f32 %v546_v4, %v486_v35  ;;  %v686_v17 = vmul.f32 %v676_v3, %v486_v35 }
 0x154   : > { %v1236_v5 = vpop.eup %1235  ;;  %v740_v12 = vmul.f32 %v730_v8, %v450_v7 }
 0x155   : > { %v710_v60 = vmul.f32 %v1236_v5, %v615_v11  ;;  %v566_v42 = vadd.f32 -0.00073499064, %v556_v38  ;;  %v696_v15 = vadd.f32 -0.014264739, %v686_v17 }
 0x156   : > { %750 = vst [vmem:[%s1615_s7 + $0x48] sm:$0xff] %v740_v12 }
 0x157   : > { %v725_v16 = vadd.f32 1.0, %v710_v60  ;;  %v576_v18 = vmul.f32 %v566_v42, %v486_v35  ;;  %1237 = vrcp.f32 %v696_v15 }
 0x159   : > { %v735_v19 = vmul.f32 %v725_v16, %v445_v61  ;;  %v586_v10 = vadd.f32 -0.0029546, %v576_v18 }
 0x15b   : > { %745 = vst [vmem:[%s1615_s7 + $0x20] sm:$0xff] %v735_v19  ;;  %v596_v20 = vmul.f32 %v586_v10, %v486_v35 }
 0x15d   : > { %v606_v21 = vadd.f32 -0.016096033, %v596_v20 }
 0x15f   : > { %v616_v58 = vmul.f32 %v1036_v27, %v606_v21 }
 0x161   : > { %v1238_v22 = vpop.eup %1237 }
 0x162   : > { %v712_v9 = vmul.f32 %v1238_v22, %v616_v58  ;;  %757 = sbr.rel (!%p1383_p4) target bundleno = 422 (0x1a6), region = 40 }
 0x164   : > { %v726_v57 = vadd.f32 1.0, %v712_v9 }
 0x166   : > { %v736_v25 = vmul.f32 %v726_v57, %v446_v6 }
 0x168   : > { %746 = vst [vmem:[%s1615_s7 + $0x28] sm:$0xff] %v736_v25 }
 0x169   : > { %s1777_s8 = smov (!%p760_p8, %s759_s8), 10 }
 0x16a   : > { %s1041_s13 = sshll.u32 %s1777_s8, 7 }
 0x16b   : > { %p1044_p9 = scmp.eq.s32.totalorder %s1041_s13, 0 }
 0x16c   : > { %1239 = sdivrem.u32 (!%p1044_p9), %s1777_s8, 10 }
 0x16d   : > { %768 = sbr.rel (%p1044_p9) target bundleno = 422 (0x1a6), region = 44 }
 0x175   : > { %s1718_s23 = spop.drf %1239 }
 0x176   : > { %p1045_p10 = scmp.le.s32.totalorder %s1718_s23, 0 }
 0x177   : > { %s1770_s18 = smov (!%p1045_p10), %s1712_s12  ;;  %s1771_s30 = smov (!%p1045_p10), %s1615_s7 }
 0x178   : > { %966 = sbr.rel (%p1045_p10) target bundleno = 393 (0x189), region = 123  ;;  %s1727_s14 = smov (!%p1045_p10), 0  }
 0x179   : > { %s1729_s17 = smov (!%p1045_p10), 0  }
 0x17f LB: >> { %v850_v14 = vld [vmem:[%s1305_s30] sm:$0xff]  ;;  %v852_v1 = vld [vmem:[%s1305_s30 + $0x8] sm:$0xff]  ;;  %v854_v26 = vld [vmem:[%s1305_s30 + $0x10] sm:$0xff]  ;;  %s870_s20 = sadd.s32 1, %s1309_s14  ;;  %s844_s17 = sadd.s32 1, %s1313_s17   ;;  %s1313_s17 = sphi %s1729_s17, %s844_s17   ;;  %s1309_s14 = sphi %s1727_s14, %s1772_s14   ;;  %s1305_s30 = sphi %s1771_s30, %s875_s30   ;;  %s1301_s18 = sphi %s1770_s18, %s876_s18  }
 0x180   : >> { %851 = vst [vmem:[%s1301_s18] sm:$0xff] %v850_v14  ;;  %853 = vst [vmem:[%s1301_s18 + $0x8] sm:$0xff] %v852_v1  ;;  %v856_v13 = vld [vmem:[%s1305_s30 + $0x18] sm:$0xff]  ;;  %v858_v27 = vld [vmem:[%s1305_s30 + $0x20] sm:$0xff]  ;;  %p871_p11 = scmp.ge.s32.totalorder %s870_s20, %s1718_s23  ;;  %p843_p12 = scmp.ge.s32.totalorder %s844_s17, %s1718_s23 }
 0x181   : >> { %855 = vst [vmem:[%s1301_s18 + $0x10] sm:$0xff] %v854_v26  ;;  %v860_v28 = vld [vmem:[%s1305_s30 + $0x28] sm:$0xff]  ;;  %857 = vst [vmem:[%s1301_s18 + $0x18] sm:$0xff] %v856_v13  ;;  %v862_v29 = vld [vmem:[%s1305_s30 + $0x30] sm:$0xff] }
 0x182   : >> { %859 = vst [vmem:[%s1301_s18 + $0x20] sm:$0xff] %v858_v27  ;;  %861 = vst [vmem:[%s1301_s18 + $0x28] sm:$0xff] %v860_v28  ;;  %v864_v30 = vld [vmem:[%s1305_s30 + $0x38] sm:$0xff]  ;;  %v866_v31 = vld [vmem:[%s1305_s30 + $0x40] sm:$0xff]  ;;  %s1779_s20 = smov (%p871_p11, %s870_s20), 0  ;;  %846 = sbr.rel (!%p843_p12) target bundleno = 383 (0x17f), region = 129 }
 0x183   : >> { %863 = vst [vmem:[%s1301_s18 + $0x30] sm:$0xff] %v862_v29  ;;  %865 = vst [vmem:[%s1301_s18 + $0x38] sm:$0xff] %v864_v30  ;;  %v868_v34 = vld [vmem:[%s1305_s30 + $0x48] sm:$0xff]  ;;  %s873_s21 = smul.u32 80, %s1779_s20  ;;  %s1772_s14 = smov %s1779_s20 }
 0x184   : >> { %867 = vst [vmem:[%s1301_s18 + $0x40] sm:$0xff] %v866_v31  ;;  %869 = vst [vmem:[%s1301_s18 + $0x48] sm:$0xff] %v868_v34 }
 0x185   : >> { %s875_s30 = scalar_lea.vmem %s1615_s7, %s873_s21 [#allocation2]   ;;  %s876_s18 = scalar_lea.vmem %s1712_s12, %s873_s21  }
 0x189 PF: > { %1241 = sdivrem.u32 %s1777_s8, 10 }
 0x18a   : > { %s1046_s24 = smul.u32 80, %s1718_s23 }
 0x18c   : > { %s881_s25 = scalar_lea.vmem %s1615_s7, %s1046_s24 [#allocation2]   ;;  %s883_s26 = scalar_lea.vmem %s1712_s12, %s1046_s24  }
 0x192   : > { %s1242_s27 = spop.drf %1241 }
 0x193   : > { %p1048_p13 = scmp.le.s32.totalorder %s1242_s27, 0 }
 0x194   : > { %s1315_s28 = smov (!%p1048_p13), %s883_s26   ;;  %s1319_s29 = smov (!%p1048_p13), %s881_s25  }
 0x195   : > { %980 = sbr.rel (%p1048_p13) target bundleno = 422 (0x1a6), region = 134  ;;  %s1323_s5 = smov (!%p1048_p13), 0  }
 0x196   : > { %s1327_s6 = smov (!%p1048_p13), 0  }
 0x19c LB: >> { %v893_v35 = vld [vmem:[%s1321_s29] sm:$0xff]  ;;  %s895_s15 = sadd.s32 1, %s1325_s5  ;;  %s887_s6 = sadd.s32 1, %s1329_s6   ;;  %s1329_s6 = sphi %s1327_s6, %s887_s6   ;;  %s1325_s5 = sphi %s1323_s5, %s1324_s5   ;;  %s1321_s29 = sphi %s1319_s29, %s900_s29   ;;  %s1317_s28 = sphi %s1315_s28, %s901_s28  }
 0x19d   : >> { %894 = vst [vmem:[%s1317_s28] sm:$0xff] %v893_v35  ;;  %p896_p0 = scmp.ge.s32.totalorder %s895_s15, %s1242_s27  ;;  %p886_p1 = scmp.ge.s32.totalorder %s887_s6, %s1242_s27 }
 0x19f   : >> { %s1781_s15 = smov (%p896_p0, %s895_s15), 0  ;;  %889 = sbr.rel (!%p886_p1) target bundleno = 412 (0x19c), region = 140 }
 0x1a0   : >> { %s1049_s7 = sshll.u32 %s1781_s15, 3  ;;  %s1324_s5 = smov %s1781_s15  }
 0x1a1   : >> { %s900_s29 = scalar_lea.vmem %s881_s25, %s1049_s7 [#allocation2]   ;;  %s901_s28 = scalar_lea.vmem %s883_s26, %s1049_s7  }
 0x1a6 PF: > { %p11_p2 = scmp.ge.s32.totalorder %s1373_s19, 4   ;;  %s1773_s15 = smov %s1293_s16 }
 0x1a7   : > { %s1774_s16 = smov %s1381_s22  ;;  %s1775_s17 = smov %s1373_s19 }
 0x1a8   :  { %13 = sbr.rel (!%p11_p2) target bundleno = 2 (0x2), region = 151 }

// kernel: fno2d_forward.18
= control target key start
LH: loop header
LB: loop body
LE: loop exit
PB: predicated region body
PF: predicated region fallthrough
CT: control target
= control target key end

     0   :  { %s1028_s15 = smov 0   ;;  %s1030_s16 = smov 0   ;;  %s1212_s0 = inlined_call_operand.vmem [shape: f32[152,128], index: 0, kind: input, shape index: {}, may-alias: {0,4}]   ;;  %s1213_s1 = inlined_call_operand.vmem [shape: f32[152,128], index: 1, kind: input, shape index: {}]   ;;  %s1214_s2 = inlined_call_operand.vmem [shape: bf16[128,128], index: 2, kind: input, shape index: {}]   ;;  %s1215_s3 = inlined_call_operand.vmem [shape: f32[1,128], index: 3, kind: input, shape index: {}]   ;;  %s1216_s4 = inlined_call_operand.vmem [shape: f32[152,128], index: 4, kind: output, shape index: {}, may-alias: {0,4}]  }
   0x1   :  { %s1032_s17 = smov 0  }
   0x2 LB: > { %s1041_s18 = sadd.s32 4294967295, %s967_s17   ;;  %s1043_s19 = sadd.s32 1, %s967_s17   ;;  %s967_s17 = sphi %s1032_s17, %s1223_s17   ;;  %s963_s16 = sphi %s1030_s16, %s1222_s16   ;;  %s959_s15 = sphi %s1028_s15, %s1221_s15  }
   0x3   : > { %s112_s20 = ssub.s32 %s967_s17, %s1043_s19  ;;  %s115_s21 = sadd.s32 1, %s963_s16 }
   0x4   : > { %p113_p0 = scmp.eq.s32.totalorder %s112_s20, 0  ;;  %p125_p1 = scmp.ne.s32.totalorder %s963_s16, %s959_s15 }
   0x5   : > { %p126_p2 = scmp.eq.s32.totalorder %s1041_s18, 1  ;;  %p719_p3 = scmp.ge.s32.totalorder %s967_s17, 1 }
   0x6   : > { %s1051_s22 = scalar_select %p113_p0, %s963_s16, %s115_s21  }
   0x7   : > { %p1053_p4 = por %p126_p2, %p125_p1  ;;  %p190_p5 = scmp.lt.s32.totalorder %s967_s17, 3 }
   0x9   : > { %p191_p6 = pnand %p719_p3, %p190_p5 }
   0xa   : > { %v901_v0 = vld [vmem:[%s1214_s2] sm:$0xff] (!%p191_p6)   ;;  %v1001_v1 = vmov (!%p191_p6), 0.0   ;;  %v902_v2 = vld [vmem:[%s1214_s2 + $0x8] sm:$0xff] (!%p191_p6)   ;;  %vm1002_vm0 = vmmov (!%p191_p6), 0   ;;  %v903_v3 = vld [vmem:[%s1214_s2 + $0x10] sm:$0xff] (!%p191_p6)   ;;  %s1077_s30 = smul.u32 (!%p191_p6), 10, %s1041_s18 }
   0xb   : > { %194 = sbr.rel (%p191_p6) target bundleno = 339 (0x153), region = 36  ;;  %757 = vmatprep.subr.bf16.mxu0 (!%p191_p6), %v1001_v1  ;;  %793 = vmatprep.subr.bf16.mxu1 (!%p191_p6), %v1001_v1  ;;  %v904_v4 = vld [vmem:[%s1214_s2 + $0x18] sm:$0xff] (!%p191_p6)   ;;  %v905_v5 = vld [vmem:[%s1214_s2 + $0x20] sm:$0xff] (!%p191_p6)   ;;  %v906_v6 = vld [vmem:[%s1214_s2 + $0x28] sm:$0xff] (!%p191_p6)   ;;  %s225_s26 = sand.u32 (!%p191_p6), 1, %s959_s15  }
   0xc   : > { %758 = vmatpush3.bf16.msra.mxu0 (!%p191_p6), %v901_v0  ;;  %801 = vmatpush3.bf16.msra.mxu1 (!%p191_p6), %v901_v0  ;;  %p233_p7 = scmp.lt.s32.totalorder (!%p191_p6), %s1077_s30, 18  ;;  %v907_v7 = vld [vmem:[%s1214_s2 + $0x30] sm:$0xff] (!%p191_p6)   ;;  %v908_v8 = vld [vmem:[%s1214_s2 + $0x38] sm:$0xff] (!%p191_p6)   ;;  %s809_s5 = smul.u32 (!%p191_p6), 80, %s225_s26  ;;  %v722_v24 = vld [vmem:[%s1215_s3] ss:$0 sm:$0xff] (!%p191_p6) }
   0xd   : > { %759 = vmatprep.subr.bf16.mxu0 (!%p191_p6), %v1001_v1  ;;  %794 = vmatprep.subr.bf16.mxu1 (!%p191_p6), %v1001_v1 }
   0xe   : > { %773 = vmatprep.mubr.msk.bf16.mxu0 (!%p191_p6), %vm1002_vm0, %v1001_v1  ;;  %785 = vmatprep.mubr.msk.bf16.mxu1 (!%p191_p6), %vm1002_vm0, %v1001_v1  ;;  %s1135_s15 = scalar_lea.vmem (!%p191_p6), [#allocation2], %s809_s5  }
  0x10   : > { %760 = vmatpush3.bf16.msra.mxu0 (!%p191_p6), %v902_v2  ;;  %802 = vmatpush3.bf16.msra.mxu1 (!%p191_p6), %v902_v2 }
  0x11   : > { %761 = vmatprep.subr.bf16.mxu0 (!%p191_p6), %v1001_v1  ;;  %795 = vmatprep.subr.bf16.mxu1 (!%p191_p6), %v1001_v1 }
  0x12   : > { %s1091_s9 = scalar_select %p233_p7, %s1077_s30, 18 }
  0x13   : > { %s459_s8 = ssub.s32 (%p1053_p4), 19, %s1077_s30 }
  0x14   : > { %762 = vmatpush3.bf16.msra.mxu0 %v903_v3  ;;  %803 = vmatpush3.bf16.msra.mxu1 %v903_v3  ;;  %s720_s12 = sshll.u32 %s1091_s9, 3  ;;  %s743_s9 = smul.u32 (%p1053_p4), 80, %s1041_s18 }
  0x15   : > { %763 = vmatprep.subr.bf16.mxu0 %v1001_v1  ;;  %796 = vmatprep.subr.bf16.mxu1 %v1001_v1  ;;  %s236_s21 = scalar_lea.vmem %s1212_s0, %s720_s12  ;;  %s1126_s29 = scalar_lea.vmem %s1213_s1, %s720_s12 }
  0x16   : > { %v262_v9 = vld [vmem:[%s236_s21] sm:$0xff]  ;;  %v263_v10 = vld [vmem:[%s236_s21 + $0x8] sm:$0xff]  ;;  %v268_v11 = vld [vmem:[%s236_s21 + $0x30] sm:$0xff]  ;;  %p460_p8 = scmp.lt.s32.totalorder (%p1053_p4), %s459_s8, 10  ;;  %s1160_s12 = scalar_lea.vmem (%p1053_p4), %s1216_s4, %s743_s9  }
  0x17   : > { %v269_v12 = vld [vmem:[%s236_s21 + $0x38] sm:$0xff]  ;;  %v272_v13 = vpack.c.bf16 %v263_v10, %v262_v9  ;;  %v264_v15 = vld [vmem:[%s236_s21 + $0x10] sm:$0xff]  ;;  %v270_v17 = vld [vmem:[%s236_s21 + $0x40] sm:$0xff] }
  0x18   : > { %764 = vmatpush3.bf16.msra.mxu0 %v904_v4  ;;  %804 = vmatpush3.bf16.msra.mxu1 %v904_v4  ;;  %v275_v14 = vpack.c.bf16 %v269_v12, %v268_v11  ;;  %v265_v16 = vld [vmem:[%s236_s21 + $0x18] sm:$0xff]  ;;  %v271_v18 = vld [vmem:[%s236_s21 + $0x48] sm:$0xff]  ;;  %v266_v21 = vld [vmem:[%s236_s21 + $0x20] sm:$0xff] }
  0x19   : > { %765 = vmatprep.subr.bf16.mxu0 %v1001_v1  ;;  %797 = vmatprep.subr.bf16.mxu1 %v1001_v1  ;;  %v273_v19 = vpack.c.bf16 %v265_v16, %v264_v15  ;;  %v276_v20 = vpack.c.bf16 %v271_v18, %v270_v17  ;;  %v267_v22 = vld [vmem:[%s236_s21 + $0x28] sm:$0xff]  ;;  %v421_v26 = vld [vmem:[%s1126_s29] sm:$0xff]  ;;  %v427_v28 = vld [vmem:[%s1126_s29 + $0x30] sm:$0xff] }
  0x1a   : > { %v274_v23 = vpack.c.bf16 %v267_v22, %v266_v21  ;;  %v422_v34 = vld [vmem:[%s1126_s29 + $0x8] sm:$0xff]  ;;  %v428_v36 = vld [vmem:[%s1126_s29 + $0x38] sm:$0xff]  ;;  %v423_v46 = vld [vmem:[%s1126_s29 + $0x10] sm:$0xff] }
  0x1b   : > { %v429_v48 = vld [vmem:[%s1126_s29 + $0x40] sm:$0xff]  ;;  %v424_v54 = vld [vmem:[%s1126_s29 + $0x18] sm:$0xff]  ;;  %v430_v56 = vld [vmem:[%s1126_s29 + $0x48] sm:$0xff] }
  0x1c   : > { %766 = vmatpush3.bf16.msra.mxu0 %v905_v5  ;;  %805 = vmatpush3.bf16.msra.mxu1 %v905_v5  ;;  %v425_v2 = vld [vmem:[%s1126_s29 + $0x20] sm:$0xff] }
  0x1d   : > { %767 = vmatprep.subr.bf16.mxu0 %v1001_v1  ;;  %798 = vmatprep.subr.bf16.mxu1 %v1001_v1 }
  0x20   : > { %768 = vmatpush3.bf16.msra.mxu0 %v906_v6  ;;  %806 = vmatpush3.bf16.msra.mxu1 %v906_v6  ;;  %v426_v6 = vld [vmem:[%s1126_s29 + $0x28] sm:$0xff] }
  0x21   : > { %769 = vmatprep.subr.bf16.mxu0 %v1001_v1  ;;  %799 = vmatprep.subr.bf16.mxu1 %v1001_v1 }
  0x24   : > { %770 = vmatpush3.bf16.msra.mxu0 %v907_v7  ;;  %807 = vmatpush3.bf16.msra.mxu1 %v907_v7 }
  0x25   : > { %771 = vmatprep.subr.bf16.mxu0 %v1001_v1  ;;  %800 = vmatprep.subr.bf16.mxu1 %v1001_v1 }
  0x28   : > { %772 = vmatpush3.bf16.msra.mxu0 %v908_v8  ;;  %808 = vmatpush3.bf16.msra.mxu1 %v908_v8 }
  0x2b   : > { %774 = vmatmul.mubr.bf16.vlgmr.msra.gmra.mrb[0].mxu0 %v272_v13  ;;  %786 = vmatmul.mubr.bf16.vlgmr.msra.gmra.mrb[0].mxu1 %v275_v14 }
  0x2c   : > { %777 = vmatprep.mubr.msk.bf16.mxu0 %vm1002_vm0, %v1001_v1  ;;  %789 = vmatprep.mubr.msk.bf16.mxu1 %vm1002_vm0, %v1001_v1 }
  0x33   : > { %778 = vmatmul.mubr.bf16.gmra.mrb[4].mxu0 %v273_v19  ;;  %790 = vmatmul.mubr.bf16.gmra.mrb[4].mxu1 %v276_v20 }
  0x34   : > { %781 = vmatprep.mubr.msk.bf16.mxu0 %vm1002_vm0, %v1001_v1 }
  0x3b   : > { %782 = vmatmul.mubr.bf16.gmra.mrb[8].mxu0 %v274_v23 }
  0xfe   : > { %v382_v25 = vpop.f32.mrb[0].mxu0  ;;  %v406_v27 = vpop.f32.mrb[0].mxu1 }
  0xff   : > { %v383_v29 = vadd.f32 %v722_v24, %v382_v25  ;;  %v775_v30 = vpop.f32.mrb[1].mxu0  ;;  %v407_v31 = vadd.f32 %v722_v24, %v406_v27  ;;  %v787_v32 = vpop.f32.mrb[1].mxu1 }
 0x100   : > { %v385_v33 = vpop.f32.mrb[2].mxu0  ;;  %v409_v35 = vpop.f32.mrb[2].mxu1 }
 0x101   : > { %v431_v37 = vadd.f32 %v421_v26, %v383_v29  ;;  %v386_v38 = vadd.f32 %v722_v24, %v385_v33  ;;  %v776_v39 = vpop.f32.mrb[3].mxu0  ;;  %v437_v40 = vadd.f32 %v427_v28, %v407_v31  ;;  %v410_v41 = vadd.f32 %v722_v24, %v409_v35  ;;  %v788_v42 = vpop.f32.mrb[3].mxu1 }
 0x103   : > { %441 = vst [vmem:[%s1135_s15] sm:$0xff] %v431_v37  ;;  %v432_v43 = vadd.f32 %v422_v34, %v386_v38  ;;  %447 = vst [vmem:[%s1135_s15 + $0x30] sm:$0xff] %v437_v40  ;;  %v438_v44 = vadd.f32 %v428_v36, %v410_v41 }
 0x105   : > { %442 = vst [vmem:[%s1135_s15 + $0x8] sm:$0xff] %v432_v43  ;;  %448 = vst [vmem:[%s1135_s15 + $0x38] sm:$0xff] %v438_v44 }
 0x106   : > { %v390_v45 = vpop.f32.mrb[4].mxu0  ;;  %v414_v47 = vpop.f32.mrb[4].mxu1 }
 0x107   : > { %v391_v49 = vadd.f32 %v722_v24, %v390_v45  ;;  %v779_v50 = vpop.f32.mrb[5].mxu0  ;;  %v415_v51 = vadd.f32 %v722_v24, %v414_v47  ;;  %v791_v52 = vpop.f32.mrb[5].mxu1 }
 0x108   : > { %v393_v53 = vpop.f32.mrb[6].mxu0  ;;  %v417_v55 = vpop.f32.mrb[6].mxu1 }
 0x109   : > { %v433_v57 = vadd.f32 %v423_v46, %v391_v49  ;;  %v394_v58 = vadd.f32 %v722_v24, %v393_v53  ;;  %v780_v59 = vpop.f32.mrb[7].mxu0  ;;  %v439_v60 = vadd.f32 %v429_v48, %v415_v51  ;;  %v418_v61 = vadd.f32 %v722_v24, %v417_v55  ;;  %v792_v62 = vpop.f32.mrb[7].mxu1 }
 0x10b   : > { %443 = vst [vmem:[%s1135_s15 + $0x10] sm:$0xff] %v433_v57  ;;  %v434_v63 = vadd.f32 %v424_v54, %v394_v58  ;;  %449 = vst [vmem:[%s1135_s15 + $0x40] sm:$0xff] %v439_v60  ;;  %v440_v0 = vadd.f32 %v430_v56, %v418_v61 }
 0x10d   : > { %444 = vst [vmem:[%s1135_s15 + $0x18] sm:$0xff] %v434_v63  ;;  %450 = vst [vmem:[%s1135_s15 + $0x48] sm:$0xff] %v440_v0 }
 0x10e   : > { %v398_v1 = vpop.f32.mrb[8].mxu0 }
 0x10f   : > { %v399_v3 = vadd.f32 %v722_v24, %v398_v1  ;;  %v783_v4 = vpop.f32.mrb[9].mxu0  ;;  %457 = sbr.rel (!%p1053_p4) target bundleno = 339 (0x153), region = 40 }
 0x110   : > { %v401_v5 = vpop.f32.mrb[10].mxu0 }
 0x111   : > { %v435_v7 = vadd.f32 %v425_v2, %v399_v3  ;;  %v402_v8 = vadd.f32 %v722_v24, %v401_v5  ;;  %v784_v9 = vpop.f32.mrb[11].mxu0 }
 0x113   : > { %445 = vst [vmem:[%s1135_s15 + $0x20] sm:$0xff] %v435_v7  ;;  %v436_v10 = vadd.f32 %v426_v6, %v402_v8 }
 0x115   : > { %446 = vst [vmem:[%s1135_s15 + $0x28] sm:$0xff] %v436_v10 }
 0x116   : > { %s1225_s8 = smov (!%p460_p8, %s459_s8), 10 }
 0x117   : > { %s731_s13 = sshll.u32 %s1225_s8, 7 }
 0x118   : > { %p734_p9 = scmp.eq.s32.totalorder %s731_s13, 0 }
 0x119   : > { %909 = sdivrem.u32 (!%p734_p9), %s1225_s8, 10 }
 0x11a   : > { %468 = sbr.rel (%p734_p9) target bundleno = 339 (0x153), region = 44 }
 0x122   : > { %s1166_s23 = spop.drf %909 }
 0x123   : > { %p735_p10 = scmp.le.s32.totalorder %s1166_s23, 0 }
 0x124   : > { %s1218_s18 = smov (!%p735_p10), %s1160_s12  ;;  %s1219_s30 = smov (!%p735_p10), %s1135_s15 }
 0x125   : > { %666 = sbr.rel (%p735_p10) target bundleno = 310 (0x136), region = 123  ;;  %s1175_s14 = smov (!%p735_p10), 0  }
 0x126   : > { %s1177_s17 = smov (!%p735_p10), 0  }
 0x12c LB: >> { %v550_v11 = vld [vmem:[%s975_s30] sm:$0xff]  ;;  %v552_v12 = vld [vmem:[%s975_s30 + $0x8] sm:$0xff]  ;;  %v554_v13 = vld [vmem:[%s975_s30 + $0x10] sm:$0xff]  ;;  %s570_s20 = sadd.s32 1, %s979_s14  ;;  %s544_s17 = sadd.s32 1, %s983_s17   ;;  %s983_s17 = sphi %s1177_s17, %s544_s17   ;;  %s979_s14 = sphi %s1175_s14, %s1220_s14   ;;  %s975_s30 = sphi %s1219_s30, %s575_s30   ;;  %s971_s18 = sphi %s1218_s18, %s576_s18  }
 0x12d   : >> { %551 = vst [vmem:[%s971_s18] sm:$0xff] %v550_v11  ;;  %553 = vst [vmem:[%s971_s18 + $0x8] sm:$0xff] %v552_v12  ;;  %v556_v14 = vld [vmem:[%s975_s30 + $0x18] sm:$0xff]  ;;  %v558_v15 = vld [vmem:[%s975_s30 + $0x20] sm:$0xff]  ;;  %p571_p11 = scmp.ge.s32.totalorder %s570_s20, %s1166_s23  ;;  %p543_p12 = scmp.ge.s32.totalorder %s544_s17, %s1166_s23 }
 0x12e   : >> { %555 = vst [vmem:[%s971_s18 + $0x10] sm:$0xff] %v554_v13  ;;  %v560_v16 = vld [vmem:[%s975_s30 + $0x28] sm:$0xff]  ;;  %557 = vst [vmem:[%s971_s18 + $0x18] sm:$0xff] %v556_v14  ;;  %v562_v17 = vld [vmem:[%s975_s30 + $0x30] sm:$0xff] }
 0x12f   : >> { %559 = vst [vmem:[%s971_s18 + $0x20] sm:$0xff] %v558_v15  ;;  %561 = vst [vmem:[%s971_s18 + $0x28] sm:$0xff] %v560_v16  ;;  %v564_v18 = vld [vmem:[%s975_s30 + $0x38] sm:$0xff]  ;;  %v566_v19 = vld [vmem:[%s975_s30 + $0x40] sm:$0xff]  ;;  %s1227_s20 = smov (%p571_p11, %s570_s20), 0  ;;  %546 = sbr.rel (!%p543_p12) target bundleno = 300 (0x12c), region = 129 }
 0x130   : >> { %563 = vst [vmem:[%s971_s18 + $0x30] sm:$0xff] %v562_v17  ;;  %565 = vst [vmem:[%s971_s18 + $0x38] sm:$0xff] %v564_v18  ;;  %v568_v20 = vld [vmem:[%s975_s30 + $0x48] sm:$0xff]  ;;  %s573_s21 = smul.u32 80, %s1227_s20  ;;  %s1220_s14 = smov %s1227_s20 }
 0x131   : >> { %567 = vst [vmem:[%s971_s18 + $0x40] sm:$0xff] %v566_v19  ;;  %569 = vst [vmem:[%s971_s18 + $0x48] sm:$0xff] %v568_v20 }
 0x132   : >> { %s575_s30 = scalar_lea.vmem %s1135_s15, %s573_s21 [#allocation2]   ;;  %s576_s18 = scalar_lea.vmem %s1160_s12, %s573_s21  }
 0x136 PF: > { %911 = sdivrem.u32 %s1225_s8, 10 }
 0x137   : > { %s736_s24 = smul.u32 80, %s1166_s23 }
 0x139   : > { %s581_s25 = scalar_lea.vmem %s1135_s15, %s736_s24 [#allocation2]   ;;  %s583_s26 = scalar_lea.vmem %s1160_s12, %s736_s24  }
 0x13f   : > { %s912_s27 = spop.drf %911 }
 0x140   : > { %p738_p13 = scmp.le.s32.totalorder %s912_s27, 0 }
 0x141   : > { %s985_s28 = smov (!%p738_p13), %s583_s26   ;;  %s989_s29 = smov (!%p738_p13), %s581_s25  }
 0x142   : > { %680 = sbr.rel (%p738_p13) target bundleno = 339 (0x153), region = 134  ;;  %s993_s5 = smov (!%p738_p13), 0  }
 0x143   : > { %s997_s6 = smov (!%p738_p13), 0  }
 0x149 LB: >> { %v593_v21 = vld [vmem:[%s991_s29] sm:$0xff]  ;;  %s595_s7 = sadd.s32 1, %s995_s5  ;;  %s587_s6 = sadd.s32 1, %s999_s6   ;;  %s999_s6 = sphi %s997_s6, %s587_s6   ;;  %s995_s5 = sphi %s993_s5, %s994_s5   ;;  %s991_s29 = sphi %s989_s29, %s600_s29   ;;  %s987_s28 = sphi %s985_s28, %s601_s28  }
 0x14a   : >> { %594 = vst [vmem:[%s987_s28] sm:$0xff] %v593_v21  ;;  %p596_p0 = scmp.ge.s32.totalorder %s595_s7, %s912_s27  ;;  %p586_p1 = scmp.ge.s32.totalorder %s587_s6, %s912_s27 }
 0x14c   : >> { %s1229_s7 = smov (%p596_p0, %s595_s7), 0  ;;  %589 = sbr.rel (!%p586_p1) target bundleno = 329 (0x149), region = 140 }
 0x14d   : >> { %s739_s15 = sshll.u32 %s1229_s7, 3  ;;  %s994_s5 = smov %s1229_s7  }
 0x14e   : >> { %s600_s29 = scalar_lea.vmem %s581_s25, %s739_s15 [#allocation2]   ;;  %s601_s28 = scalar_lea.vmem %s583_s26, %s739_s15  }
 0x153 PF: > { %p11_p2 = scmp.ge.s32.totalorder %s1043_s19, 4   ;;  %s1221_s15 = smov %s963_s16 }
 0x154   : > { %s1222_s16 = smov %s1051_s22  ;;  %s1223_s17 = smov %s1043_s19 }
 0x155   :  { %13 = sbr.rel (!%p11_p2) target bundleno = 2 (0x2), region = 151 }

// kernel: fno2d_forward.19
= control target key start
LH: loop header
LB: loop body
LE: loop exit
PB: predicated region body
PF: predicated region fallthrough
CT: control target
= control target key end

     0   :  { %s2415_s18 = smov 0   ;;  %s3646_s0 = inlined_call_operand.vmem [shape: f32[128,128], index: 0, kind: input, shape index: {}]   ;;  %s3647_s1 = inlined_call_operand.vmem [shape: bf16[128,512], index: 1, kind: input, shape index: {}]   ;;  %s3648_s2 = inlined_call_operand.vmem [shape: f32[1,512], index: 2, kind: input, shape index: {}]   ;;  %s3649_s3 = inlined_call_operand.vmem [shape: bf16[512,4], index: 3, kind: input, shape index: {}]   ;;  %s3650_s4 = inlined_call_operand.vmem [shape: f32[1,4], index: 4, kind: input, shape index: {}]   ;;  %s3651_s5 = inlined_call_operand.vmem [shape: f32[128,4], index: 5, kind: output, shape index: {}]  }
   0x1 LB: > { %s2035_s19 = sadd.s32 4294967295, %s2382_s18   ;;  %p2039_p0 = scmp.ge.s32.totalorder %s2382_s18, 1  ;;  %s2382_s18 = sphi %s2415_s18, %s15_s18  }
   0x2   : > { %p188_p1 = scmp.lt.s32.totalorder %s2382_s18, 3 }
   0x4   : > { %p189_p2 = pnand %p2039_p0, %p188_p1 }
   0x6   : > { %192 = sbr.rel (%p189_p2) target bundleno = 740 (0x2e4), region = 40 }
   0xd   : > { %v2232_v0 = vld [vmem:[%s3647_s1 + $0x4] ss:$16 sps:$4 sm:$0xff]   ;;  %v2234_v1 = vld [vmem:[%s3647_s1 + $0xc] ss:$16 sps:$4 sm:$0xff]   ;;  %v2384_v2 = vmov 0   ;;  %s2040_s25 = sshll.u32 %s2035_s19, 3  ;;  %v275_v46 = vlaneseq }
   0xe   : > { %487 = vmatprep.mubr.bf16.mxu0 %v2384_v2  ;;  %560 = vmatprep.mubr.bf16.mxu1 %v2384_v2  ;;  %v2236_v3 = vld [vmem:[%s3647_s1] ss:$16 sps:$4 sm:$0xff]   ;;  %v2237_v4 = vld [vmem:[%s3647_s1 + $0x8] ss:$16 sps:$4 sm:$0xff]   ;;  %v2238_v5 = vld [vmem:[%s3647_s1 + $0x24] ss:$16 sps:$4 sm:$0xff]  }
   0xf   : > { %455 = vmatprep.subr.bf16.mxu0 %v2232_v0  ;;  %528 = vmatprep.subr.bf16.mxu1 %v2234_v1  ;;  %v2240_v6 = vld [vmem:[%s3647_s1 + $0x2c] ss:$16 sps:$4 sm:$0xff]   ;;  %v2242_v7 = vld [vmem:[%s3647_s1 + $0x20] ss:$16 sps:$4 sm:$0xff]   ;;  %v2243_v8 = vld [vmem:[%s3647_s1 + $0x28] ss:$16 sps:$4 sm:$0xff]  }
  0x10   : > { %456 = vmatpush1.bf16.msra.mxu0 %v2236_v3  ;;  %529 = vmatpush1.bf16.msra.mxu1 %v2237_v4  ;;  %v2244_v9 = vld [vmem:[%s3647_s1 + $0x44] ss:$16 sps:$4 sm:$0xff]   ;;  %v2246_v10 = vld [vmem:[%s3647_s1 + $0x4c] ss:$16 sps:$4 sm:$0xff]   ;;  %v2248_v11 = vld [vmem:[%s3647_s1 + $0x40] ss:$16 sps:$4 sm:$0xff]  }
  0x11   : > { %457 = vmatprep.subr.bf16.mxu0 %v2238_v5  ;;  %530 = vmatprep.subr.bf16.mxu1 %v2240_v6  ;;  %v2249_v12 = vld [vmem:[%s3647_s1 + $0x48] ss:$16 sps:$4 sm:$0xff]   ;;  %v2250_v13 = vld [vmem:[%s3647_s1 + $0x64] ss:$16 sps:$4 sm:$0xff]   ;;  %v2252_v14 = vld [vmem:[%s3647_s1 + $0x6c] ss:$16 sps:$4 sm:$0xff]  }
  0x12   : > { %v2254_v15 = vld [vmem:[%s3647_s1 + $0x60] ss:$16 sps:$4 sm:$0xff]   ;;  %v2255_v16 = vld [vmem:[%s3647_s1 + $0x68] ss:$16 sps:$4 sm:$0xff]   ;;  %v2256_v17 = vld [vmem:[%s3647_s1 + $0x84] ss:$16 sps:$4 sm:$0xff]  }
  0x13   : > { %p217_p3 = scmp.lt.s32.totalorder %s2040_s25, 15  ;;  %v2258_v18 = vld [vmem:[%s3647_s1 + $0x8c] ss:$16 sps:$4 sm:$0xff]   ;;  %v2260_v19 = vld [vmem:[%s3647_s1 + $0x80] ss:$16 sps:$4 sm:$0xff]   ;;  %v276_v48 = vshrl.u32 %v275_v46, 7 }
  0x14   : > { %458 = vmatpush1.bf16.msra.mxu0 %v2242_v7  ;;  %531 = vmatpush1.bf16.msra.mxu1 %v2243_v8  ;;  %v2261_v20 = vld [vmem:[%s3647_s1 + $0x88] ss:$16 sps:$4 sm:$0xff]   ;;  %v2262_v21 = vld [vmem:[%s3647_s1 + $0xa4] ss:$16 sps:$4 sm:$0xff]   ;;  %v2264_v22 = vld [vmem:[%s3647_s1 + $0xac] ss:$16 sps:$4 sm:$0xff]  }
  0x15   : > { %459 = vmatprep.subr.bf16.mxu0 %v2244_v9  ;;  %532 = vmatprep.subr.bf16.mxu1 %v2246_v10  ;;  %s3692_s25 = smov (!%p217_p3, %s2040_s25), 15  ;;  %v2266_v23 = vld [vmem:[%s3647_s1 + $0xa0] ss:$16 sps:$4 sm:$0xff]   ;;  %v2267_v24 = vld [vmem:[%s3647_s1 + $0xa8] ss:$16 sps:$4 sm:$0xff]   ;;  %v277_v50 = vsub.s32 0, %v276_v48 }
  0x16   : > { %s2041_s22 = sshll.u32 %s3692_s25, 3  ;;  %v2268_v25 = vld [vmem:[%s3647_s1 + $0xc4] ss:$16 sps:$4 sm:$0xff]   ;;  %v2270_v26 = vld [vmem:[%s3647_s1 + $0xcc] ss:$16 sps:$4 sm:$0xff]   ;;  %v285_v51 = vsub.s32 2, %v276_v48 }
  0x17   : > { %v2272_v27 = vld [vmem:[%s3647_s1 + $0xc0] ss:$16 sps:$4 sm:$0xff]   ;;  %v2273_v28 = vld [vmem:[%s3647_s1 + $0xc8] ss:$16 sps:$4 sm:$0xff]   ;;  %v2274_v29 = vld [vmem:[%s3647_s1 + $0xe4] ss:$16 sps:$4 sm:$0xff]   ;;  %s2522_s10 = scalar_lea.vmem %s3646_s0, %s2041_s22  ;;  %s3619_s24 = scalar_lea.vmem %s3651_s5, %s2041_s22 }
  0x18   : > { %460 = vmatpush1.bf16.msra.mxu0 %v2248_v11  ;;  %533 = vmatpush1.bf16.msra.mxu1 %v2249_v12  ;;  %v2276_v30 = vld [vmem:[%s3647_s1 + $0xec] ss:$16 sps:$4 sm:$0xff]   ;;  %v2278_v31 = vld [vmem:[%s3647_s1 + $0xe0] ss:$16 sps:$4 sm:$0xff]   ;;  %v2279_v32 = vld [vmem:[%s3647_s1 + $0xe8] ss:$16 sps:$4 sm:$0xff]  }
  0x19   : > { %461 = vmatprep.subr.bf16.mxu0 %v2250_v13  ;;  %534 = vmatprep.subr.bf16.mxu1 %v2252_v14  ;;  %v229_v33 = vld [vmem:[%s2522_s10] sm:$0xff]  ;;  %v230_v34 = vld [vmem:[%s2522_s10 + $0x8] sm:$0xff]  ;;  %v231_v36 = vld [vmem:[%s2522_s10 + $0x10] sm:$0xff]  ;;  %v281_v53 = vsub.s32 1, %v276_v48  ;;  %v289_v54 = vsub.s32 3, %v276_v48  ;;  %vm1970_vm0 = vcmask 31744  }
  0x1a   : > { %v237_v35 = vpack.c.bf16 %v230_v34, %v229_v33  ;;  %v232_v37 = vld [vmem:[%s2522_s10 + $0x18] sm:$0xff]  ;;  %v233_v39 = vld [vmem:[%s2522_s10 + $0x20] sm:$0xff]  ;;  %v234_v40 = vld [vmem:[%s2522_s10 + $0x28] sm:$0xff] }
  0x1b   : > { %v238_v38 = vpack.c.bf16 %v232_v37, %v231_v36  ;;  %v239_v41 = vpack.c.bf16 %v234_v40, %v233_v39  ;;  %v235_v42 = vld [vmem:[%s2522_s10 + $0x30] sm:$0xff]  ;;  %v236_v43 = vld [vmem:[%s2522_s10 + $0x38] sm:$0xff]  ;;  %v2280_v45 = vld [vmem:[%s3649_s3 + $0x40] sm:$0xff]  }
  0x1c   : > { %462 = vmatpush1.bf16.msra.mxu0 %v2254_v15  ;;  %535 = vmatpush1.bf16.msra.mxu1 %v2255_v16  ;;  %v240_v44 = vpack.c.bf16 %v236_v43, %v235_v42  ;;  %v2282_v47 = vld [vmem:[%s3649_s3 + $0xc0] sm:$0xff]  }
  0x1d   : > { %463 = vmatprep.subr.bf16.mxu0 %v2256_v17  ;;  %536 = vmatprep.subr.bf16.mxu1 %v2258_v18  ;;  %v2281_v49 = vld [vmem:[%s3649_s3] sm:$0xff]  }
  0x1e   : > { %v273_v52 = vld [vmem:[%s3648_s2] sm:$0xf] }
  0x1f   : > { %v2559_v55 = vrot.slane %v273_v52, %v277_v50  ;;  %v2561_v56 = vrot.slane %v273_v52, %v285_v51  ;;  %v2563_v57 = vrot.slane %v273_v52, %v281_v53  ;;  %v2565_v58 = vrot.slane %v273_v52, %v289_v54  ;;  %v2283_v13 = vld [vmem:[%s3649_s3 + $0x80] sm:$0xff]  }
  0x20   : > { %464 = vmatpush1.bf16.msra.mxu0 %v2260_v19  ;;  %537 = vmatpush1.bf16.msra.mxu1 %v2261_v20 }
  0x21   : > { %465 = vmatprep.subr.bf16.mxu0 %v2262_v21  ;;  %538 = vmatprep.subr.bf16.mxu1 %v2264_v22 }
  0x24   : > { %466 = vmatpush1.bf16.msra.mxu0 %v2266_v23  ;;  %539 = vmatpush1.bf16.msra.mxu1 %v2267_v24 }
  0x25   : > { %467 = vmatprep.subr.bf16.mxu0 %v2268_v25  ;;  %540 = vmatprep.subr.bf16.mxu1 %v2270_v26 }
  0x28   : > { %468 = vmatpush1.bf16.msra.mxu0 %v2272_v27  ;;  %541 = vmatpush1.bf16.msra.mxu1 %v2273_v28 }
  0x29   : > { %469 = vmatprep.subr.bf16.mxu0 %v2274_v29  ;;  %542 = vmatprep.subr.bf16.mxu1 %v2276_v30 }
  0x2c   : > { %470 = vmatpush1.bf16.msra.mxu0 %v2278_v31  ;;  %543 = vmatpush1.bf16.msra.mxu1 %v2279_v32 }
  0x2d   : > { %2143 = vmatprep.subr.bf16.mxu0 %v2280_v45  ;;  %2183 = vmatprep.subr.bf16.mxu1 %v2282_v47 }
  0x2f   : > { %488 = vmatmul.mubr.bf16.vlgmr.msra.gmra.mrb[0].mxu0 %v237_v35  ;;  %561 = vmatmul.mubr.bf16.vlgmr.msra.gmra.mrb[0].mxu1 %v237_v35 }
  0x30   : > { %497 = vmatprep.mubr.bf16.mxu0 %v2384_v2  ;;  %570 = vmatprep.mubr.bf16.mxu1 %v2384_v2 }
  0x31   : > { %2144 = vmatpush3.bf16.msra.mxu0 %v2281_v49  ;;  %2184 = vmatpush3.bf16.msra.mxu1 %v2283_v13 }
  0x37   : > { %498 = vmatmul.mubr.bf16.gmra.mrb[4].mxu0 %v238_v38  ;;  %571 = vmatmul.mubr.bf16.gmra.mrb[4].mxu1 %v238_v38 }
  0x38   : > { %507 = vmatprep.mubr.bf16.mxu0 %v2384_v2  ;;  %580 = vmatprep.mubr.bf16.mxu1 %v2384_v2 }
  0x3f   : > { %508 = vmatmul.mubr.bf16.gmra.mrb[8].mxu0 %v239_v41  ;;  %581 = vmatmul.mubr.bf16.gmra.mrb[8].mxu1 %v239_v41 }
  0x40   : > { %517 = vmatprep.mubr.bf16.mxu0 %v2384_v2  ;;  %590 = vmatprep.mubr.bf16.mxu1 %v2384_v2 }
  0x47   : > { %518 = vmatmul.mubr.bf16.gmra.mrb[12].mxu0 %v240_v44  ;;  %591 = vmatmul.mubr.bf16.gmra.mrb[12].mxu1 %v240_v44 }
 0x102   : > { %v489_v59 = vpop.f32.mrb[0].mxu0  ;;  %v562_v60 = vpop.f32.mrb[0].mxu1 }
 0x103   : > { %v2568_v61 = vadd.f32 %v489_v59, %v2559_v55  ;;  %v2571_v62 = vadd.f32 %v562_v60, %v2561_v56  ;;  %v491_v63 = vpop.f32.mrb[1].mxu0  ;;  %v564_v0 = vpop.f32.mrb[1].mxu1 }
 0x104   : > { %v2574_v1 = vadd.f32 %v491_v63, %v2563_v57  ;;  %v2577_v2 = vadd.f32 %v564_v0, %v2565_v58  ;;  %v493_v3 = vpop.f32.mrb[2].mxu0  ;;  %v2579_v4 = vpop.f32.mrb[2].mxu1 }
 0x105   : > { %v633_v5 = vmul.f32 0.70710677, %v2568_v61  ;;  %v635_v6 = vmul.f32 0.70710677, %v2571_v62  ;;  %v2589_v11 = vpop.f32.mrb[3].mxu0  ;;  %v2591_v12 = vpop.f32.mrb[3].mxu1 }
 0x106   : > { %v634_v7 = vmul.f32 0.70710677, %v2574_v1  ;;  %v636_v8 = vmul.f32 0.70710677, %v2577_v2 }
 0x107   : > { %v2585_v9 = vclamps-f32 %v633_v5, 4.0  ;;  %v2587_v10 = vclamps-f32 %v635_v6, 4.0 }
 0x108   : > { %v2596_v14 = vclamps-f32 %v634_v7, 4.0  ;;  %v2598_v15 = vclamps-f32 %v636_v8, 4.0  ;;  %v494_v7 = vadd.f32 %v493_v3, %v2559_v55 }
 0x109   : > { %v2602_v16 = vmul.f32 %v2585_v9, %v2585_v9  ;;  %v2606_v17 = vmul.f32 %v2587_v10, %v2587_v10 }
 0x10a   : > { %v2610_v18 = vmul.f32 %v2596_v14, %v2596_v14  ;;  %v2612_v19 = vpop.f32.mrb[4].mxu0  ;;  %v2614_v20 = vpop.f32.mrb[4].mxu1  ;;  %v2621_v24 = vmul.f32 %v2598_v15, %v2598_v15 }
 0x10b   : > { %v761_v21 = vmul.f32 -2.7261424e-10, %v2602_v16  ;;  %v1177_v22 = vmul.f32 -1.45660715e-05, %v2602_v16  ;;  %v763_v23 = vmul.f32 -2.7261424e-10, %v2606_v17 }
 0x10c   : > { %v1179_v25 = vmul.f32 -1.45660715e-05, %v2606_v17  ;;  %v762_v26 = vmul.f32 -2.7261424e-10, %v2610_v18  ;;  %v1178_v27 = vmul.f32 -1.45660715e-05, %v2610_v18 }
 0x10d   : > { %v793_v28 = vadd.f32 2.7706815e-08, %v761_v21  ;;  %v1209_v29 = vadd.f32 -0.00021337405, %v1177_v22  ;;  %v795_v30 = vadd.f32 2.7706815e-08, %v763_v23 }
 0x10e   : > { %v1211_v31 = vadd.f32 -0.00021337405, %v1179_v25  ;;  %v794_v32 = vadd.f32 2.7706815e-08, %v762_v26  ;;  %v1210_v33 = vadd.f32 -0.00021337405, %v1178_v27 }
 0x10f   : > { %v825_v34 = vmul.f32 %v793_v28, %v2602_v16  ;;  %v1241_v35 = vmul.f32 %v1209_v29, %v2602_v16  ;;  %v827_v36 = vmul.f32 %v795_v30, %v2606_v17  ;;  %v764_v37 = vmul.f32 -2.7261424e-10, %v2621_v24  ;;  %v2630_v38 = vpop.f32.mrb[5].mxu0  ;;  %v2632_v39 = vpop.f32.mrb[5].mxu1 }
 0x110   : > { %v1243_v40 = vmul.f32 %v1211_v31, %v2606_v17  ;;  %v826_v41 = vmul.f32 %v794_v32, %v2610_v18  ;;  %v1242_v42 = vmul.f32 %v1210_v33, %v2610_v18  ;;  %v1180_v43 = vmul.f32 -1.45660715e-05, %v2621_v24  ;;  %v2638_v44 = vpop.f32.mrb[6].mxu0  ;;  %v2640_v45 = vpop.f32.mrb[6].mxu1 }
 0x111   : > { %v857_v46 = vadd.f32 -2.101024e-06, %v825_v34  ;;  %v1273_v47 = vadd.f32 -0.001682827, %v1241_v35  ;;  %v859_v48 = vadd.f32 -2.101024e-06, %v827_v36  ;;  %v567_v28 = vadd.f32 %v2579_v4, %v2561_v56 }
 0x112   : > { %v1275_v49 = vadd.f32 -0.001682827, %v1243_v40  ;;  %v858_v50 = vadd.f32 -2.101024e-06, %v826_v41  ;;  %v1274_v51 = vadd.f32 -0.001682827, %v1242_v42 }
 0x113   : > { %v889_v52 = vmul.f32 %v857_v46, %v2602_v16  ;;  %v1305_v53 = vmul.f32 %v1273_v47, %v2602_v16  ;;  %v891_v54 = vmul.f32 %v859_v48, %v2606_v17  ;;  %v796_v59 = vadd.f32 2.7706815e-08, %v764_v37  ;;  %v2645_v60 = vpop.f32.mrb[7].mxu0  ;;  %v2647_v63 = vpop.f32.mrb[7].mxu1 }
 0x114   : > { %v1307_v0 = vmul.f32 %v1275_v49, %v2606_v17  ;;  %v890_v5 = vmul.f32 %v858_v50, %v2610_v18  ;;  %v1212_v6 = vadd.f32 -0.00021337405, %v1180_v43  ;;  %v2652_v8 = vpop.f32.mrb[8].mxu0  ;;  %v2654_v13 = vpop.f32.mrb[8].mxu1  ;;  %v1306_v23 = vmul.f32 %v1274_v51, %v2610_v18 }
 0x115   : > { %v921_v21 = vadd.f32 -5.6925062e-05, %v889_v52  ;;  %v923_v22 = vadd.f32 -5.6925062e-05, %v891_v54  ;;  %v828_v25 = vmul.f32 %v796_v59, %v2621_v24  ;;  %v1337_v30 = vadd.f32 -0.0073733293, %v1305_v53 }
 0x116   : > { %v922_v26 = vadd.f32 -5.6925062e-05, %v890_v5  ;;  %v1244_v27 = vmul.f32 %v1212_v6, %v2621_v24  ;;  %v2662_v3 = vpop.f32.mrb[9].mxu0  ;;  %v2664_v31 = vpop.f32.mrb[9].mxu1  ;;  %v1339_v33 = vadd.f32 -0.0073733293, %v1307_v0 }
 0x117   : > { %v953_v29 = vmul.f32 %v921_v21, %v2602_v16  ;;  %v955_v32 = vmul.f32 %v923_v22, %v2606_v17  ;;  %v637_v34 = vmul.f32 0.70710677, %v494_v7  ;;  %v2667_v35 = vpop.f32.mrb[10].mxu0  ;;  %v2669_v36 = vpop.f32.mrb[10].mxu1  ;;  %v1338_v40 = vadd.f32 -0.0073733293, %v1306_v23 }
 0x118   : > { %3655 = vst [vmem:[#allocation2_spill] sm:$0xff] %v2669_v36  ;;  %v954_v37 = vmul.f32 %v922_v26, %v2610_v18  ;;  %v860_v41 = vadd.f32 -2.101024e-06, %v828_v25  ;;  %v1276_v4 = vadd.f32 -0.001682827, %v1244_v27  ;;  %v2673_v43 = vmul.f32 0.5, %v2568_v61 }
 0x119   : > { %v639_v42 = vmul.f32 0.70710677, %v567_v28  ;;  %v985_v46 = vadd.f32 -0.00073499064, %v953_v29  ;;  %v1369_v47 = vmul.f32 %v1337_v30, %v2602_v16  ;;  %v2677_v48 = vmul.f32 0.5, %v2571_v62  ;;  %v2679_v49 = vpop.f32.mrb[11].mxu0 }
 0x11a   : > { %3656 = vst [vmem:[#allocation3_spill] sm:$0xff] %v2679_v49  ;;  %v987_v50 = vadd.f32 -0.00073499064, %v955_v32  ;;  %v1371_v51 = vmul.f32 %v1339_v33, %v2606_v17  ;;  %v2683_v52 = vmul.f32 0.5, %v2574_v1  ;;  %v2685_v53 = vclamps-f32 %v637_v34, 4.0  ;;  %v2703_v21 = vpop.f32.mrb[11].mxu1 }
 0x11b   : > { %v986_v54 = vadd.f32 -0.00073499064, %v954_v37  ;;  %v1370_v61 = vmul.f32 %v1338_v40, %v2610_v18  ;;  %v2689_v59 = vmul.f32 0.5, %v2577_v2  ;;  %v892_v0 = vmul.f32 %v860_v41, %v2621_v24  ;;  %3657 = vst [vmem:[#allocation4_spill] sm:$0xff] %v2703_v21 }
 0x11c   : > { %v1308_v62 = vmul.f32 %v1276_v4, %v2621_v24  ;;  %v2695_v5 = vmul.f32 %v2685_v53, %v2685_v53  ;;  %v2697_v6 = vclamps-f32 %v639_v42, 4.0  ;;  %v2701_v1 = vadd.f32 %v2589_v11, %v2563_v57 }
 0x11d   : > { %v1017_v22 = vmul.f32 %v985_v46, %v2602_v16  ;;  %v1401_v2 = vadd.f32 -0.014264739, %v1369_v47  ;;  %v2706_v23 = vmul.f32 0.5, %v494_v7  ;;  %v2708_v25 = vmul.f32 0.5, %v567_v28  ;;  %v2284_v47 = vld [vmem:[%s3649_s3 + $0x48] sm:$0xff]  }
 0x11e   : > { %v1019_v26 = vmul.f32 %v987_v50, %v2606_v17  ;;  %v1403_v27 = vadd.f32 -0.014264739, %v1371_v51  ;;  %v765_v29 = vmul.f32 -2.7261424e-10, %v2695_v5  ;;  %v1181_v30 = vmul.f32 -1.45660715e-05, %v2695_v5  ;;  %2145 = vmatprep.subr.bf16.mxu0 %v2284_v47 }
 0x11f   : > { %v1018_v32 = vmul.f32 %v986_v54, %v2610_v18  ;;  %v1402_v11 = vadd.f32 -0.014264739, %v1370_v61  ;;  %v924_v33 = vadd.f32 -5.6925062e-05, %v892_v0  ;;  %v2716_v34 = vmul.f32 %v2697_v6, %v2697_v6  ;;  %v2287_v61 = vld [vmem:[%s3649_s3 + $0x88] sm:$0xff]  }
 0x120   : > { %v1340_v37 = vadd.f32 -0.0073733293, %v1308_v62  ;;  %v797_v7 = vadd.f32 2.7706815e-08, %v765_v29  ;;  %v1213_v40 = vadd.f32 -0.00021337405, %v1181_v30  ;;  %v2720_v28 = vadd.f32 %v2591_v12, %v2565_v58 }
 0x121   : > { %v1049_v41 = vadd.f32 -0.0029546, %v1017_v22  ;;  %v767_v4 = vmul.f32 -2.7261424e-10, %v2716_v34  ;;  %v2725_v42 = vadd.f32 %v2612_v19, %v2559_v55  ;;  %v2729_v46 = vadd.f32 %v2614_v20, %v2561_v56  ;;  %v2285_v12 = vld [vmem:[%s3649_s3 + $0x8] sm:$0xff]  }
 0x122   : > { %v1051_v50 = vadd.f32 -0.0029546, %v1019_v26  ;;  %v829_v51 = vmul.f32 %v797_v7, %v2695_v5  ;;  %v1245_v54 = vmul.f32 %v1213_v40, %v2695_v5  ;;  %v1183_v19 = vmul.f32 -1.45660715e-05, %v2716_v34  ;;  %v2286_v20 = vld [vmem:[%s3649_s3 + $0xc8] sm:$0xff]   ;;  %2146 = vmatpush3.bf16.msra.mxu0 %v2285_v12 }
 0x123   : > { %v1050_v0 = vadd.f32 -0.0029546, %v1018_v32  ;;  %v799_v62 = vadd.f32 2.7706815e-08, %v767_v4  ;;  %v638_v22 = vmul.f32 0.70710677, %v2701_v1  ;;  %v2749_v26 = vadd.f32 %v2630_v38, %v2563_v57  ;;  %2185 = vmatprep.subr.bf16.mxu1 %v2286_v20 }
 0x124   : > { %v956_v29 = vmul.f32 %v924_v33, %v2621_v24  ;;  %v861_v30 = vadd.f32 -2.101024e-06, %v829_v51  ;;  %v1277_v7 = vadd.f32 -0.001682827, %v1245_v54  ;;  %v1215_v40 = vadd.f32 -0.00021337405, %v1183_v19  ;;  %2186 = vmatpush3.bf16.msra.mxu1 %v2287_v61 }
 0x125   : > { %2312 = vrcp.f32 %v1401_v2  ;;  %v1372_v21 = vmul.f32 %v1340_v37, %v2621_v24  ;;  %v831_v32 = vmul.f32 %v799_v62, %v2716_v34  ;;  %v2754_v4 = vclamps-f32 %v638_v22, 4.0  ;;  %v2288_v38 = vld [vmem:[%s3649_s3 + $0x50] sm:$0xff]   ;;  %v2762_v51 = vpop.f32.mrb[12].mxu0  ;;  %v2766_v19 = vpop.f32.mrb[12].mxu1 }
 0x126   : > { %v1081_v47 = vmul.f32 %v1049_v41, %v2602_v16  ;;  %2314 = vrcp.f32 %v1403_v27  ;;  %v893_v33 = vmul.f32 %v861_v30, %v2695_v5  ;;  %v1309_v12 = vmul.f32 %v1277_v7, %v2695_v5  ;;  %3658 = vst [vmem:[#allocation5_spill] sm:$0xff] %v2762_v51  ;;  %2147 = vmatprep.subr.bf16.mxu0 %v2288_v38 }
 0x127   : > { %v1083_v2 = vmul.f32 %v1051_v50, %v2606_v17  ;;  %2316 = vrcp.f32 %v1402_v11  ;;  %v863_v37 = vadd.f32 -2.101024e-06, %v831_v32  ;;  %v1247_v54 = vmul.f32 %v1215_v40, %v2716_v34  ;;  %3659 = vst [vmem:[#allocation6_spill] sm:$0xff] %v2766_v19 }
 0x128   : > { %v1082_v20 = vmul.f32 %v1050_v0, %v2610_v18  ;;  %v988_v61 = vadd.f32 -0.00073499064, %v956_v29  ;;  %v925_v16 = vadd.f32 -5.6925062e-05, %v893_v33  ;;  %v1341_v27 = vadd.f32 -0.0073733293, %v1309_v12 }
 0x129   : > { %v1404_v41 = vadd.f32 -0.014264739, %v1372_v21  ;;  %v895_v62 = vmul.f32 %v863_v37, %v2716_v34  ;;  %v1279_v22 = vadd.f32 -0.001682827, %v1247_v54  ;;  %v2772_v30 = vmul.f32 %v2754_v4, %v2754_v4 }
 0x12a   : > { %v1113_v17 = vadd.f32 -0.016096033, %v1081_v47  ;;  %v957_v11 = vmul.f32 %v925_v16, %v2695_v5  ;;  %v1373_v50 = vmul.f32 %v1341_v27, %v2695_v5  ;;  %v640_v7 = vmul.f32 0.70710677, %v2720_v28 }
 0x12b   : > { %v1115_v40 = vadd.f32 -0.016096033, %v1083_v2  ;;  %v927_v18 = vadd.f32 -5.6925062e-05, %v895_v62  ;;  %v1311_v0 = vmul.f32 %v1279_v22, %v2716_v34  ;;  %v766_v21 = vmul.f32 -2.7261424e-10, %v2772_v30 }
 0x12c   : > { %v1020_v29 = vmul.f32 %v988_v61, %v2621_v24  ;;  %v989_v32 = vadd.f32 -0.00073499064, %v957_v11  ;;  %v1405_v38 = vadd.f32 -0.014264739, %v1373_v50  ;;  %v1182_v33 = vmul.f32 -1.45660715e-05, %v2772_v30 }
 0x12d   : > { %v1114_v12 = vadd.f32 -0.016096033, %v1082_v20  ;;  %v959_v47 = vmul.f32 %v927_v18, %v2716_v34  ;;  %v1343_v37 = vadd.f32 -0.0073733293, %v1311_v0  ;;  %v798_v54 = vadd.f32 2.7706815e-08, %v766_v21 }
 0x12e   : > { %v1021_v16 = vmul.f32 %v989_v32, %v2695_v5  ;;  %2318 = vrcp.f32 %v1405_v38  ;;  %v1214_v2 = vadd.f32 -0.00021337405, %v1182_v33  ;;  %v2783_v27 = vclamps-f32 %v640_v7, 4.0 }
 0x12f   : > { %v2313_v62 = vpop.eup %2312  ;;  %2320 = vrcp.f32 %v1404_v41  ;;  %v991_v22 = vadd.f32 -0.00073499064, %v959_v47  ;;  %v1375_v61 = vmul.f32 %v1343_v37, %v2716_v34  ;;  %v830_v11 = vmul.f32 %v798_v54, %v2772_v30 }
 0x130   : > { %v2315_v50 = vpop.eup %2314  ;;  %v1145_v20 = vmul.f32 %v2585_v9, %v1113_v17  ;;  %v1053_v19 = vadd.f32 -0.0029546, %v1021_v16  ;;  %v1246_v18 = vmul.f32 %v1214_v2, %v2772_v30  ;;  %v2791_v0 = vmul.f32 %v2783_v27, %v2783_v27  ;;  %v2289_v2 = vld [vmem:[%s3649_s3 + $0x10] sm:$0xff]  }
 0x131   : > { %v2793_v21 = vpop.eup %2316  ;;  %v1023_v7 = vmul.f32 %v991_v22, %v2716_v34  ;;  %v1407_v41 = vadd.f32 -0.014264739, %v1375_v61  ;;  %v862_v32 = vadd.f32 -2.101024e-06, %v830_v11  ;;  %v641_v38 = vmul.f32 0.70710677, %v2725_v42  ;;  %2148 = vmatpush3.bf16.msra.mxu0 %v2289_v2 }
 0x132   : > { %v1052_v33 = vadd.f32 -0.0029546, %v1020_v29  ;;  %v1085_v47 = vmul.f32 %v1053_v19, %v2695_v5  ;;  %v768_v9 = vmul.f32 -2.7261424e-10, %v2791_v0  ;;  %v1184_v17 = vmul.f32 -1.45660715e-05, %v2791_v0 }
 0x133   : > { %v1055_v37 = vadd.f32 -0.0029546, %v1023_v7  ;;  %2322 = vrcp.f32 %v1407_v41  ;;  %v894_v54 = vmul.f32 %v862_v32, %v2772_v30  ;;  %v2801_v16 = vclamps-f32 %v641_v38, 4.0  ;;  %v2290_v29 = vld [vmem:[%s3649_s3 + $0xd0] sm:$0xff]   ;;  %v2815_v38 = vpop.f32.mrb[13].mxu0 }
 0x134   : > { %v1147_v5 = vmul.f32 %v2587_v10, %v1115_v40  ;;  %v1117_v19 = vadd.f32 -0.016096033, %v1085_v47  ;;  %v800_v22 = vadd.f32 2.7706815e-08, %v768_v9  ;;  %v1216_v61 = vadd.f32 -0.00021337405, %v1184_v17  ;;  %2187 = vmatprep.subr.bf16.mxu1 %v2290_v29 }
 0x135   : > { %v1434_v11 = vmul.f32 %v2313_v62, %v1145_v20  ;;  %v1087_v7 = vmul.f32 %v1055_v37, %v2716_v34  ;;  %v1278_v41 = vadd.f32 -0.001682827, %v1246_v18  ;;  %v2813_v32 = vmul.f32 %v2801_v16, %v2801_v16  ;;  %3660 = vst [vmem:[#allocation7_spill] sm:$0xff] %v2815_v38 }
 0x136   : > { %v1149_v51 = vmul.f32 %v2685_v53, %v1117_v19  ;;  %v926_v49 = vadd.f32 -5.6925062e-05, %v894_v54  ;;  %v832_v10 = vmul.f32 %v800_v22, %v2791_v0  ;;  %v1248_v40 = vmul.f32 %v1216_v61, %v2791_v0  ;;  %v2825_v61 = vpop.f32.mrb[13].mxu1 }
 0x137   : > { %v1146_v62 = vmul.f32 %v2596_v14, %v1114_v12  ;;  %v1119_v20 = vadd.f32 -0.016096033, %v1087_v7  ;;  %v769_v34 = vmul.f32 -2.7261424e-10, %v2813_v32  ;;  %v1185_v18 = vmul.f32 -1.45660715e-05, %v2813_v32 }
 0x138   : > { %v2319_v47 = vpop.eup %2318  ;;  %v1084_v9 = vmul.f32 %v1052_v33, %v2621_v24  ;;  %v864_v17 = vadd.f32 -2.101024e-06, %v832_v10  ;;  %v1280_v37 = vadd.f32 -0.001682827, %v1248_v40  ;;  %v643_v2 = vmul.f32 0.70710677, %v2729_v46 }
 0x139   : > { %v2321_v53 = vpop.eup %2320  ;;  %v1497_v54 = vadd.f32 1.0, %v1434_v11  ;;  %v1438_v29 = vmul.f32 %v2315_v50, %v1147_v5  ;;  %v1442_v19 = vmul.f32 %v2319_v47, %v1149_v51  ;;  %v801_v22 = vadd.f32 2.7706815e-08, %v769_v34 }
 0x13a   : > { %v1151_v14 = vmul.f32 %v2697_v6, %v1119_v20  ;;  %v1310_v12 = vmul.f32 %v1278_v41, %v2772_v30  ;;  %v896_v7 = vmul.f32 %v864_v17, %v2791_v0  ;;  %v1217_v38 = vadd.f32 -0.00021337405, %v1185_v18 }
 0x13b   : > { %v1501_v36 = vadd.f32 1.0, %v1442_v19  ;;  %v958_v24 = vmul.f32 %v926_v49, %v2772_v30  ;;  %v833_v33 = vmul.f32 %v801_v22, %v2813_v32  ;;  %v2832_v10 = vclamps-f32 %v643_v2, 4.0 }
 0x13c   : > { %v1116_v11 = vadd.f32 -0.016096033, %v1084_v9  ;;  %v928_v50 = vadd.f32 -5.6925062e-05, %v896_v7  ;;  %v1312_v51 = vmul.f32 %v1280_v37, %v2791_v0  ;;  %v1249_v5 = vmul.f32 %v1217_v38, %v2813_v32  ;;  %v2291_v38 = vld [vmem:[%s3649_s3 + $0x90] sm:$0xff]  }
 0x13d   : > { %v2323_v40 = vpop.eup %2322  ;;  %v2837_v6 = vmul.f32 %v1497_v54, %v2673_v43  ;;  %v2840_v41 = vmul.f32 %v1501_v36, %v2706_v23  ;;  %v865_v20 = vadd.f32 -2.101024e-06, %v833_v33  ;;  %v2844_v49 = vmul.f32 %v2832_v10, %v2832_v10  ;;  %2188 = vmatpush3.bf16.msra.mxu1 %v2291_v38 }
 0x13e   : > { %v1499_v34 = vadd.f32 1.0, %v1438_v29  ;;  %v1446_v18 = vmul.f32 %v2323_v40, %v1151_v14  ;;  %v1342_v47 = vadd.f32 -0.0073733293, %v1310_v12  ;;  %v960_v9 = vmul.f32 %v928_v50, %v2791_v0  ;;  %v2869_v50 = vpop.f32.mrb[14].mxu0 }
 0x13f   : > { %v990_v17 = vadd.f32 -0.00073499064, %v958_v24  ;;  %v897_v36 = vmul.f32 %v865_v20, %v2813_v32  ;;  %v771_v23 = vmul.f32 -2.7261424e-10, %v2844_v49  ;;  %v2855_v2 = vmul.f32 0.5, %v2701_v1  ;;  %v2937_v43 = vpop.f32.mrb[15].mxu0 }
 0x140   : > { %v1503_v37 = vadd.f32 1.0, %v1446_v18  ;;  %v1344_v54 = vadd.f32 -0.0073733293, %v1312_v51  ;;  %v1281_v29 = vadd.f32 -0.001682827, %v1249_v5  ;;  %v2859_v12 = vadd.f32 %v2632_v39, %v2565_v58  ;;  %3663 = vst [vmem:[#allocation10_spill] sm:$0xff] %v2937_v43 }
 0x141   : > { %v992_v19 = vadd.f32 -0.00073499064, %v960_v9  ;;  %v929_v22 = vadd.f32 -5.6925062e-05, %v897_v36  ;;  %v803_v14 = vadd.f32 2.7706815e-08, %v771_v23  ;;  %v2862_v7 = vmul.f32 %v1499_v34, %v2677_v48 }
 0x142   : > { %v1436_v24 = vmul.f32 %v2793_v21, %v1146_v62  ;;  %v1148_v33 = vmul.f32 %v2598_v15, %v1116_v11  ;;  %v2867_v1 = vmul.f32 %v1503_v37, %v2708_v25  ;;  %v1374_v51 = vmul.f32 %v1342_v47, %v2772_v30 }
 0x143   : > { %3661 = vst [vmem:[#allocation8_spill] sm:$0xff] %v2862_v7  ;;  %v961_v5 = vmul.f32 %v929_v22, %v2813_v32  ;;  %v835_v40 = vmul.f32 %v803_v14, %v2844_v49  ;;  %v1187_v39 = vmul.f32 -1.45660715e-05, %v2844_v49  ;;  %v1022_v21 = vmul.f32 %v990_v17, %v2772_v30 }
 0x144   : > { %3662 = vst [vmem:[#allocation9_spill] sm:$0xff] %v2867_v1  ;;  %v2879_v15 = vmul.f32 0.5, %v2720_v28  ;;  %v1313_v25 = vmul.f32 %v1281_v29, %v2813_v32  ;;  %v1024_v62 = vmul.f32 %v992_v19, %v2791_v0  ;;  %v1376_v11 = vmul.f32 %v1344_v54, %v2791_v0  ;;  %v2896_v19 = vpop.f32.mrb[14].mxu1 }
 0x145   : > { %v867_v20 = vadd.f32 -2.101024e-06, %v835_v40  ;;  %v1219_v34 = vadd.f32 -0.00021337405, %v1187_v39  ;;  %v2884_v18 = vadd.f32 1.0, %v1436_v24  ;;  %v1440_v47 = vmul.f32 %v2321_v53, %v1148_v33 }
 0x146   : > { %v642_v9 = vmul.f32 0.70710677, %v2749_v26  ;;  %v2889_v38 = vadd.f32 %v2638_v44, %v2559_v55  ;;  %v1406_v17 = vadd.f32 -0.014264739, %v1374_v51  ;;  %v993_v28 = vadd.f32 -0.00073499064, %v961_v5 }
 0x147   : > { %v899_v36 = vmul.f32 %v867_v20, %v2844_v49  ;;  %v1251_v23 = vmul.f32 %v1219_v34, %v2844_v49  ;;  %v1345_v37 = vadd.f32 -0.0073733293, %v1313_v25  ;;  %v644_v54 = vmul.f32 0.70710677, %v2859_v12 }
 0x148   : > { %v2893_v29 = vclamps-f32 %v642_v9, 4.0  ;;  %v1054_v53 = vadd.f32 -0.0029546, %v1022_v21  ;;  %v1056_v22 = vadd.f32 -0.0029546, %v1024_v62  ;;  %v2898_v24 = vadd.f32 1.0, %v1440_v47 }
 0x149   : > { %v1408_v14 = vadd.f32 -0.014264739, %v1376_v11  ;;  %v931_v44 = vadd.f32 -5.6925062e-05, %v899_v36  ;;  %v2904_v51 = vclamps-f32 %v644_v54, 4.0  ;;  %2324 = vrcp.f32 %v1406_v17 }
 0x14a   : > { %v2902_v33 = vmul.f32 %v2893_v29, %v2893_v29  ;;  %v1025_v5 = vmul.f32 %v993_v28, %v2813_v32  ;;  %v1283_v40 = vadd.f32 -0.001682827, %v1251_v23  ;;  %v645_v39 = vmul.f32 0.70710677, %v2889_v38 }
 0x14b   : > { %v1377_v25 = vmul.f32 %v1345_v37, %v2813_v32  ;;  %v2913_v11 = vmul.f32 %v2904_v51, %v2904_v51  ;;  %v1086_v20 = vmul.f32 %v1054_v53, %v2772_v30  ;;  %v1088_v34 = vmul.f32 %v1056_v22, %v2791_v0 }
 0x14c   : > { %v770_v21 = vmul.f32 -2.7261424e-10, %v2902_v33  ;;  %v1186_v62 = vmul.f32 -1.45660715e-05, %v2902_v33  ;;  %2326 = vrcp.f32 %v1408_v14  ;;  %v2917_v47 = vclamps-f32 %v645_v39, 4.0 }
 0x14d   : > { %v2920_v9 = vmul.f32 0.5, %v2725_v42  ;;  %v963_v17 = vmul.f32 %v931_v44, %v2844_v49  ;;  %v1057_v23 = vadd.f32 -0.0029546, %v1025_v5  ;;  %v2924_v37 = vmul.f32 0.5, %v2729_v46 }
 0x14e   : > { %v802_v28 = vadd.f32 2.7706815e-08, %v770_v21  ;;  %v1218_v36 = vadd.f32 -0.00021337405, %v1186_v62  ;;  %v1315_v54 = vmul.f32 %v1283_v40, %v2844_v49  ;;  %v772_v30 = vmul.f32 -2.7261424e-10, %v2913_v11 }
 0x14f   : > { %v1409_v53 = vadd.f32 -0.014264739, %v1377_v25  ;;  %v1188_v42 = vmul.f32 -1.45660715e-05, %v2913_v11  ;;  %v1118_v14 = vadd.f32 -0.016096033, %v1086_v20  ;;  %v2933_v5 = vmul.f32 %v2917_v47, %v2917_v47 }
 0x150   : > { %v834_v0 = vmul.f32 %v802_v28, %v2902_v33  ;;  %v1250_v22 = vmul.f32 %v1218_v36, %v2902_v33  ;;  %v1120_v39 = vadd.f32 -0.016096033, %v1088_v34  ;;  %v804_v44 = vadd.f32 2.7706815e-08, %v772_v30 }
 0x151   : > { %v995_v46 = vadd.f32 -0.00073499064, %v963_v17  ;;  %v1089_v40 = vmul.f32 %v1057_v23, %v2813_v32  ;;  %v1347_v48 = vadd.f32 -0.0073733293, %v1315_v54  ;;  %v1220_v28 = vadd.f32 -0.00021337405, %v1188_v42 }
 0x152   : > { %v866_v21 = vadd.f32 -2.101024e-06, %v834_v0  ;;  %v1282_v62 = vadd.f32 -0.001682827, %v1250_v22  ;;  %v836_v25 = vmul.f32 %v804_v44, %v2913_v11  ;;  %2328 = vrcp.f32 %v1409_v53 }
 0x153   : > { %v773_v36 = vmul.f32 -2.7261424e-10, %v2933_v5  ;;  %v2325_v30 = vpop.eup %2324  ;;  %v1150_v17 = vmul.f32 %v2754_v4, %v1118_v14  ;;  %v1252_v22 = vmul.f32 %v1220_v28, %v2913_v11  ;;  %v2946_v32 = vadd.f32 %v2640_v45, %v2561_v56 }
 0x154   : > { %v898_v20 = vmul.f32 %v866_v21, %v2902_v33  ;;  %v1314_v34 = vmul.f32 %v1282_v62, %v2902_v33  ;;  %v868_v0 = vadd.f32 -2.101024e-06, %v836_v25  ;;  %v1152_v23 = vmul.f32 %v2783_v27, %v1120_v39 }
 0x155   : > { %v2950_v54 = vmul.f32 0.5, %v2749_v26  ;;  %v805_v42 = vadd.f32 2.7706815e-08, %v773_v36  ;;  %v1121_v21 = vadd.f32 -0.016096033, %v1089_v40  ;;  %v1027_v62 = vmul.f32 %v995_v46, %v2844_v49 }
 0x156   : > { %v930_v53 = vadd.f32 -5.6925062e-05, %v898_v20  ;;  %v2327_v44 = vpop.eup %2326  ;;  %v1379_v4 = vmul.f32 %v1347_v48, %v2844_v49  ;;  %v900_v14 = vmul.f32 %v868_v0, %v2913_v11  ;;  %v1346_v28 = vadd.f32 -0.0073733293, %v1314_v34  ;;  %v2965_v34 = vpop.f32.mrb[15].mxu1 }
 0x157   : > { %v837_v45 = vmul.f32 %v805_v42, %v2933_v5  ;;  %v1189_v27 = vmul.f32 -1.45660715e-05, %v2933_v5  ;;  %v1284_v26 = vadd.f32 -0.001682827, %v1252_v22  ;;  %v647_v20 = vmul.f32 0.70710677, %v2946_v32 }
 0x158   : > { %v962_v25 = vmul.f32 %v930_v53, %v2902_v33  ;;  %v932_v39 = vadd.f32 -5.6925062e-05, %v900_v14  ;;  %v1444_v36 = vmul.f32 %v2325_v30, %v1150_v17  ;;  %v1448_v7 = vmul.f32 %v2327_v44, %v1152_v23  ;;  %v2292_v17 = vld [vmem:[%s3649_s3 + $0x58] sm:$0xff]  }
 0x159   : > { %v869_v1 = vadd.f32 -2.101024e-06, %v837_v45  ;;  %v1411_v46 = vadd.f32 -0.014264739, %v1379_v4  ;;  %v1221_v43 = vadd.f32 -0.00021337405, %v1189_v27  ;;  %v2963_v0 = vadd.f32 %v2645_v60, %v2563_v57  ;;  %2149 = vmatprep.subr.bf16.mxu0 %v2292_v17 }
 0x15a   : > { %v994_v40 = vadd.f32 -0.00073499064, %v962_v25  ;;  %v2959_v48 = vclamps-f32 %v647_v20, 4.0  ;;  %v1153_v53 = vmul.f32 %v2801_v16, %v1121_v21  ;;  %v1059_v42 = vadd.f32 -0.0029546, %v1027_v62  ;;  %v2293_v23 = vld [vmem:[%s3649_s3 + $0x18] sm:$0xff]  }
 0x15b   : > { %v2969_v22 = vmul.f32 0.5, %v2859_v12  ;;  %v901_v30 = vmul.f32 %v869_v1, %v2933_v5  ;;  %v2294_v60 = vld [vmem:[%s3649_s3 + $0xd8] sm:$0xff]   ;;  %v1378_v16 = vmul.f32 %v1346_v28, %v2902_v33  ;;  %v964_v44 = vmul.f32 %v932_v39, %v2913_v11  ;;  %2150 = vmatpush3.bf16.msra.mxu0 %v2293_v23 }
 0x15c   : > { %v1316_v12 = vmul.f32 %v1284_v26, %v2913_v11  ;;  %v2986_v1 = vmul.f32 %v2959_v48, %v2959_v48  ;;  %v2295_v21 = vld [vmem:[%s3649_s3 + $0x98] sm:$0xff]   ;;  %v2329_v62 = vpop.eup %2328  ;;  %v1502_v4 = vadd.f32 1.0, %v1444_v36  ;;  %v1504_v14 = vadd.f32 1.0, %v1448_v7  ;;  %2189 = vmatprep.subr.bf16.mxu1 %v2294_v60  ;;  %v2296_v7 = vld [vmem:[%s3649_s3 + $0x60] sm:$0xff]  }
 0x15d   : > { %v1026_v25 = vmul.f32 %v994_v40, %v2902_v33  ;;  %v1253_v45 = vmul.f32 %v1221_v43, %v2933_v5  ;;  %v2995_v28 = vmul.f32 %v2884_v18, %v2683_v52  ;;  %2330 = vrcp.f32 %v1411_v46  ;;  %2190 = vmatpush3.bf16.msra.mxu1 %v2295_v21  ;;  %v2298_v43 = vld [vmem:[%s3649_s3 + $0xe0] sm:$0xff]   ;;  %2151 = vmatprep.subr.bf16.mxu0 %v2296_v7 }
 0x15e   : > { %v933_v27 = vadd.f32 -5.6925062e-05, %v901_v30  ;;  %v646_v39 = vmul.f32 0.70710677, %v2963_v0  ;;  %v3006_v26 = vmul.f32 %v2898_v24, %v2689_v59  ;;  %v1091_v52 = vmul.f32 %v1059_v42, %v2844_v49  ;;  %v2297_v36 = vld [vmem:[%s3649_s3 + $0x20] sm:$0xff]   ;;  %2191 = vmatprep.subr.bf16.mxu1 %v2298_v43 }
 0x15f   : > { %v775_v18 = vmul.f32 -2.7261424e-10, %v2986_v1  ;;  %v1191_v20 = vmul.f32 -1.45660715e-05, %v2986_v1  ;;  %v2299_v40 = vld [vmem:[%s3649_s3 + $0xa0] sm:$0xff]   ;;  %v1450_v46 = vmul.f32 %v2329_v62, %v1153_v53  ;;  %v3019_v42 = vadd.f32 %v2647_v63, %v2565_v58  ;;  %2152 = vmatpush3.bf16.msra.mxu0 %v2297_v36  ;;  %v2302_v63 = vld [vmem:[%s3649_s3 + $0xe8] sm:$0xff]  }
 0x160   : > { %v1410_v30 = vadd.f32 -0.014264739, %v1378_v16  ;;  %v996_v17 = vadd.f32 -0.00073499064, %v964_v44  ;;  %v1348_v23 = vadd.f32 -0.0073733293, %v1316_v12  ;;  %v3022_v60 = vmul.f32 %v1502_v4, %v2855_v2 }
 0x161   : > { %v1058_v59 = vadd.f32 -0.0029546, %v1026_v25  ;;  %v1285_v49 = vadd.f32 -0.001682827, %v1253_v45  ;;  %v807_v24 = vadd.f32 2.7706815e-08, %v775_v18  ;;  %v965_v53 = vmul.f32 %v933_v27, %v2933_v5  ;;  %2192 = vmatpush3.bf16.msra.mxu1 %v2299_v40 }
 0x162   : > { %v3025_v21 = vmul.f32 0.5, %v2889_v38  ;;  %v1223_v16 = vadd.f32 -0.00021337405, %v1191_v20  ;;  %v2300_v44 = vld [vmem:[%s3649_s3 + $0x68] sm:$0xff]   ;;  %v3035_v12 = vmul.f32 %v1504_v14, %v2879_v15  ;;  %v1123_v2 = vadd.f32 -0.016096033, %v1091_v52  ;;  %2193 = vmatprep.subr.bf16.mxu1 %v2302_v63 }
 0x163   : > { %v839_v38 = vmul.f32 %v807_v24, %v2986_v1  ;;  %v3038_v62 = vclamps-f32 %v646_v39, 4.0  ;;  %v2301_v4 = vld [vmem:[%s3649_s3 + $0x28] sm:$0xff]   ;;  %v1505_v45 = vadd.f32 1.0, %v1450_v46  ;;  %2332 = vrcp.f32 %v1410_v30  ;;  %2153 = vmatprep.subr.bf16.mxu0 %v2300_v44  ;;  %v2306_v40 = vld [vmem:[%s3649_s3 + $0xf0] sm:$0xff]  }
 0x164   : > { %3664 = vst [vmem:[#allocation11_spill] sm:$0xff] %v3035_v12  ;;  %v2303_v25 = vld [vmem:[%s3649_s3 + $0xa8] sm:$0xff]   ;;  %v1028_v27 = vmul.f32 %v996_v17, %v2913_v11  ;;  %v1380_v15 = vmul.f32 %v1348_v23, %v2913_v11  ;;  %v1090_v14 = vmul.f32 %v1058_v59, %v2902_v33  ;;  %v1317_v39 = vmul.f32 %v1285_v49, %v2933_v5  ;;  %v2304_v33 = vld [vmem:[%s3649_s3 + $0x70] sm:$0xff]  }
 0x165   : > { %v3052_v7 = vmul.f32 %v3038_v62, %v3038_v62  ;;  %v648_v43 = vmul.f32 0.70710677, %v3019_v42  ;;  %v997_v52 = vadd.f32 -0.00073499064, %v965_v53  ;;  %v871_v18 = vadd.f32 -2.101024e-06, %v839_v38  ;;  %2154 = vmatpush3.bf16.msra.mxu0 %v2301_v4  ;;  %2194 = vmatpush3.bf16.msra.mxu1 %v2303_v25 }
 0x166   : > { %v1255_v20 = vmul.f32 %v1223_v16, %v2986_v1  ;;  %v3058_v36 = vadd.f32 %v2652_v8, %v2559_v55  ;;  %v1155_v46 = vmul.f32 %v2832_v10, %v1123_v2  ;;  %v3071_v8 = vadd.f32 %v2654_v13, %v2561_v56  ;;  %v2305_v23 = vld [vmem:[%s3649_s3 + $0x30] sm:$0xff]   ;;  %2155 = vmatprep.subr.bf16.mxu0 %v2304_v33 }
 0x167   : > { %v774_v30 = vmul.f32 -2.7261424e-10, %v3052_v7  ;;  %v1190_v17 = vmul.f32 -1.45660715e-05, %v3052_v7  ;;  %v2307_v59 = vld [vmem:[%s3649_s3 + $0xb0] sm:$0xff]   ;;  %v2331_v49 = vpop.eup %2330  ;;  %v3080_v10 = vmul.f32 0.5, %v2946_v32  ;;  %2195 = vmatprep.subr.bf16.mxu1 %v2306_v40  ;;  %v3085_v13 = vmul.f32 %v1505_v45, %v2920_v9 }
 0x168   : > { %v1060_v24 = vadd.f32 -0.0029546, %v1028_v27  ;;  %v1412_v53 = vadd.f32 -0.014264739, %v1380_v15  ;;  %v3082_v16 = vclamps-f32 %v648_v43, 4.0  ;;  %v1029_v38 = vmul.f32 %v997_v52, %v2933_v5  ;;  %v2308_v32 = vld [vmem:[%s3649_s3 + $0x78] sm:$0xff]  }
 0x169   : > { %3665 = vst [vmem:[#allocation12_spill] sm:$0xff] %v3085_v13  ;;  %v1122_v44 = vadd.f32 -0.016096033, %v1090_v14  ;;  %v1349_v63 = vadd.f32 -0.0073733293, %v1317_v39  ;;  %2156 = vmatpush3.bf16.msra.mxu0 %v2305_v23  ;;  %2196 = vmatpush3.bf16.msra.mxu1 %v2307_v59  ;;  %v2310_v9 = vld [vmem:[%s3649_s3 + $0xf8] sm:$0xff]   ;;  %v1454_v45 = vmul.f32 %v2331_v49, %v1155_v46  ;;  %v903_v15 = vmul.f32 %v871_v18, %v2986_v1 }
 0x16a   : > { %v806_v2 = vadd.f32 2.7706815e-08, %v774_v30  ;;  %v1287_v4 = vadd.f32 -0.001682827, %v1255_v20  ;;  %v1222_v25 = vadd.f32 -0.00021337405, %v1190_v17  ;;  %v3090_v27 = vmul.f32 %v3082_v16, %v3082_v16  ;;  %2157 = vmatprep.subr.bf16.mxu0 %v2308_v32  ;;  %2197 = vmatprep.subr.bf16.mxu1 %v2310_v9 }
 0x16b   : > { %v3102_v39 = vadd.f32 %v2662_v3, %v2563_v57  ;;  %v2309_v43 = vld [vmem:[%s3649_s3 + $0x38] sm:$0xff]   ;;  %2334 = vrcp.f32 %v1412_v53  ;;  %v1154_v3 = vmul.f32 %v2893_v29, %v1122_v44  ;;  %v1092_v40 = vmul.f32 %v1060_v24, %v2913_v11 }
 0x16c   : > { %v838_v14 = vmul.f32 %v806_v2, %v3052_v7  ;;  %v2311_v52 = vld [vmem:[%s3649_s3 + $0xb8] sm:$0xff]   ;;  %v1254_v20 = vmul.f32 %v1222_v25, %v3052_v7  ;;  %v776_v33 = vmul.f32 -2.7261424e-10, %v3090_v27  ;;  %v1192_v18 = vmul.f32 -1.45660715e-05, %v3090_v27 }
 0x16d   : > { %v3116_v46 = vmul.f32 0.5, %v2963_v0  ;;  %v2333_v17 = vpop.eup %2332  ;;  %v1061_v23 = vadd.f32 -0.0029546, %v1029_v38  ;;  %v1381_v59 = vmul.f32 %v1349_v63, %v2933_v5  ;;  %v1319_v49 = vmul.f32 %v1287_v4, %v2986_v1  ;;  %2158 = vmatpush3.bf16.msra.mxu0 %v2309_v43  ;;  %2198 = vmatpush3.bf16.msra.mxu1 %v2311_v52 }
 0x16e   : > { %v870_v30 = vadd.f32 -2.101024e-06, %v838_v14  ;;  %v808_v53 = vadd.f32 2.7706815e-08, %v776_v33  ;;  %v935_v2 = vadd.f32 -5.6925062e-05, %v903_v15  ;;  %v3125_v24 = vadd.f32 %v2664_v31, %v2565_v58 }
 0x16f   : > { %v1286_v32 = vadd.f32 -0.001682827, %v1254_v20  ;;  %v1224_v29 = vadd.f32 -0.00021337405, %v1192_v18  ;;  %v1507_v44 = vadd.f32 1.0, %v1454_v45  ;;  %v3130_v9 = vadd.f32 %v2667_v35, %v2559_v55 }
 0x170   : > { %v902_v25 = vmul.f32 %v870_v30, %v3052_v7  ;;  %v840_v11 = vmul.f32 %v808_v53, %v3090_v27  ;;  %v649_v0 = vmul.f32 0.70710677, %v3058_v36  ;;  %v1124_v63 = vadd.f32 -0.016096033, %v1092_v40 }
 0x171   : > { %v1256_v4 = vmul.f32 %v1224_v29, %v3090_v27  ;;  %v1452_v15 = vmul.f32 %v2333_v17, %v1154_v3  ;;  %v1413_v14 = vadd.f32 -0.014264739, %v1381_v59  ;;  %v1093_v52 = vmul.f32 %v1061_v23, %v2933_v5 }
 0x172   : > { %v934_v38 = vadd.f32 -5.6925062e-05, %v902_v25  ;;  %v872_v43 = vadd.f32 -2.101024e-06, %v840_v11  ;;  %v3132_v45 = vclamps-f32 %v649_v0, 4.0  ;;  %v967_v20 = vmul.f32 %v935_v2, %v2986_v1 }
 0x173   : > { %v1351_v33 = vadd.f32 -0.0073733293, %v1319_v49  ;;  %v1318_v31 = vmul.f32 %v1286_v32, %v3052_v7  ;;  %v3138_v18 = vmul.f32 %v1507_v44, %v2924_v37  ;;  %v1156_v30 = vmul.f32 %v2904_v51, %v1124_v63 }
 0x174   : > { %v966_v40 = vmul.f32 %v934_v38, %v3052_v7  ;;  %v904_v35 = vmul.f32 %v872_v43, %v3090_v27  ;;  %v3144_v3 = vmul.f32 %v3132_v45, %v3132_v45  ;;  %v3148_v5 = vmul.f32 0.5, %v3019_v42  ;;  %v3667_v42 = vld [vmem:[#allocation2_spill] sm:$0xff] }
 0x175   : > { %3666 = vst [vmem:[#allocation13_spill] sm:$0xff] %v3138_v18  ;;  %v1288_v17 = vadd.f32 -0.001682827, %v1256_v4  ;;  %v651_v23 = vmul.f32 0.70710677, %v3071_v8  ;;  %v2335_v59 = vpop.eup %2334  ;;  %v1506_v49 = vadd.f32 1.0, %v1452_v15  ;;  %2336 = vrcp.f32 %v1413_v14 }
 0x176   : > { %v936_v37 = vadd.f32 -5.6925062e-05, %v904_v35  ;;  %v777_v53 = vmul.f32 -2.7261424e-10, %v3144_v3  ;;  %v1125_v2 = vadd.f32 -0.016096033, %v1093_v52  ;;  %v1383_v32 = vmul.f32 %v1351_v33, %v2986_v1 }
 0x177   : > { %v999_v25 = vadd.f32 -0.00073499064, %v967_v20  ;;  %v1350_v29 = vadd.f32 -0.0073733293, %v1318_v31  ;;  %v998_v44 = vadd.f32 -0.00073499064, %v966_v40  ;;  %v3156_v0 = vadd.f32 %v3667_v42, %v2561_v56 }
 0x178   : > { %v809_v11 = vadd.f32 2.7706815e-08, %v777_v53  ;;  %v1193_v51 = vmul.f32 -1.45660715e-05, %v3144_v3  ;;  %v1456_v63 = vmul.f32 %v2335_v59, %v1156_v30  ;;  %v1320_v38 = vmul.f32 %v1288_v17, %v3090_v27 }
 0x179   : > { %v3159_v4 = vclamps-f32 %v651_v23, 4.0  ;;  %v650_v15 = vmul.f32 0.70710677, %v3102_v39  ;;  %v3163_v14 = vmul.f32 %v1506_v49, %v2950_v54  ;;  %v968_v43 = vmul.f32 %v936_v37, %v3090_v27 }
 0x17a   : > { %v841_v52 = vmul.f32 %v809_v11, %v3144_v3  ;;  %v1225_v20 = vadd.f32 -0.00021337405, %v1193_v51  ;;  %v1031_v33 = vmul.f32 %v999_v25, %v2986_v1  ;;  %v1415_v31 = vadd.f32 -0.014264739, %v1383_v32 }
 0x17b   : > { %3668 = vst [vmem:[#allocation2_spill] sm:$0xff] %v3163_v14  ;;  %v1382_v40 = vmul.f32 %v1350_v29, %v3052_v7  ;;  %v3171_v35 = vmul.f32 %v3159_v4, %v3159_v4  ;;  %v1030_v30 = vmul.f32 %v998_v44, %v3052_v7  ;;  %v3175_v23 = vclamps-f32 %v650_v15, 4.0 }
 0x17c   : > { %v873_v17 = vadd.f32 -2.101024e-06, %v841_v52  ;;  %v1257_v54 = vmul.f32 %v1225_v20, %v3144_v3  ;;  %v1508_v59 = vadd.f32 1.0, %v1456_v63  ;;  %v1157_v49 = vmul.f32 %v2917_v47, %v1125_v2 }
 0x17d   : > { %v1352_v37 = vadd.f32 -0.0073733293, %v1320_v38  ;;  %v779_v53 = vmul.f32 -2.7261424e-10, %v3171_v35  ;;  %v1000_v25 = vadd.f32 -0.00073499064, %v968_v43  ;;  %v3183_v52 = vmul.f32 %v3175_v23, %v3175_v23 }
 0x17e   : > { %v905_v32 = vmul.f32 %v873_v17, %v3144_v3  ;;  %v1289_v29 = vadd.f32 -0.001682827, %v1257_v54  ;;  %v1195_v11 = vmul.f32 -1.45660715e-05, %v3171_v35  ;;  %v1063_v51 = vadd.f32 -0.0029546, %v1031_v33 }
 0x17f   : > { %v1414_v42 = vadd.f32 -0.014264739, %v1382_v40  ;;  %v811_v44 = vadd.f32 2.7706815e-08, %v779_v53  ;;  %v2337_v15 = vpop.eup %2336  ;;  %2338 = vrcp.f32 %v1415_v31  ;;  %v1062_v63 = vadd.f32 -0.0029546, %v1030_v30 }
 0x180   : > { %v937_v47 = vadd.f32 -5.6925062e-05, %v905_v32  ;;  %v1227_v2 = vadd.f32 -0.00021337405, %v1195_v11  ;;  %v1384_v38 = vmul.f32 %v1352_v37, %v3090_v27  ;;  %v778_v20 = vmul.f32 -2.7261424e-10, %v3183_v52 }
 0x181   : > { %v843_v43 = vmul.f32 %v811_v44, %v3171_v35  ;;  %v1194_v17 = vmul.f32 -1.45660715e-05, %v3183_v52  ;;  %v1032_v33 = vmul.f32 %v1000_v25, %v3090_v27  ;;  %v1321_v40 = vmul.f32 %v1289_v29, %v3144_v3 }
 0x182   : > { %v1259_v54 = vmul.f32 %v1227_v2, %v3171_v35  ;;  %v652_v53 = vmul.f32 0.70710677, %v3125_v24  ;;  %v969_v31 = vmul.f32 %v937_v47, %v3144_v3  ;;  %v810_v32 = vadd.f32 2.7706815e-08, %v778_v20 }
 0x183   : > { %v875_v30 = vadd.f32 -2.101024e-06, %v843_v43  ;;  %v1226_v11 = vadd.f32 -0.00021337405, %v1194_v17  ;;  %v1095_v37 = vmul.f32 %v1063_v51, %v2986_v1  ;;  %2340 = vrcp.f32 %v1414_v42 }
 0x184   : > { %v3196_v44 = vmul.f32 0.5, %v3058_v36  ;;  %v1291_v18 = vadd.f32 -0.001682827, %v1259_v54  ;;  %v1094_v25 = vmul.f32 %v1062_v63, %v3052_v7  ;;  %v1416_v13 = vadd.f32 -0.014264739, %v1384_v38  ;;  %v3669_v36 = vld [vmem:[#allocation3_spill] sm:$0xff] }
 0x185   : > { %v907_v29 = vmul.f32 %v875_v30, %v3171_v35  ;;  %v842_v2 = vmul.f32 %v810_v32, %v3183_v52  ;;  %v1064_v14 = vadd.f32 -0.0029546, %v1032_v33  ;;  %v1353_v12 = vadd.f32 -0.0073733293, %v1321_v40 }
 0x186   : > { %v1258_v47 = vmul.f32 %v1226_v11, %v3183_v52  ;;  %v3202_v43 = vclamps-f32 %v652_v53, 4.0  ;;  %v1001_v20 = vadd.f32 -0.00073499064, %v969_v31  ;;  %v3206_v42 = vadd.f32 %v3669_v36, %v2563_v57  ;;  %v3671_v36 = vld [vmem:[#allocation4_spill] sm:$0xff] }
 0x187   : > { %v939_v1 = vadd.f32 -5.6925062e-05, %v907_v29  ;;  %v874_v51 = vadd.f32 -2.101024e-06, %v842_v2  ;;  %v3209_v7 = vmul.f32 %v1508_v59, %v2969_v22  ;;  %v1458_v63 = vmul.f32 %v2337_v15, %v1157_v49 }
 0x188   : > { %v1127_v38 = vadd.f32 -0.016096033, %v1095_v37  ;;  %v1323_v17 = vmul.f32 %v1291_v18, %v3171_v35  ;;  %v1126_v33 = vadd.f32 -0.016096033, %v1094_v25  ;;  %v3216_v53 = vmul.f32 %v3202_v43, %v3202_v43 }
 0x189   : > { %3670 = vst [vmem:[#allocation3_spill] sm:$0xff] %v3209_v7  ;;  %v971_v40 = vmul.f32 %v939_v1, %v3171_v35  ;;  %v906_v54 = vmul.f32 %v874_v51, %v3183_v52  ;;  %v2339_v31 = vpop.eup %2338  ;;  %2342 = vrcp.f32 %v1416_v13  ;;  %v3219_v30 = vmul.f32 0.5, %v3071_v8 }
 0x18a   : > { %v3222_v22 = vmul.f32 0.5, %v3102_v39  ;;  %v1290_v59 = vadd.f32 -0.001682827, %v1258_v47  ;;  %v1096_v18 = vmul.f32 %v1064_v14, %v3090_v27  ;;  %v1033_v49 = vmul.f32 %v1001_v20, %v3144_v3 }
 0x18b   : > { %v1385_v15 = vmul.f32 %v1353_v12, %v3144_v3  ;;  %v938_v32 = vadd.f32 -5.6925062e-05, %v906_v54  ;;  %v1509_v11 = vadd.f32 1.0, %v1458_v63  ;;  %v1159_v37 = vmul.f32 %v2959_v48, %v1127_v38 }
 0x18c   : > { %v1355_v25 = vadd.f32 -0.0073733293, %v1323_v17  ;;  %v780_v13 = vmul.f32 -2.7261424e-10, %v3216_v53  ;;  %v1158_v8 = vmul.f32 %v3038_v62, %v1126_v33  ;;  %v1003_v29 = vadd.f32 -0.00073499064, %v971_v40 }
 0x18d   : > { %v970_v39 = vmul.f32 %v938_v32, %v3183_v52  ;;  %v3232_v2 = vmul.f32 0.5, %v3125_v24  ;;  %v2341_v27 = vpop.eup %2340  ;;  %v1322_v14 = vmul.f32 %v1290_v59, %v3183_v52  ;;  %v1196_v12 = vmul.f32 -1.45660715e-05, %v3216_v53 }
 0x18e   : > { %v812_v47 = vadd.f32 2.7706815e-08, %v780_v13  ;;  %v653_v20 = vmul.f32 0.70710677, %v3130_v9  ;;  %v1128_v48 = vadd.f32 -0.016096033, %v1096_v18  ;;  %v3239_v62 = vadd.f32 %v3671_v36, %v2565_v58 }
 0x18f   : > { %v1065_v1 = vadd.f32 -0.0029546, %v1033_v49  ;;  %v1417_v51 = vadd.f32 -0.014264739, %v1385_v15  ;;  %v1462_v63 = vmul.f32 %v2339_v31, %v1159_v37  ;;  %v1387_v38 = vmul.f32 %v1355_v25, %v3171_v35 }
 0x190   : > { %v844_v24 = vmul.f32 %v812_v47, %v3216_v53  ;;  %v3243_v17 = vclamps-f32 %v653_v20, 4.0  ;;  %v1460_v33 = vmul.f32 %v2341_v27, %v1158_v8  ;;  %v1035_v40 = vmul.f32 %v1003_v29, %v3171_v35 }
 0x191   : > { %v1002_v54 = vadd.f32 -0.00073499064, %v970_v39  ;;  %v655_v59 = vmul.f32 0.70710677, %v3156_v0  ;;  %v1354_v18 = vadd.f32 -0.0073733293, %v1322_v14  ;;  %v1160_v31 = vmul.f32 %v3082_v16, %v1128_v48 }
 0x192   : > { %v876_v49 = vadd.f32 -2.101024e-06, %v844_v24  ;;  %v1228_v15 = vadd.f32 -0.00021337405, %v1196_v12  ;;  %v3249_v32 = vmul.f32 %v3243_v17, %v3243_v17  ;;  %v1097_v37 = vmul.f32 %v1065_v1, %v3144_v3 }
 0x193   : > { %2344 = vrcp.f32 %v1417_v51  ;;  %v3253_v25 = vclamps-f32 %v655_v59, 4.0  ;;  %v2343_v13 = vpop.eup %2342  ;;  %v1419_v8 = vadd.f32 -0.014264739, %v1387_v38  ;;  %v1511_v14 = vadd.f32 1.0, %v1462_v63 }
 0x194   : > { %v908_v29 = vmul.f32 %v876_v49, %v3216_v53  ;;  %v781_v39 = vmul.f32 -2.7261424e-10, %v3249_v32  ;;  %v1197_v27 = vmul.f32 -1.45660715e-05, %v3249_v32  ;;  %v1067_v47 = vadd.f32 -0.0029546, %v1035_v40 }
 0x195   : > { %v1034_v12 = vmul.f32 %v1002_v54, %v3183_v52  ;;  %v3261_v16 = vmul.f32 %v3253_v25, %v3253_v25  ;;  %v1510_v3 = vadd.f32 1.0, %v1460_v33  ;;  %v1386_v20 = vmul.f32 %v1354_v18, %v3183_v52 }
 0x196   : > { %v1260_v48 = vmul.f32 %v1228_v15, %v3216_v53  ;;  %v813_v1 = vadd.f32 2.7706815e-08, %v781_v39  ;;  %v1464_v51 = vmul.f32 %v2343_v13, %v1160_v31  ;;  %v940_v36 = vadd.f32 -5.6925062e-05, %v908_v29 }
 0x197   : > { %v783_v38 = vmul.f32 -2.7261424e-10, %v3261_v16  ;;  %v1199_v24 = vmul.f32 -1.45660715e-05, %v3261_v16  ;;  %v1129_v63 = vadd.f32 -0.016096033, %v1097_v37  ;;  %2346 = vrcp.f32 %v1419_v8 }
 0x198   : > { %v845_v40 = vmul.f32 %v813_v1, %v3249_v32  ;;  %v1229_v54 = vadd.f32 -0.00021337405, %v1197_v27  ;;  %v1099_v59 = vmul.f32 %v1067_v47, %v3171_v35  ;;  %v1066_v49 = vadd.f32 -0.0029546, %v1034_v12 }
 0x199   : > { %v815_v33 = vadd.f32 2.7706815e-08, %v783_v38  ;;  %v1231_v7 = vadd.f32 -0.00021337405, %v1199_v24  ;;  %v3270_v18 = vmul.f32 %v1509_v11, %v3025_v21  ;;  %v1418_v15 = vadd.f32 -0.014264739, %v1386_v20 }
 0x19a   : > { %v1292_v31 = vadd.f32 -0.001682827, %v1260_v48  ;;  %v877_v13 = vadd.f32 -2.101024e-06, %v845_v40  ;;  %v3273_v29 = vmul.f32 %v1511_v14, %v3080_v10  ;;  %v972_v37 = vmul.f32 %v940_v36, %v3216_v53  ;;  %v3674_v36 = vld [vmem:[#allocation5_spill] sm:$0xff] }
 0x19b   : > { %3672 = vst [vmem:[#allocation4_spill] sm:$0xff] %v3270_v18  ;;  %v847_v8 = vmul.f32 %v815_v33, %v3261_v16  ;;  %v654_v39 = vmul.f32 0.70710677, %v3206_v42  ;;  %v3279_v35 = vmul.f32 %v1510_v3, %v3116_v46  ;;  %v1512_v27 = vadd.f32 1.0, %v1464_v51 }
 0x19c   : > { %3673 = vst [vmem:[#allocation14_spill] sm:$0xff] %v3273_v29  ;;  %v1161_v47 = vmul.f32 %v3132_v45, %v1129_v63  ;;  %v1261_v21 = vmul.f32 %v1229_v54, %v3249_v32  ;;  %v1131_v12 = vadd.f32 -0.016096033, %v1099_v59  ;;  %v1098_v20 = vmul.f32 %v1066_v49, %v3183_v52 }
 0x19d   : > { %v2345_v11 = vpop.eup %2344  ;;  %v879_v10 = vadd.f32 -2.101024e-06, %v847_v8  ;;  %v1263_v14 = vmul.f32 %v1231_v7, %v3261_v16  ;;  %2348 = vrcp.f32 %v1418_v15  ;;  %v1324_v48 = vmul.f32 %v1292_v31, %v3216_v53 }
 0x19e   : > { %v3287_v1 = vmul.f32 0.5, %v3130_v9  ;;  %v909_v46 = vmul.f32 %v877_v13, %v3249_v32  ;;  %v1004_v3 = vadd.f32 -0.00073499064, %v972_v37  ;;  %v3291_v51 = vclamps-f32 %v654_v39, 4.0 }
 0x19f   : > { %v911_v45 = vmul.f32 %v879_v10, %v3261_v16  ;;  %v3295_v38 = vadd.f32 %v3674_v36, %v2559_v55  ;;  %v3298_v52 = vmul.f32 %v1512_v27, %v3148_v5  ;;  %v1466_v7 = vmul.f32 %v2345_v11, %v1161_v47  ;;  %v3675_v5 = vld [vmem:[#allocation6_spill] sm:$0xff] }
 0x1a0   : > { %v1293_v24 = vadd.f32 -0.001682827, %v1261_v21  ;;  %v3301_v63 = vmul.f32 0.5, %v3156_v0  ;;  %v1163_v9 = vmul.f32 %v3159_v4, %v1131_v12  ;;  %v1130_v40 = vadd.f32 -0.016096033, %v1098_v20 }
 0x1a1   : > { %v1295_v54 = vadd.f32 -0.001682827, %v1263_v14  ;;  %v3306_v59 = vmul.f32 %v3291_v51, %v3291_v51  ;;  %v2347_v49 = vpop.eup %2346  ;;  %v1356_v33 = vadd.f32 -0.0073733293, %v1324_v48  ;;  %v941_v15 = vadd.f32 -5.6925062e-05, %v909_v46 }
 0x1a2   : > { %v656_v31 = vmul.f32 0.70710677, %v3239_v62  ;;  %v3311_v13 = vadd.f32 %v3675_v5, %v2561_v56  ;;  %v1036_v0 = vmul.f32 %v1004_v3, %v3216_v53  ;;  %v943_v37 = vadd.f32 -5.6925062e-05, %v911_v45 }
 0x1a3   : > { %v3315_v4 = vmul.f32 0.5, %v3206_v42  ;;  %v782_v8 = vmul.f32 -2.7261424e-10, %v3306_v59  ;;  %v1513_v39 = vadd.f32 1.0, %v1466_v7  ;;  %v1325_v27 = vmul.f32 %v1293_v24, %v3249_v32 }
 0x1a4   : > { %v1198_v47 = vmul.f32 -1.45660715e-05, %v3306_v59  ;;  %v3320_v21 = vclamps-f32 %v656_v31, 4.0  ;;  %v1470_v11 = vmul.f32 %v2347_v49, %v1163_v9  ;;  %v1162_v12 = vmul.f32 %v3175_v23, %v1130_v40 }
 0x1a5   : > { %v1327_v20 = vmul.f32 %v1295_v54, %v3261_v16  ;;  %v814_v10 = vadd.f32 2.7706815e-08, %v782_v8  ;;  %v1388_v14 = vmul.f32 %v1356_v33, %v3216_v53  ;;  %v973_v42 = vmul.f32 %v941_v15, %v3249_v32 }
 0x1a6   : > { %v1230_v48 = vadd.f32 -0.00021337405, %v1198_v47  ;;  %v3328_v46 = vmul.f32 %v3320_v21, %v3320_v21  ;;  %v1068_v3 = vadd.f32 -0.0029546, %v1036_v0  ;;  %v975_v45 = vmul.f32 %v943_v37, %v3261_v16 }
 0x1a7   : > { %v846_v36 = vmul.f32 %v814_v10, %v3306_v59  ;;  %v657_v7 = vmul.f32 0.70710677, %v3295_v38  ;;  %v2349_v23 = vpop.eup %2348  ;;  %v1357_v24 = vadd.f32 -0.0073733293, %v1325_v27  ;;  %v1515_v49 = vadd.f32 1.0, %v1470_v11 }
 0x1a8   : > { %v1262_v9 = vmul.f32 %v1230_v48, %v3306_v59  ;;  %v784_v40 = vmul.f32 -2.7261424e-10, %v3328_v46  ;;  %v1200_v54 = vmul.f32 -1.45660715e-05, %v3328_v46  ;;  %v1359_v33 = vadd.f32 -0.0073733293, %v1327_v20 }
 0x1a9   : > { %v878_v15 = vadd.f32 -2.101024e-06, %v846_v36  ;;  %v3336_v31 = vclamps-f32 %v657_v7, 4.0  ;;  %v3339_v5 = vmul.f32 %v1513_v39, %v3196_v44  ;;  %v1005_v0 = vadd.f32 -0.00073499064, %v973_v42 }
 0x1aa   : > { %v1294_v37 = vadd.f32 -0.001682827, %v1262_v9  ;;  %v816_v8 = vadd.f32 2.7706815e-08, %v784_v40  ;;  %v1468_v47 = vmul.f32 %v2349_v23, %v1162_v12  ;;  %v1007_v10 = vadd.f32 -0.00073499064, %v975_v45 }
 0x1ab   : > { %v910_v27 = vmul.f32 %v878_v15, %v3306_v59  ;;  %v1232_v48 = vadd.f32 -0.00021337405, %v1200_v54  ;;  %v1389_v29 = vmul.f32 %v1357_v24, %v3249_v32  ;;  %v3347_v20 = vmul.f32 %v3336_v31, %v3336_v31 }
 0x1ac   : > { %v1326_v18 = vmul.f32 %v1294_v37, %v3306_v59  ;;  %v848_v11 = vmul.f32 %v816_v8, %v3328_v46  ;;  %v1100_v44 = vmul.f32 %v1068_v3, %v3216_v53  ;;  %v1420_v39 = vadd.f32 -0.014264739, %v1388_v14 }
 0x1ad   : > { %v942_v42 = vadd.f32 -5.6925062e-05, %v910_v27  ;;  %v1264_v12 = vmul.f32 %v1232_v48, %v3328_v46  ;;  %v1037_v45 = vmul.f32 %v1005_v0, %v3249_v32  ;;  %v1391_v36 = vmul.f32 %v1359_v33, %v3261_v16 }
 0x1ae   : > { %v880_v7 = vadd.f32 -2.101024e-06, %v848_v11  ;;  %v785_v23 = vmul.f32 -2.7261424e-10, %v3347_v20  ;;  %v1039_v24 = vmul.f32 %v1007_v10, %v3261_v16  ;;  %v1201_v54 = vmul.f32 -1.45660715e-05, %v3347_v20 }
 0x1af   : > { %v974_v9 = vmul.f32 %v942_v42, %v3306_v59  ;;  %v1296_v40 = vadd.f32 -0.001682827, %v1264_v12  ;;  %v1421_v15 = vadd.f32 -0.014264739, %v1389_v29  ;;  %v1358_v53 = vadd.f32 -0.0073733293, %v1326_v18 }
 0x1b0   : > { %v912_v14 = vmul.f32 %v880_v7, %v3328_v46  ;;  %v817_v3 = vadd.f32 2.7706815e-08, %v785_v23  ;;  %v3359_v37 = vmul.f32 %v1515_v49, %v3219_v30  ;;  %v1233_v8 = vadd.f32 -0.00021337405, %v1201_v54  ;;  %v3676_v49 = vld [vmem:[#allocation7_spill] sm:$0xff] }
 0x1b1   : > { %v1006_v0 = vadd.f32 -0.00073499064, %v974_v9  ;;  %v1328_v33 = vmul.f32 %v1296_v40, %v3328_v46  ;;  %v1132_v27 = vadd.f32 -0.016096033, %v1100_v44  ;;  %2350 = vrcp.f32 %v1420_v39 }
 0x1b2   : > { %v1423_v10 = vadd.f32 -0.014264739, %v1391_v36  ;;  %v944_v48 = vadd.f32 -5.6925062e-05, %v912_v14  ;;  %v1069_v11 = vadd.f32 -0.0029546, %v1037_v45  ;;  %v849_v12 = vmul.f32 %v817_v3, %v3347_v20 }
 0x1b3   : > { %v1071_v42 = vadd.f32 -0.0029546, %v1039_v24  ;;  %v1265_v18 = vmul.f32 %v1233_v8, %v3347_v20  ;;  %2352 = vrcp.f32 %v1421_v15  ;;  %v1390_v29 = vmul.f32 %v1358_v53, %v3306_v59 }
 0x1b4   : > { %v976_v30 = vmul.f32 %v944_v48, %v3328_v46  ;;  %v3368_v7 = vadd.f32 %v3676_v49, %v2563_v57  ;;  %v1038_v44 = vmul.f32 %v1006_v0, %v3306_v59  ;;  %v1360_v39 = vadd.f32 -0.0073733293, %v1328_v33 }
 0x1b5   : > { %v881_v36 = vadd.f32 -2.101024e-06, %v849_v12  ;;  %v1297_v23 = vadd.f32 -0.001682827, %v1265_v18  ;;  %2354 = vrcp.f32 %v1423_v10  ;;  %v659_v24 = vmul.f32 0.70710677, %v3311_v13 }
 0x1b6   : > { %v1008_v45 = vadd.f32 -0.00073499064, %v976_v30  ;;  %v3374_v9 = vadd.f32 %v2825_v61, %v2565_v58  ;;  %v1101_v40 = vmul.f32 %v1069_v11, %v3249_v32  ;;  %v1103_v54 = vmul.f32 %v1071_v42, %v3261_v16 }
 0x1b7   : > { %v913_v15 = vmul.f32 %v881_v36, %v3347_v20  ;;  %v1329_v53 = vmul.f32 %v1297_v23, %v3347_v20  ;;  %v3380_v14 = vadd.f32 1.0, %v1468_v47  ;;  %v1422_v3 = vadd.f32 -0.014264739, %v1390_v29 }
 0x1b8   : > { %3677 = vst [vmem:[#allocation5_spill] sm:$0xff] %v3374_v9  ;;  %v3382_v0 = vclamps-f32 %v659_v24, 4.0  ;;  %v658_v33 = vmul.f32 0.70710677, %v3368_v7  ;;  %v1070_v8 = vadd.f32 -0.0029546, %v1038_v44  ;;  %v1040_v10 = vmul.f32 %v1008_v45, %v3328_v46 }
 0x1b9   : > { %v1392_v61 = vmul.f32 %v1360_v39, %v3328_v46  ;;  %v945_v48 = vadd.f32 -5.6925062e-05, %v913_v15  ;;  %v1361_v32 = vadd.f32 -0.0073733293, %v1329_v53  ;;  %v660_v47 = vmul.f32 0.70710677, %v3374_v9 }
 0x1ba   : > { %v3389_v16 = vmul.f32 %v3382_v0, %v3382_v0  ;;  %v3391_v11 = vclamps-f32 %v658_v33, 4.0  ;;  %v1164_v42 = vmul.f32 %v3202_v43, %v1132_v27  ;;  %v1133_v12 = vadd.f32 -0.016096033, %v1101_v40 }
 0x1bb   : > { %v1135_v18 = vadd.f32 -0.016096033, %v1103_v54  ;;  %v977_v29 = vmul.f32 %v945_v48, %v3347_v20  ;;  %v2351_v30 = vpop.eup %2350  ;;  %2356 = vrcp.f32 %v1422_v3  ;;  %v1102_v36 = vmul.f32 %v1070_v8, %v3306_v59 }
 0x1bc   : > { %v787_v49 = vmul.f32 -2.7261424e-10, %v3389_v16  ;;  %v1203_v44 = vmul.f32 -1.45660715e-05, %v3389_v16  ;;  %v3400_v39 = vmul.f32 %v3391_v11, %v3391_v11  ;;  %v1424_v23 = vadd.f32 -0.014264739, %v1392_v61 }
 0x1bd   : > { %v1009_v45 = vadd.f32 -0.00073499064, %v977_v29  ;;  %v3403_v24 = vclamps-f32 %v660_v47, 4.0  ;;  %v2353_v43 = vpop.eup %2352  ;;  %v1072_v27 = vadd.f32 -0.0029546, %v1040_v10  ;;  %v1393_v40 = vmul.f32 %v1361_v32, %v3347_v20 }
 0x1be   : > { %v819_v54 = vadd.f32 2.7706815e-08, %v787_v49  ;;  %v1235_v15 = vadd.f32 -0.00021337405, %v1203_v44  ;;  %v1472_v53 = vmul.f32 %v2351_v30, %v1164_v42  ;;  %v1165_v3 = vmul.f32 %v3243_v17, %v1133_v12 }
 0x1bf   : > { %v1041_v33 = vmul.f32 %v1009_v45, %v3347_v20  ;;  %v786_v48 = vmul.f32 -2.7261424e-10, %v3400_v39  ;;  %v2355_v9 = vpop.eup %2354  ;;  %v1167_v59 = vmul.f32 %v3253_v25, %v1135_v18  ;;  %v1202_v10 = vmul.f32 -1.45660715e-05, %v3400_v39 }
 0x1c0   : > { %v851_v8 = vmul.f32 %v819_v54, %v3389_v16  ;;  %v1267_v61 = vmul.f32 %v1235_v15, %v3389_v16  ;;  %v1134_v47 = vadd.f32 -0.016096033, %v1102_v36  ;;  %2358 = vrcp.f32 %v1424_v23 }
 0x1c1   : > { %v818_v32 = vadd.f32 2.7706815e-08, %v786_v48  ;;  %v3415_v42 = vmul.f32 %v3403_v24, %v3403_v24  ;;  %v1104_v17 = vmul.f32 %v1072_v27, %v3328_v46  ;;  %v1425_v12 = vadd.f32 -0.014264739, %v1393_v40 }
 0x1c2   : > { %v883_v29 = vadd.f32 -2.101024e-06, %v851_v8  ;;  %v1234_v30 = vadd.f32 -0.00021337405, %v1202_v10  ;;  %v1474_v49 = vmul.f32 %v2353_v43, %v1165_v3  ;;  %v1073_v25 = vadd.f32 -0.0029546, %v1041_v33 }
 0x1c3   : > { %v850_v18 = vmul.f32 %v818_v32, %v3400_v39  ;;  %v788_v44 = vmul.f32 -2.7261424e-10, %v3415_v42  ;;  %v1478_v45 = vmul.f32 %v2355_v9, %v1167_v59  ;;  %v1299_v23 = vadd.f32 -0.001682827, %v1267_v61 }
 0x1c4   : > { %v915_v36 = vmul.f32 %v883_v29, %v3389_v16  ;;  %v1266_v54 = vmul.f32 %v1234_v30, %v3400_v39  ;;  %v524_v46 = vadd.f32 %v2869_v50, %v2559_v55  ;;  %v1562_v27 = vpack.c.bf16 %v3022_v60, %v2995_v28 }
 0x1c5   : > { %v882_v15 = vadd.f32 -2.101024e-06, %v850_v18  ;;  %v820_v48 = vadd.f32 2.7706815e-08, %v788_v44  ;;  %v2357_v43 = vpop.eup %2356  ;;  %v1516_v40 = vadd.f32 1.0, %v1472_v53  ;;  %v1166_v3 = vmul.f32 %v3291_v51, %v1134_v47 }
 0x1c6   : > { %v1136_v33 = vadd.f32 -0.016096033, %v1104_v17  ;;  %2360 = vrcp.f32 %v1425_v12  ;;  %v3429_v9 = vmul.f32 %v3380_v14, %v3222_v22  ;;  %v3432_v59 = vmul.f32 0.5, %v3239_v62  ;;  %1872 = vmatprep.mubr.bf16.mxu0 %v1562_v27 }
 0x1c7   : > { %v1105_v8 = vmul.f32 %v1073_v25, %v3347_v20  ;;  %v947_v61 = vadd.f32 -5.6925062e-05, %v915_v36  ;;  %v1517_v55 = vadd.f32 1.0, %v1474_v49  ;;  %v1519_v50 = vadd.f32 1.0, %v1478_v45 }
 0x1c8   : > { %v1331_v28 = vmul.f32 %v1299_v23, %v3389_v16  ;;  %v1298_v60 = vadd.f32 -0.001682827, %v1266_v54  ;;  %v3678_v51 = vpack.c.bf16 %v2840_v41, %v2837_v6  ;;  %v3440_v53 = vmul.f32 0.5, %v3295_v38 }
 0x1c9   : > { %v914_v22 = vmul.f32 %v882_v15, %v3400_v39  ;;  %v852_v62 = vmul.f32 %v820_v48, %v3415_v42  ;;  %v661_v14 = vmul.f32 0.70710677, %v524_v46  ;;  %v3445_v20 = vmul.f32 %v1516_v40, %v3232_v2 }
 0x1ca   : > { %1873 = vmatmul.mubr.bf16.vlgmr.msra.gmra.mrb[16].mxu0 %v3678_v51  ;;  %v1476_v10 = vmul.f32 %v2357_v43, %v1166_v3  ;;  %v1168_v47 = vmul.f32 %v3320_v21, %v1136_v33  ;;  %v3450_v32 = vadd.f32 %v2896_v19, %v2561_v56  ;;  %v2359_v6 = vpop.eup %2358  ;;  %v1137_v41 = vadd.f32 -0.016096033, %v1105_v8 }
 0x1cb   : > { %v979_v38 = vmul.f32 %v947_v61, %v3389_v16  ;;  %v1204_v17 = vmul.f32 -1.45660715e-05, %v3415_v42  ;;  %v3454_v12 = vclamps-f32 %v661_v14, 4.0  ;;  %v3457_v29 = vmul.f32 %v1517_v55, %v3287_v1  ;;  %v3679_v1 = vld [vmem:[#allocation10_spill] sm:$0xff] }
 0x1cc   : > { %v3460_v2 = vmul.f32 %v1519_v50, %v3301_v63  ;;  %v1363_v30 = vadd.f32 -0.0073733293, %v1331_v28  ;;  %v1330_v21 = vmul.f32 %v1298_v60, %v3400_v39  ;;  %v946_v49 = vadd.f32 -5.6925062e-05, %v914_v22 }
 0x1cd   : > { %v884_v56 = vadd.f32 -2.101024e-06, %v852_v62  ;;  %v3463_v19 = vmul.f32 0.5, %v524_v46  ;;  %v3467_v25 = vmul.f32 %v3454_v12, %v3454_v12  ;;  %v1518_v18 = vadd.f32 1.0, %v1476_v10 }
 0x1ce   : > { %v1480_v44 = vmul.f32 %v2359_v6, %v1168_v47  ;;  %v663_v45 = vmul.f32 0.70710677, %v3450_v32  ;;  %v3472_v36 = vadd.f32 %v3679_v1, %v2563_v57  ;;  %v1169_v63 = vmul.f32 %v3336_v31, %v1137_v41  ;;  %v3680_v6 = vld [vmem:[#allocation11_spill] sm:$0xff] }
 0x1cf   : > { %v1011_v23 = vadd.f32 -0.00073499064, %v979_v38  ;;  %v1236_v54 = vadd.f32 -0.00021337405, %v1204_v17  ;;  %v789_v15 = vmul.f32 -2.7261424e-10, %v3467_v25  ;;  %v1395_v46 = vmul.f32 %v1363_v30, %v3389_v16 }
 0x1d0   : > { %v2361_v48 = vpop.eup %2360  ;;  %v1362_v27 = vadd.f32 -0.0073733293, %v1330_v21  ;;  %v1205_v43 = vmul.f32 -1.45660715e-05, %v3467_v25  ;;  %v3478_v40 = vclamps-f32 %v663_v45, 4.0  ;;  %v978_v3 = vmul.f32 %v946_v49, %v3400_v39  ;;  %v3681_v21 = vld [vmem:[#allocation2_spill] sm:$0xff] }
 0x1d1   : > { %v916_v33 = vmul.f32 %v884_v56, %v3415_v42  ;;  %v821_v57 = vadd.f32 2.7706815e-08, %v789_v15  ;;  %v3484_v31 = vadd.f32 %v2965_v34, %v2565_v58  ;;  %v3487_v8 = vmul.f32 %v1518_v18, %v3315_v4 }
 0x1d2   : > { %v1520_v61 = vadd.f32 1.0, %v1480_v44  ;;  %v1237_v55 = vadd.f32 -0.00021337405, %v1205_v43  ;;  %v3491_v50 = vmul.f32 %v3478_v40, %v3478_v40  ;;  %v1482_v28 = vmul.f32 %v2361_v48, %v1169_v63 }
 0x1d3   : > { %v1043_v60 = vmul.f32 %v1011_v23, %v3389_v16  ;;  %v1268_v51 = vmul.f32 %v1236_v54, %v3415_v42  ;;  %v853_v22 = vmul.f32 %v821_v57, %v3467_v25  ;;  %v1427_v62 = vadd.f32 -0.014264739, %v1395_v46  ;;  %v3682_v23 = vld [vmem:[#allocation9_spill] sm:$0xff]  ;;  %v3683_v54 = vld [vmem:[#allocation8_spill] sm:$0xff] }
 0x1d4   : > { %v1394_v58 = vmul.f32 %v1362_v27, %v3400_v39  ;;  %v1269_v34 = vmul.f32 %v1237_v55, %v3467_v25  ;;  %v791_v4 = vmul.f32 -2.7261424e-10, %v3491_v50  ;;  %v1010_v14 = vadd.f32 -0.00073499064, %v978_v3 }
 0x1d5   : > { %v948_v10 = vadd.f32 -5.6925062e-05, %v916_v33  ;;  %v885_v47 = vadd.f32 -2.101024e-06, %v853_v22  ;;  %v1564_v41 = vpack.c.bf16 %v3680_v6, %v3006_v26  ;;  %v3502_v38 = vmul.f32 %v1520_v61, %v3432_v59  ;;  %v3685_v33 = vld [vmem:[#allocation3_spill] sm:$0xff] }
 0x1d6   : > { %v1301_v17 = vadd.f32 -0.001682827, %v1269_v34  ;;  %v823_v30 = vadd.f32 2.7706815e-08, %v791_v4  ;;  %v1566_v49 = vpack.c.bf16 %v3279_v35, %v3681_v21  ;;  %v3506_v56 = vadd.f32 1.0, %v1482_v28  ;;  %v3687_v4 = vld [vmem:[#allocation4_spill] sm:$0xff] }
 0x1d7   : > { %v1075_v18 = vadd.f32 -0.0029546, %v1043_v60  ;;  %v1300_v44 = vadd.f32 -0.001682827, %v1268_v51  ;;  %v917_v45 = vmul.f32 %v885_v47, %v3467_v25  ;;  %1937 = vmatprep.mubr.bf16.mxu1 %v1564_v41  ;;  %v1426_v1 = vadd.f32 -0.014264739, %v1394_v58 }
 0x1d8   : > { %v1333_v63 = vmul.f32 %v1301_v17, %v3467_v25  ;;  %v855_v26 = vmul.f32 %v823_v30, %v3491_v50  ;;  %v1207_v59 = vmul.f32 -1.45660715e-05, %v3491_v50  ;;  %v3684_v15 = vpack.c.bf16 %v3682_v23, %v3683_v54  ;;  %1880 = vmatprep.mubr.bf16.mxu0 %v1566_v49  ;;  %v3688_v41 = vld [vmem:[#allocation13_spill] sm:$0xff]  ;;  %v3689_v17 = vld [vmem:[#allocation14_spill] sm:$0xff] }
 0x1d9   : > { %2362 = vrcp.f32 %v1427_v62  ;;  %v3516_v35 = vmul.f32 %v1010_v14, %v3400_v39  ;;  %v980_v48 = vmul.f32 %v948_v10, %v3415_v42  ;;  %v949_v46 = vadd.f32 -5.6925062e-05, %v917_v45 }
 0x1da   : > { %1938 = vmatmul.mubr.bf16.vlgmr.msra.gmra.mrb[16].mxu1 %v3684_v15  ;;  %v1365_v27 = vadd.f32 -0.0073733293, %v1333_v63  ;;  %v887_v43 = vadd.f32 -2.101024e-06, %v855_v26  ;;  %v1239_v3 = vadd.f32 -0.00021337405, %v1207_v59  ;;  %v1568_v57 = vpack.c.bf16 %v3298_v52, %v3685_v33 }
 0x1db   : > { %v1107_v61 = vmul.f32 %v1075_v18, %v3389_v16  ;;  %v1332_v55 = vmul.f32 %v1300_v44, %v3415_v42  ;;  %v981_v28 = vmul.f32 %v949_v46, %v3467_v25  ;;  %v662_v60 = vmul.f32 0.70710677, %v3472_v36  ;;  %v3686_v16 = vld [vmem:[#allocation12_spill] sm:$0xff] }
 0x1dc   : > { %2364 = vrcp.f32 %v1426_v1  ;;  %v1397_v51 = vmul.f32 %v1365_v27, %v3467_v25  ;;  %v919_v22 = vmul.f32 %v887_v43, %v3491_v50  ;;  %v1271_v62 = vmul.f32 %v1239_v3, %v3491_v50  ;;  %1945 = vmatprep.mubr.bf16.mxu1 %v1568_v57 }
 0x1dd   : > { %v1013_v58 = vadd.f32 -0.00073499064, %v981_v28  ;;  %v3528_v34 = vclamps-f32 %v662_v60, 4.0  ;;  %v664_v52 = vmul.f32 0.70710677, %v3484_v31  ;;  %v1565_v14 = vpack.c.bf16 %v3687_v4, %v3686_v16 }
 0x1de   : > { %v1012_v10 = vadd.f32 -0.00073499064, %v980_v48  ;;  %v1429_v47 = vadd.f32 -0.014264739, %v1397_v51  ;;  %v951_v6 = vadd.f32 -5.6925062e-05, %v919_v22  ;;  %v1567_v30 = vpack.c.bf16 %v3689_v17, %v3688_v41 }
 0x1df   : > { %v1045_v21 = vmul.f32 %v1013_v58, %v3467_v25  ;;  %v1303_v49 = vadd.f32 -0.001682827, %v1271_v62  ;;  %v3538_v18 = vmul.f32 %v3528_v34, %v3528_v34  ;;  %v3540_v44 = vclamps-f32 %v664_v52, 4.0  ;;  %1881 = vmatmul.mubr.bf16.gmra.mrb[20].mxu0 %v1565_v14 }
 0x1e0   : > { %v1364_v45 = vadd.f32 -0.0073733293, %v1332_v55  ;;  %2366 = vrcp.f32 %v1429_v47  ;;  %v983_v1 = vmul.f32 %v951_v6, %v3491_v50  ;;  %v1570_v63 = vpack.c.bf16 %v3487_v8, %v3429_v9 }
 0x1e1   : > { %v1077_v26 = vadd.f32 -0.0029546, %v1045_v21  ;;  %v1335_v59 = vmul.f32 %v1303_v49, %v3491_v50  ;;  %v790_v23 = vmul.f32 -2.7261424e-10, %v3538_v18  ;;  %v1206_v54 = vmul.f32 -1.45660715e-05, %v3538_v18 }
 0x1e2   : > { %1946 = vmatmul.mubr.bf16.gmra.mrb[20].mxu1 %v1567_v30  ;;  %v1015_v15 = vadd.f32 -0.00073499064, %v983_v1  ;;  %v3550_v48 = vmul.f32 %v3540_v44, %v3540_v44  ;;  %1888 = vmatprep.mubr.bf16.mxu0 %v1570_v63  ;;  %v1572_v46 = vpack.c.bf16 %v3502_v38, %v3445_v20  ;;  %v1569_v27 = vpack.c.bf16 %v3457_v29, %v3339_v5 }
 0x1e3   : > { %v2363_v9 = vpop.eup %2362  ;;  %v1139_v8 = vadd.f32 -0.016096033, %v1107_v61  ;;  %v1109_v43 = vmul.f32 %v1077_v26, %v3467_v25  ;;  %v1367_v3 = vadd.f32 -0.0073733293, %v1335_v59  ;;  %v822_v33 = vadd.f32 2.7706815e-08, %v790_v23 }
 0x1e4   : > { %v1047_v57 = vmul.f32 %v1015_v15, %v3491_v50  ;;  %v1238_v55 = vadd.f32 -0.00021337405, %v1206_v54  ;;  %v792_v28 = vmul.f32 -2.7261424e-10, %v3550_v48  ;;  %v1208_v60 = vmul.f32 -1.45660715e-05, %v3550_v48  ;;  %1953 = vmatprep.mubr.bf16.mxu1 %v1572_v46 }
 0x1e5   : > { %v1396_v51 = vmul.f32 %v1364_v45, %v3415_v42  ;;  %v1141_v20 = vadd.f32 -0.016096033, %v1109_v43  ;;  %v1399_v38 = vmul.f32 %v1367_v3, %v3491_v50  ;;  %v854_v5 = vmul.f32 %v822_v33, %v3538_v18 }
 0x1e6   : > { %v3563_v29 = vpop.eup %2364  ;;  %v1079_v25 = vadd.f32 -0.0029546, %v1047_v57  ;;  %v1270_v61 = vmul.f32 %v1238_v55, %v3538_v18  ;;  %v824_v22 = vadd.f32 2.7706815e-08, %v792_v28  ;;  %v1240_v62 = vadd.f32 -0.00021337405, %v1208_v60 }
 0x1e7   : > { %v1044_v58 = vmul.f32 %v1012_v10, %v3415_v42  ;;  %v1173_v52 = vmul.f32 %v3454_v12, %v1141_v20  ;;  %v1431_v16 = vadd.f32 -0.014264739, %v1399_v38  ;;  %v886_v4 = vadd.f32 -2.101024e-06, %v854_v5  ;;  %1889 = vmatmul.mubr.bf16.gmra.mrb[24].mxu0 %v1569_v27 }
 0x1e8   : > { %v1111_v14 = vmul.f32 %v1079_v25, %v3491_v50  ;;  %v1302_v47 = vadd.f32 -0.001682827, %v1270_v61  ;;  %v856_v6 = vmul.f32 %v824_v22, %v3550_v48  ;;  %v1272_v41 = vmul.f32 %v1240_v62, %v3550_v48 }
 0x1e9   : > { %v1074_v17 = vadd.f32 -0.0029546, %v3516_v35  ;;  %2368 = vrcp.f32 %v1431_v16  ;;  %v918_v30 = vmul.f32 %v886_v4, %v3538_v18  ;;  %v1571_v10 = vpack.c.bf16 %v3460_v2, %v3359_v37 }
 0x1ea   : > { %v2367_v21 = vpop.eup %2366  ;;  %v1428_v12 = vadd.f32 -0.014264739, %v1396_v51  ;;  %v1334_v49 = vmul.f32 %v1302_v47, %v3538_v18  ;;  %v888_v45 = vadd.f32 -2.101024e-06, %v856_v6  ;;  %v1304_v1 = vadd.f32 -0.001682827, %v1272_v41 }
 0x1eb   : > { %v1171_v50 = vmul.f32 %v3382_v0, %v1139_v8  ;;  %v1076_v63 = vadd.f32 -0.0029546, %v1044_v58  ;;  %v1490_v26 = vmul.f32 %v2367_v21, %v1173_v52  ;;  %v950_v59 = vadd.f32 -5.6925062e-05, %v918_v30  ;;  %1954 = vmatmul.mubr.bf16.gmra.mrb[24].mxu1 %v1571_v10 }
 0x1ec   : > { %v1143_v23 = vadd.f32 -0.016096033, %v1111_v14  ;;  %v1366_v35 = vadd.f32 -0.0073733293, %v1334_v49  ;;  %v920_v54 = vmul.f32 %v888_v45, %v3550_v48  ;;  %v1336_v15 = vmul.f32 %v1304_v1, %v3550_v48 }
 0x1ed   : > { %v3581_v37 = vmul.f32 %v3506_v56, %v3440_v53  ;;  %v1106_v2 = vmul.f32 %v1074_v17, %v3400_v39  ;;  %v1525_v46 = vadd.f32 1.0, %v1490_v26  ;;  %v982_v27 = vmul.f32 %v950_v59, %v3538_v18  ;;  %v3690_v59 = vld [vmem:[#allocation5_spill] sm:$0xff] }
 0x1ee   : > { %2370 = vrcp.f32 %v1428_v12  ;;  %v1398_v0 = vmul.f32 %v1366_v35, %v3538_v18  ;;  %v952_v8 = vadd.f32 -5.6925062e-05, %v920_v54  ;;  %v1368_v43 = vadd.f32 -0.0073733293, %v1336_v15 }
 0x1ef   : > { %v1486_v3 = vmul.f32 %v2363_v9, %v1171_v50  ;;  %v1108_v33 = vmul.f32 %v1076_v63, %v3415_v42  ;;  %v1557_v57 = vmul.f32 %v1525_v46, %v3463_v19  ;;  %v1014_v55 = vadd.f32 -0.00073499064, %v982_v27 }
 0x1f0   : > { %v1175_v28 = vmul.f32 %v3478_v40, %v1143_v23  ;;  %v1430_v53 = vadd.f32 -0.014264739, %v1398_v0  ;;  %v984_v56 = vmul.f32 %v952_v8, %v3550_v48  ;;  %v1400_v39 = vmul.f32 %v1368_v43, %v3550_v48 }
 0x1f1   : > { %v1138_v60 = vadd.f32 -0.016096033, %v1106_v2  ;;  %v1046_v51 = vmul.f32 %v1014_v55, %v3538_v18  ;;  %v1573_v20 = vpack.c.bf16 %v1557_v57, %v3581_v37  ;;  %v1140_v42 = vadd.f32 -0.016096033, %v1108_v33 }
 0x1f2   : > { %2372 = vrcp.f32 %v1430_v53  ;;  %v1016_v38 = vadd.f32 -0.00073499064, %v984_v56  ;;  %v1432_v9 = vadd.f32 -0.014264739, %v1400_v39  ;;  %v1523_v19 = vadd.f32 1.0, %v1486_v3 }
 0x1f3   : > { %v2369_v5 = vpop.eup %2368  ;;  %v1078_v25 = vadd.f32 -0.0029546, %v1046_v51  ;;  %v1170_v22 = vmul.f32 %v3391_v11, %v1138_v60  ;;  %v627_v58 = vmul.f32 0.5, %v3311_v13  ;;  %v631_v52 = vmul.f32 0.5, %v3450_v32 }
 0x1f4   : > { %v1494_v61 = vmul.f32 %v2369_v5, %v1175_v28  ;;  %v1048_v40 = vmul.f32 %v1016_v38, %v3550_v48  ;;  %2374 = vrcp.f32 %v1432_v9  ;;  %v1172_v14 = vmul.f32 %v3403_v24, %v1140_v42 }
 0x1f5   : > { %v1110_v62 = vmul.f32 %v1078_v25, %v3538_v18  ;;  %v1555_v41 = vmul.f32 %v1523_v19, %v627_v58  ;;  %v1484_v10 = vmul.f32 %v3563_v29, %v1170_v22  ;;  %v626_v24 = vmul.f32 0.5, %v3368_v7 }
 0x1f6   : > { %v1527_v16 = vadd.f32 1.0, %v1494_v61  ;;  %v1080_v4 = vadd.f32 -0.0029546, %v1048_v40  ;;  %v630_v63 = vmul.f32 0.5, %v3472_v36  ;;  %v628_v29 = vmul.f32 0.5, %v3690_v59 }
 0x1f7   : > { %v1142_v47 = vadd.f32 -0.016096033, %v1110_v62  ;;  %v1522_v49 = vadd.f32 1.0, %v1484_v10  ;;  %v632_v35 = vmul.f32 0.5, %v3484_v31  ;;  %v3610_v31 = vld [vmem:[%s3650_s4] ss:$0 sm:$0xff] }
 0x1f8   : > { %v2371_v6 = vpop.eup %2370  ;;  %v1559_v17 = vmul.f32 %v1527_v16, %v631_v52  ;;  %v1112_v30 = vmul.f32 %v1080_v4, %v3550_v48 }
 0x1f9   : > { %v1174_v11 = vmul.f32 %v3528_v34, %v1142_v47  ;;  %v1488_v12 = vmul.f32 %v2371_v6, %v1172_v14  ;;  %v1554_v23 = vmul.f32 %v1522_v49, %v626_v24 }
 0x1fa   : > { %v1144_v21 = vadd.f32 -0.016096033, %v1112_v30  ;;  %v1575_v18 = vpack.c.bf16 %v1559_v17, %v1555_v41 }
 0x1fb   : > { %v1524_v50 = vadd.f32 1.0, %v1488_v12 }
 0x1fc   : > { %v2373_v13 = vpop.eup %2372  ;;  %v1176_v32 = vmul.f32 %v3540_v44, %v1144_v21 }
 0x1fd   : > { %v1492_v45 = vmul.f32 %v2373_v13, %v1174_v11  ;;  %v1556_v15 = vmul.f32 %v1524_v50, %v628_v29 }
 0x1fe   : > { %v2375_v1 = vpop.eup %2374 }
 0x1ff   : > { %v1526_v26 = vadd.f32 1.0, %v1492_v45  ;;  %v1496_v48 = vmul.f32 %v2375_v1, %v1176_v32 }
 0x201   : > { %v1558_v34 = vmul.f32 %v1526_v26, %v630_v63  ;;  %v1528_v54 = vadd.f32 1.0, %v1496_v48 }
 0x203   : > { %v1560_v37 = vmul.f32 %v1528_v54, %v632_v35  ;;  %v1574_v44 = vpack.c.bf16 %v1558_v34, %v1554_v23 }
 0x205   : > { %1896 = vmatprep.mubr.bf16.mxu0 %v1574_v44  ;;  %v1576_v2 = vpack.c.bf16 %v1560_v37, %v1556_v15 }
 0x206   : > { %1897 = vmatmul.mubr.bf16.gmra.mrb[28].mxu0 %v1573_v20 }
 0x207   : > { %1961 = vmatprep.mubr.bf16.mxu1 %v1576_v2 }
 0x208   : > { %1962 = vmatmul.mubr.bf16.gmra.mrb[28].mxu1 %v1575_v18 }
 0x29d   : > { %v2159_v7 = vpop.f32.mrb[16].mxu0 }
 0x29e   : > { %v2160_v36 = vpop.f32.mrb[17].mxu0 }
 0x29f   : > { %v2161_v46 = vadd.f32 %v2160_v36, %v2159_v7  ;;  %v2162_v27 = vpop.f32.mrb[18].mxu0 }
 0x2a0   : > { %v2163_v0 = vpop.f32.mrb[19].mxu0 }
 0x2a1   : > { %v2164_v8 = vadd.f32 %v2163_v0, %v2162_v27  ;;  %v1875_v3 = vadd.f32 %v2161_v46, %v3610_v31 }
 0x2a3   : > { %v1878_v28 = vadd.f32 %v2164_v8, %v3610_v31 }
 0x2ad   : > { %v2199_v43 = vpop.f32.mrb[16].mxu1 }
 0x2ae   : > { %v2200_v33 = vpop.f32.mrb[17].mxu1 }
 0x2af   : > { %v2201_v57 = vadd.f32 %v2200_v33, %v2199_v43  ;;  %v2202_v55 = vpop.f32.mrb[18].mxu1 }
 0x2b0   : > { %v2203_v53 = vpop.f32.mrb[19].mxu1 }
 0x2b1   : > { %v1940_v56 = vadd.f32 %v2201_v57, %v1875_v3  ;;  %v2204_v39 = vadd.f32 %v2203_v53, %v2202_v55 }
 0x2b2   : > { %v2165_v51 = vpop.f32.mrb[20].mxu0 }
 0x2b3   : > { %1971 = vst.msk [vmem:[%s3619_s24] sm:$0xff] %vm1970_vm0, %v1940_v56  ;;  %v1943_v60 = vadd.f32 %v2204_v39, %v1878_v28  ;;  %v2166_v38 = vpop.f32.mrb[21].mxu0 }
 0x2b4   : > { %v2167_v9 = vadd.f32 %v2166_v38, %v2165_v51  ;;  %v2168_v42 = vpop.f32.mrb[22].mxu0 }
 0x2b5   : > { %1972 = vst.msk [vmem:[%s3619_s24 + $0x8] sm:$0xff] %vm1970_vm0, %v1943_v60  ;;  %v2205_v20 = vpop.f32.mrb[20].mxu1  ;;  %v2169_v61 = vpop.f32.mrb[23].mxu0 }
 0x2b6   : > { %v2206_v5 = vpop.f32.mrb[21].mxu1  ;;  %v1883_v40 = vadd.f32 %v2167_v9, %v3610_v31  ;;  %v2170_v22 = vadd.f32 %v2169_v61, %v2168_v42 }
 0x2b7   : > { %v2207_v25 = vadd.f32 %v2206_v5, %v2205_v20  ;;  %v2208_v19 = vpop.f32.mrb[22].mxu1 }
 0x2b8   : > { %v2209_v62 = vpop.f32.mrb[23].mxu1  ;;  %v1886_v16 = vadd.f32 %v2170_v22, %v3610_v31 }
 0x2b9   : > { %v2210_v58 = vadd.f32 %v2209_v62, %v2208_v19  ;;  %v1948_v52 = vadd.f32 %v2207_v25, %v1883_v40 }
 0x2ba   : > { %v2171_v14 = vpop.f32.mrb[24].mxu0 }
 0x2bb   : > { %1973 = vst.msk [vmem:[%s3619_s24 + $0x10] sm:$0xff] %vm1970_vm0, %v1948_v52  ;;  %v1951_v4 = vadd.f32 %v2210_v58, %v1886_v16  ;;  %v2172_v47 = vpop.f32.mrb[25].mxu0 }
 0x2bc   : > { %v2173_v6 = vadd.f32 %v2172_v47, %v2171_v14  ;;  %v2174_v41 = vpop.f32.mrb[26].mxu0 }
 0x2bd   : > { %1974 = vst.msk [vmem:[%s3619_s24 + $0x18] sm:$0xff] %vm1970_vm0, %v1951_v4  ;;  %v2175_v17 = vpop.f32.mrb[27].mxu0 }
 0x2be   : > { %v2211_v30 = vpop.f32.mrb[24].mxu1  ;;  %v1891_v10 = vadd.f32 %v2173_v6, %v3610_v31  ;;  %v2176_v11 = vadd.f32 %v2175_v17, %v2174_v41 }
 0x2bf   : > { %v2212_v21 = vpop.f32.mrb[25].mxu1 }
 0x2c0   : > { %v2213_v18 = vadd.f32 %v2212_v21, %v2211_v30  ;;  %v2214_v12 = vpop.f32.mrb[26].mxu1  ;;  %v1894_v13 = vadd.f32 %v2176_v11, %v3610_v31 }
 0x2c1   : > { %v2215_v32 = vpop.f32.mrb[27].mxu1 }
 0x2c2   : > { %v1956_v49 = vadd.f32 %v2213_v18, %v1891_v10  ;;  %v2216_v45 = vadd.f32 %v2215_v32, %v2214_v12 }
 0x2c4   : > { %1975 = vst.msk [vmem:[%s3619_s24 + $0x20] sm:$0xff] %vm1970_vm0, %v1956_v49  ;;  %v1959_v1 = vadd.f32 %v2216_v45, %v1894_v13 }
 0x2c6   : > { %1976 = vst.msk [vmem:[%s3619_s24 + $0x28] sm:$0xff] %vm1970_vm0, %v1959_v1 }
 0x2d9   : > { %v2177_v24 = vpop.f32.mrb[28].mxu0 }
 0x2da   : > { %v2178_v50 = vpop.f32.mrb[29].mxu0 }
 0x2db   : > { %v2217_v63 = vpop.f32.mrb[28].mxu1  ;;  %v2179_v26 = vadd.f32 %v2178_v50, %v2177_v24  ;;  %v2180_v48 = vpop.f32.mrb[30].mxu0 }
 0x2dc   : > { %v2218_v59 = vpop.f32.mrb[29].mxu1  ;;  %v2181_v29 = vpop.f32.mrb[31].mxu0 }
 0x2dd   : > { %v1899_v23 = vadd.f32 %v2179_v26, %v3610_v31  ;;  %v2219_v34 = vadd.f32 %v2218_v59, %v2217_v63  ;;  %v2220_v35 = vpop.f32.mrb[30].mxu1  ;;  %v2182_v54 = vadd.f32 %v2181_v29, %v2180_v48 }
 0x2de   : > { %v2221_v15 = vpop.f32.mrb[31].mxu1 }
 0x2df   : > { %v1964_v37 = vadd.f32 %v2219_v34, %v1899_v23  ;;  %v1902_v44 = vadd.f32 %v2182_v54, %v3610_v31  ;;  %v2222_v2 = vadd.f32 %v2221_v15, %v2220_v35 }
 0x2e1   : > { %1977 = vst.msk [vmem:[%s3619_s24 + $0x30] sm:$0xff] %vm1970_vm0, %v1964_v37  ;;  %v1967_v7 = vadd.f32 %v2222_v2, %v1902_v44 }
 0x2e3   : > { %1978 = vst.msk [vmem:[%s3619_s24 + $0x38] sm:$0xff] %vm1970_vm0, %v1967_v7 }
 0x2e4 PF: > { %s15_s18 = sadd.s32 1, %s2382_s18  }
 0x2e5   : > { %p12_p4 = scmp.ge.s32.totalorder %s15_s18, 4  }
 0x2e7   :  { %14 = sbr.rel (!%p12_p4) target bundleno = 1 (0x1), region = 70 }

</bundles_post_ra>
